<compile_context>
chip_gen: v7x
topology: tpu7x:2x2x1
jax: 0.10.0
libtpu: 0.0.40
codegen_flags: <defaults>
</compile_context>

<pallas_src>
import functools

import jax
import jax.numpy as jnp
import numpy as np
from jax import lax
from jax.experimental import pallas as pl
from jax.experimental.pallas import tpu as pltpu

NEG_SLOPE = 0.01   # nn.LeakyReLU default negative_slope
BN_EPS = 1e-5      # nn.BatchNorm2d default eps


def _round_up(x, m):
    return (x + m - 1) // m * m


def _leaky(x):
    return jnp.where(x > 0, x, NEG_SLOPE * x)


def _compiler_params():
    vmem = 48 * 1024 * 1024                       # safe fallback (fits every generation)
    try:
        cap = int(pltpu.get_tpu_info().vmem_capacity_bytes)
        vmem = min(cap * 3 // 4, 100 * 1024 * 1024)   # v7x -> 48 MiB, v5e/v6e -> 96 MiB
    except Exception:
        pass
    return pltpu.CompilerParams(dimension_semantics=("parallel",),
                                vmem_limit_bytes=vmem)


# --------------------------------------------------------------------------------------
# pass 1: conv1 (1x1) + conv2 (3x3, pad=1) from a single padded input block, built as
#         10 lane-dense bf16 matmuls over shifted row views; LeakyReLU; BN partial stats.
# --------------------------------------------------------------------------------------
def _conv_kernel(h, w, wp, cin_pad, xp_ref, w1_ref, w2_ref, b_ref,
                 sc_ref, c2_ref, stats_ref):
    f32 = jnp.float32
    hwp = h * wp

    def tap(off):
        # shifted flat-row view of the padded input (static offset), bf16 for the MXU
        return xp_ref[pl.ds(off, hwp), :].astype(jnp.bfloat16)

    xc = tap(wp + 1)                               # center tap (di=1, dj=1) == unpadded x
    sc = jnp.dot(xc, w1_ref[...], preferred_element_type=f32)
    sc = _leaky(sc + b_ref[0:1, :])                # shortcut = LeakyReLU(conv1(x))

    acc = jnp.dot(xc, w2_ref[pl.ds(4 * cin_pad, cin_pad), :],
                  preferred_element_type=f32)      # center tap of conv2 reuses xc
    for t in range(9):
        if t == 4:
            continue
        di, dj = divmod(t, 3)
        acc = acc + jnp.dot(tap(di * wp + dj),
                            w2_ref[pl.ds(t * cin_pad, cin_pad), :],
                            preferred_element_type=f32)
    c2 = _leaky(acc + b_ref[1:2, :])               # LeakyReLU(conv2(x)), padded-width grid

    sc_ref[...] = sc.astype(sc_ref.dtype)          # bf16 inter-pass storage
    c2_ref[...] = c2.astype(c2_ref.dtype)

    # BN partial stats (f32 accumulator); mask the 2 garbage columns of each row out.
    colmask = (lax.broadcasted_iota(jnp.int32, (hwp, 1), 0) % wp < w).astype(f32)
    c2m = c2 * colmask
    stats_ref[0, 0:1, :] = jnp.sum(c2m, axis=0, keepdims=True)
    stats_ref[0, 1:2, :] = jnp.sum(c2m * c2, axis=0, keepdims=True)


# --------------------------------------------------------------------------------------
# pass 2: BN affine apply + residual add + separable AvgPool2d(3,3, s=2, p=1)
# --------------------------------------------------------------------------------------
def _bn_pool_kernel(wp, ho, c_pad, sc_ref, c2_ref, bn_ref, pcol_ref, resa_ref, resb_ref):
    f32 = jnp.float32
    s = bn_ref[0:1, :]                              # (1, C_pad) BN scale
    t = bn_ref[1:2, :]                              # (1, C_pad) BN shift
    resa = sc_ref[...].astype(f32) + c2_ref[...].astype(f32) * s + t   # (H, W+2, C_pad)
    resa_ref[...] = resa

    # TODO(synk): nn.Dropout2d in training mode zeroes whole channels; identity (eval) here.

    # 3-row window sums: two shifted adds along the cheap leading (row) axis.
    z = jnp.zeros((1, wp, c_pad), f32)
    nxt = jnp.concatenate([resa[1:], z], axis=0)    # row r -> resa[r + 1]
    prv = jnp.concatenate([z, resa[:-1]], axis=0)   # row r -> resa[r - 1]
    rsum = resa + nxt + prv
    # stride-2 row centers (even rows) via a free leading-axis reshape
    rev = rsum.reshape(ho, 2, wp, c_pad)[:, 0]      # (Ho, W+2, C_pad)
    # 3-column window + stride 2 handled by one batched bf16 matmul (selector entries 1.0,
    # exact in bf16); count_include_pad divisor folded in afterwards in f32.
    pooled = jnp.einsum('how,hwc->hoc', pcol_ref[...], rev.astype(jnp.bfloat16),
                        preferred_element_type=f32)
    resb_ref[...] = pooled * (1.0 / 9.0)


def resblock_forward(x_nchw, params):
    """ResBlock.forward with pooling=True, drop_out=True, return_skip=True -> (resB, resA)."""
    w1, b1, w2, b2, gamma, beta = params
    n, cin, h, w = x_nchw.shape
    cout = w1.shape[0]
    assert h % 2 == 0 and w % 2 == 0, "kernel assumes even spatial dims"
    hp, wp = h + 2, w + 2
    hwp = h * wp
    assert hwp % 16 == 0, "kernel assumes H*(W+2) to be a multiple of 16"
    ho, wo = h // 2, w // 2
    cin_pad = _round_up(cin, 128)
    c_pad = _round_up(cout, 128)
    r_rows = _round_up(hp * wp + 2, 8)             # flat padded rows (+2 for tap overreach)
    f32 = jnp.float32

    # ---- layout glue: NCHW -> channels-last, zero spatial pad, flat rows, lane-pad --------
    x_nhwc = jnp.transpose(x_nchw, (0, 2, 3, 1)).astype(f32)
    xp = jnp.pad(x_nhwc, ((0, 0), (1, 1), (1, 1), (0, 0)))
    xp = xp.reshape(n, hp * wp, cin)
    xp = jnp.pad(xp, ((0, 0), (0, r_rows - hp * wp), (0, cin_pad - cin)))
    xp = xp.reshape(n * r_rows, cin_pad)

    # ---- conv weights: lane-padded bf16 (tap-major for conv2) ------------------------------
    w1m = jnp.transpose(w1.reshape(cout, cin), (1, 0))                 # (Cin, Cout)
    w1p = jnp.zeros((cin_pad, c_pad), f32).at[:cin, :cout].set(w1m).astype(jnp.bfloat16)
    w2t = jnp.transpose(w2, (2, 3, 1, 0)).reshape(9, cin, cout)        # (tap, Cin, Cout)
    w2p = jnp.zeros((9, cin_pad, c_pad), f32).at[:, :cin, :cout].set(w2t)
    w2p = w2p.reshape(9 * cin_pad, c_pad).astype(jnp.bfloat16)
    bias = jnp.zeros((2, c_pad), f32).at[0, :cout].set(b1).at[1, :cout].set(b2)

    cp = _compiler_params()

    # ---- pass 1: convs + BN partial stats ---------------------------------------------------
    sc_rows, c2_rows, stats = pl.pallas_call(
        functools.partial(_conv_kernel, h, w, wp, cin_pad),
        grid=(n,),
        in_specs=[
            pl.BlockSpec((r_rows, cin_pad), lambda i: (i, 0)),         # padded input (1 copy)
            pl.BlockSpec((cin_pad, c_pad), lambda i: (0, 0)),          # conv1 weight (resident)
            pl.BlockSpec((9 * cin_pad, c_pad), lambda i: (0, 0)),      # conv2 taps  (resident)
            pl.BlockSpec((2, c_pad), lambda i: (0, 0)),                # biases      (resident)
        ],
        out_specs=(
            pl.BlockSpec((hwp, c_pad), lambda i: (i, 0)),              # shortcut (bf16)
            pl.BlockSpec((hwp, c_pad), lambda i: (i, 0)),              # conv2 act (bf16)
            pl.BlockSpec((1, 2, c_pad), lambda i: (i, 0, 0)),          # [sum; sumsq]
        ),
        out_shape=(
            jax.ShapeDtypeStruct((n * hwp, c_pad), jnp.bfloat16),
            jax.ShapeDtypeStruct((n * hwp, c_pad), jnp.bfloat16),
            jax.ShapeDtypeStruct((n, 2, c_pad), f32),
        ),
        compiler_params=cp,
    )(xp, w1p, w2p, bias)

    # ---- BN batch statistics -> per-channel affine (tiny glue) -----------------------------
    tot = jnp.sum(stats, axis=0)                   # (2, C_pad)
    cnt = jnp.float32(n * h * w)                   # valid positions only (masked in-kernel)
    mu = tot[0] / cnt
    var = tot[1] / cnt - mu * mu                   # one-pass variance (f32)
    gamma_p = jnp.zeros((c_pad,), f32).at[:cout].set(gamma)
    beta_p = jnp.zeros((c_pad,), f32).at[:cout].set(beta)
    s = lax.rsqrt(var + BN_EPS) * gamma_p
    t = beta_p - mu * s
    bn_aff = jnp.stack([s, t], axis=0)             # (2, C_pad)

    # column-pool selector: 1.0 inside each 3-wide stride-2 window over the valid columns
    pc = np.zeros((wo, wp), np.float32)
    for jo in range(wo):
        for dj in (-1, 0, 1):
            j = 2 * jo + dj
            if 0 <= j < w:
                pc[jo, j] = 1.0
    pcolb = jnp.asarray(np.broadcast_to(pc[None], (ho, wo, wp)).copy(), dtype=jnp.bfloat16)

    # free (metadata-only) reshape: flat rows -> (row, padded-width, channel) blocks
    sc3 = sc_rows.reshape(n * h, wp, c_pad)
    c23 = c2_rows.reshape(n * h, wp, c_pad)

    # ---- pass 2: BN apply + residual + separable pooling ------------------------------------
    resa_rows, resb_rows = pl.pallas_call(
        functools.partial(_bn_pool_kernel, wp, ho, c_pad),
        grid=(n,),
        in_specs=[
            pl.BlockSpec((h, wp, c_pad), lambda i: (i, 0, 0)),         # shortcut
            pl.BlockSpec((h, wp, c_pad), lambda i: (i, 0, 0)),         # conv2 activation
            pl.BlockSpec((2, c_pad), lambda i: (0, 0)),                # BN affine (resident)
            pl.BlockSpec((ho, wo, wp), lambda i: (0, 0, 0)),           # pool selector (resident)
        ],
        out_specs=(
            pl.BlockSpec((h, wp, c_pad), lambda i: (i, 0, 0)),         # resA rows
            pl.BlockSpec((ho, wo, c_pad), lambda i: (i, 0, 0)),        # resB rows
        ),
        out_shape=(
            jax.ShapeDtypeStruct((n * h, wp, c_pad), f32),
            jax.ShapeDtypeStruct((n * ho, wo, c_pad), f32),
        ),
        compiler_params=cp,
    )(sc3, c23, bn_aff, pcolb)

    # slice padded width + padded channels BEFORE the NCHW transpose
    resa = jnp.transpose(resa_rows.reshape(n, h, wp, c_pad)[:, :, :w, :cout], (0, 3, 1, 2))
    resb = jnp.transpose(resb_rows.reshape(n, ho, wo, c_pad)[..., :cout], (0, 3, 1, 2))
    return resb, resa


def resblock_reference(x, params):
    """Pure-JAX f32 reference mirroring the PyTorch forward (for self-check)."""
    w1, b1, w2, b2, gamma, beta = params
    dn = ('NCHW', 'OIHW', 'NCHW')
    shortcut = lax.conv_general_dilated(x, w1, (1, 1), 'VALID', dimension_numbers=dn)
    shortcut = _leaky(shortcut + b1[None, :, None, None])
    resa = lax.conv_general_dilated(x, w2, (1, 1), ((1, 1), (1, 1)), dimension_numbers=dn)
    resa = _leaky(resa + b2[None, :, None, None])
    mu = jnp.mean(resa, axis=(0, 2, 3), keepdims=True)
    var = jnp.mean((resa - mu) ** 2, axis=(0, 2, 3), keepdims=True)
    resa1 = (resa - mu) * lax.rsqrt(var + BN_EPS) * gamma[None, :, None, None] \
        + beta[None, :, None, None]
    resa = shortcut + resa1
    summed = lax.reduce_window(resa, 0.0, lax.add, (1, 1, 3, 3), (1, 1, 2, 2),
                               ((0, 0), (0, 0), (1, 1), (1, 1)))
    return summed / 9.0, resa


if __name__ == "__main__":
    N, CIN, COUT, H, W = 2, 4, 8, 16, 16

    key = jax.random.PRNGKey(0)
    ks = jax.random.split(key, 7)
    x = jax.random.normal(ks[0], (N, CIN, H, W), dtype=jnp.float32)
    # deterministic synthetic parameters (shapes from ResBlock.__init__)
    w1 = 0.3 * jax.random.normal(ks[1], (COUT, CIN, 1, 1), dtype=jnp.float32)
    b1 = 0.1 * jax.random.normal(ks[2], (COUT,), dtype=jnp.float32)
    w2 = 0.2 * jax.random.normal(ks[3], (COUT, CIN, 3, 3), dtype=jnp.float32)
    b2 = 0.1 * jax.random.normal(ks[4], (COUT,), dtype=jnp.float32)
    gamma = 1.0 + 0.1 * jax.random.normal(ks[5], (COUT,), dtype=jnp.float32)
    beta = 0.1 * jax.random.normal(ks[6], (COUT,), dtype=jnp.float32)
    params = (w1, b1, w2, b2, gamma, beta)

    resb, resa = jax.block_until_ready(resblock_forward(x, params))
    rb_ref, ra_ref = resblock_reference(x, params)

    assert resa.shape == (N, COUT, H, W)
    assert resb.shape == (N, COUT, H // 2, W // 2)
    # kernel matmuls use bf16 weights/operands (f32 accumulation) and bf16 inter-pass
    # storage; the reference is pure f32, so tolerance covers bf16 rounding.
    np.testing.assert_allclose(np.asarray(resa), np.asarray(ra_ref), rtol=2e-2, atol=2e-2)
    np.testing.assert_allclose(np.asarray(resb), np.asarray(rb_ref), rtol=2e-2, atol=2e-2)
    print("KERNEL_OK")
</pallas_src>

<mosaic_0001>
module attributes {stable_mosaic.version = 11 : i64} {
  func.func @_conv_kernel(%arg0: i32, %arg1: memref<328x128xf32, #tpu.memory_space<vmem>>, %arg2: memref<128x128xbf16, #tpu.memory_space<vmem>>, %arg3: memref<1152x128xbf16, #tpu.memory_space<vmem>>, %arg4: memref<2x128xf32, #tpu.memory_space<vmem>>, %arg5: memref<288x128xbf16, #tpu.memory_space<vmem>>, %arg6: memref<288x128xbf16, #tpu.memory_space<vmem>>, %arg7: memref<1x2x128xf32, #tpu.memory_space<vmem>>) attributes {dimension_semantics = [#tpu.dimension_semantics<parallel>], iteration_bounds = array<i64: 2>, scalar_prefetch = 0 : i64, scratch_operands = 0 : i64, tpu.core_type = #tpu.core_type<tc>, window_params = [{transform_indices = @transform_0, window_bounds = array<i64: 328, 128>}, {pipeline_mode = #tpu.pipeline_mode<synchronous>, transform_indices = @transform_1, window_bounds = array<i64: 128, 128>}, {pipeline_mode = #tpu.pipeline_mode<synchronous>, transform_indices = @transform_2, window_bounds = array<i64: 1152, 128>}, {pipeline_mode = #tpu.pipeline_mode<synchronous>, transform_indices = @transform_3, window_bounds = array<i64: 2, 128>}, {transform_indices = @transform_4, window_bounds = array<i64: 288, 128>}, {transform_indices = @transform_5, window_bounds = array<i64: 288, 128>}, {transform_indices = @transform_6, window_bounds = array<i64: 1, 2, 128>}]} {
    %c19 = arith.constant 19 : index
    %c0 = arith.constant 0 : index
    %0 = vector.load %arg1[%c19, %c0] : memref<328x128xf32, #tpu.memory_space<vmem>>, vector<288x128xf32>
    %1 = arith.truncf %0 : vector<288x128xf32> to vector<288x128xbf16>
    %c0_0 = arith.constant 0 : index
    %c0_1 = arith.constant 0 : index
    %2 = vector.load %arg2[%c0_0, %c0_1] : memref<128x128xbf16, #tpu.memory_space<vmem>>, vector<128x128xbf16>
    %cst = arith.constant dense<0.000000e+00> : vector<288x128xf32>
    %3 = tpu.matmul %1, %2, %cst {dimension_numbers = #tpu.dot_dimension_numbers<[1], [0], [0], [1], [0, 0, 1, 1], [], []>} : vector<288x128xbf16>, vector<128x128xbf16>, vector<288x128xf32> -> vector<288x128xf32>
    %c0_2 = arith.constant 0 : index
    %c0_3 = arith.constant 0 : index
    %4 = vector.load %arg4[%c0_2, %c0_3] : memref<2x128xf32, #tpu.memory_space<vmem>>, vector<1x128xf32>
    %5 = vector.broadcast %4 : vector<1x128xf32> to vector<288x128xf32>
    %6 = arith.addf %3, %5 : vector<288x128xf32>
    %cst_4 = arith.constant 0.000000e+00 : f32
    %7 = vector.broadcast %cst_4 : f32 to vector<288x128xf32>
    %8 = arith.cmpf ogt, %6, %7 : vector<288x128xf32>
    %cst_5 = arith.constant 0.00999999977 : f32
    %9 = vector.broadcast %cst_5 : f32 to vector<288x128xf32>
    %10 = arith.mulf %9, %6 : vector<288x128xf32>
    %11 = arith.select %8, %6, %10 : vector<288x128xi1>, vector<288x128xf32>
    %c512 = arith.constant 512 : index
    %c0_6 = arith.constant 0 : index
    %12 = vector.load %arg3[%c512, %c0_6] : memref<1152x128xbf16, #tpu.memory_space<vmem>>, vector<128x128xbf16>
    %cst_7 = arith.constant dense<0.000000e+00> : vector<288x128xf32>
    %13 = tpu.matmul %1, %12, %cst_7 {dimension_numbers = #tpu.dot_dimension_numbers<[1], [0], [0], [1], [0, 0, 1, 1], [], []>} : vector<288x128xbf16>, vector<128x128xbf16>, vector<288x128xf32> -> vector<288x128xf32>
    %c0_8 = arith.constant 0 : index
    %c0_9 = arith.constant 0 : index
    %14 = vector.load %arg1[%c0_8, %c0_9] : memref<328x128xf32, #tpu.memory_space<vmem>>, vector<288x128xf32>
    %15 = arith.truncf %14 : vector<288x128xf32> to vector<288x128xbf16>
    %c0_10 = arith.constant 0 : index
    %c0_11 = arith.constant 0 : index
    %16 = vector.load %arg3[%c0_10, %c0_11] : memref<1152x128xbf16, #tpu.memory_space<vmem>>, vector<128x128xbf16>
    %cst_12 = arith.constant dense<0.000000e+00> : vector<288x128xf32>
    %17 = tpu.matmul %15, %16, %cst_12 {dimension_numbers = #tpu.dot_dimension_numbers<[1], [0], [0], [1], [0, 0, 1, 1], [], []>} : vector<288x128xbf16>, vector<128x128xbf16>, vector<288x128xf32> -> vector<288x128xf32>
    %18 = arith.addf %13, %17 : vector<288x128xf32>
    %c1 = arith.constant 1 : index
    %c0_13 = arith.constant 0 : index
    %19 = vector.load %arg1[%c1, %c0_13] : memref<328x128xf32, #tpu.memory_space<vmem>>, vector<288x128xf32>
    %20 = arith.truncf %19 : vector<288x128xf32> to vector<288x128xbf16>
    %c128 = arith.constant 128 : index
    %c0_14 = arith.constant 0 : index
    %21 = vector.load %arg3[%c128, %c0_14] : memref<1152x128xbf16, #tpu.memory_space<vmem>>, vector<128x128xbf16>
    %cst_15 = arith.constant dense<0.000000e+00> : vector<288x128xf32>
    %22 = tpu.matmul %20, %21, %cst_15 {dimension_numbers = #tpu.dot_dimension_numbers<[1], [0], [0], [1], [0, 0, 1, 1], [], []>} : vector<288x128xbf16>, vector<128x128xbf16>, vector<288x128xf32> -> vector<288x128xf32>
    %23 = arith.addf %18, %22 : vector<288x128xf32>
    %c2 = arith.constant 2 : index
    %c0_16 = arith.constant 0 : index
    %24 = vector.load %arg1[%c2, %c0_16] : memref<328x128xf32, #tpu.memory_space<vmem>>, vector<288x128xf32>
    %25 = arith.truncf %24 : vector<288x128xf32> to vector<288x128xbf16>
    %c256 = arith.constant 256 : index
    %c0_17 = arith.constant 0 : index
    %26 = vector.load %arg3[%c256, %c0_17] : memref<1152x128xbf16, #tpu.memory_space<vmem>>, vector<128x128xbf16>
    %cst_18 = arith.constant dense<0.000000e+00> : vector<288x128xf32>
    %27 = tpu.matmul %25, %26, %cst_18 {dimension_numbers = #tpu.dot_dimension_numbers<[1], [0], [0], [1], [0, 0, 1, 1], [], []>} : vector<288x128xbf16>, vector<128x128xbf16>, vector<288x128xf32> -> vector<288x128xf32>
    %28 = arith.addf %23, %27 : vector<288x128xf32>
    %c18 = arith.constant 18 : index
    %c0_19 = arith.constant 0 : index
    %29 = vector.load %arg1[%c18, %c0_19] : memref<328x128xf32, #tpu.memory_space<vmem>>, vector<288x128xf32>
    %30 = arith.truncf %29 : vector<288x128xf32> to vector<288x128xbf16>
    %c384 = arith.constant 384 : index
    %c0_20 = arith.constant 0 : index
    %31 = vector.load %arg3[%c384, %c0_20] : memref<1152x128xbf16, #tpu.memory_space<vmem>>, vector<128x128xbf16>
    %cst_21 = arith.constant dense<0.000000e+00> : vector<288x128xf32>
    %32 = tpu.matmul %30, %31, %cst_21 {dimension_numbers = #tpu.dot_dimension_numbers<[1], [0], [0], [1], [0, 0, 1, 1], [], []>} : vector<288x128xbf16>, vector<128x128xbf16>, vector<288x128xf32> -> vector<288x128xf32>
    %33 = arith.addf %28, %32 : vector<288x128xf32>
    %c20 = arith.constant 20 : index
    %c0_22 = arith.constant 0 : index
    %34 = vector.load %arg1[%c20, %c0_22] : memref<328x128xf32, #tpu.memory_space<vmem>>, vector<288x128xf32>
    %35 = arith.truncf %34 : vector<288x128xf32> to vector<288x128xbf16>
    %c640 = arith.constant 640 : index
    %c0_23 = arith.constant 0 : index
    %36 = vector.load %arg3[%c640, %c0_23] : memref<1152x128xbf16, #tpu.memory_space<vmem>>, vector<128x128xbf16>
    %cst_24 = arith.constant dense<0.000000e+00> : vector<288x128xf32>
    %37 = tpu.matmul %35, %36, %cst_24 {dimension_numbers = #tpu.dot_dimension_numbers<[1], [0], [0], [1], [0, 0, 1, 1], [], []>} : vector<288x128xbf16>, vector<128x128xbf16>, vector<288x128xf32> -> vector<288x128xf32>
    %38 = arith.addf %33, %37 : vector<288x128xf32>
    %c36 = arith.constant 36 : index
    %c0_25 = arith.constant 0 : index
    %39 = vector.load %arg1[%c36, %c0_25] : memref<328x128xf32, #tpu.memory_space<vmem>>, vector<288x128xf32>
    %40 = arith.truncf %39 : vector<288x128xf32> to vector<288x128xbf16>
    %c768 = arith.constant 768 : index
    %c0_26 = arith.constant 0 : index
    %41 = vector.load %arg3[%c768, %c0_26] : memref<1152x128xbf16, #tpu.memory_space<vmem>>, vector<128x128xbf16>
    %cst_27 = arith.constant dense<0.000000e+00> : vector<288x128xf32>
    %42 = tpu.matmul %40, %41, %cst_27 {dimension_numbers = #tpu.dot_dimension_numbers<[1], [0], [0], [1], [0, 0, 1, 1], [], []>} : vector<288x128xbf16>, vector<128x128xbf16>, vector<288x128xf32> -> vector<288x128xf32>
    %43 = arith.addf %38, %42 : vector<288x128xf32>
    %c37 = arith.constant 37 : index
    %c0_28 = arith.constant 0 : index
    %44 = vector.load %arg1[%c37, %c0_28] : memref<328x128xf32, #tpu.memory_space<vmem>>, vector<288x128xf32>
    %45 = arith.truncf %44 : vector<288x128xf32> to vector<288x128xbf16>
    %c896 = arith.constant 896 : index
    %c0_29 = arith.constant 0 : index
    %46 = vector.load %arg3[%c896, %c0_29] : memref<1152x128xbf16, #tpu.memory_space<vmem>>, vector<128x128xbf16>
    %cst_30 = arith.constant dense<0.000000e+00> : vector<288x128xf32>
    %47 = tpu.matmul %45, %46, %cst_30 {dimension_numbers = #tpu.dot_dimension_numbers<[1], [0], [0], [1], [0, 0, 1, 1], [], []>} : vector<288x128xbf16>, vector<128x128xbf16>, vector<288x128xf32> -> vector<288x128xf32>
    %48 = arith.addf %43, %47 : vector<288x128xf32>
    %c38 = arith.constant 38 : index
    %c0_31 = arith.constant 0 : index
    %49 = vector.load %arg1[%c38, %c0_31] : memref<328x128xf32, #tpu.memory_space<vmem>>, vector<288x128xf32>
    %50 = arith.truncf %49 : vector<288x128xf32> to vector<288x128xbf16>
    %c1024 = arith.constant 1024 : index
    %c0_32 = arith.constant 0 : index
    %51 = vector.load %arg3[%c1024, %c0_32] : memref<1152x128xbf16, #tpu.memory_space<vmem>>, vector<128x128xbf16>
    %cst_33 = arith.constant dense<0.000000e+00> : vector<288x128xf32>
    %52 = tpu.matmul %50, %51, %cst_33 {dimension_numbers = #tpu.dot_dimension_numbers<[1], [0], [0], [1], [0, 0, 1, 1], [], []>} : vector<288x128xbf16>, vector<128x128xbf16>, vector<288x128xf32> -> vector<288x128xf32>
    %53 = arith.addf %48, %52 : vector<288x128xf32>
    %c1_34 = arith.constant 1 : index
    %c0_35 = arith.constant 0 : index
    %54 = vector.load %arg4[%c1_34, %c0_35] : memref<2x128xf32, #tpu.memory_space<vmem>>, vector<1x128xf32>
    %55 = vector.broadcast %54 : vector<1x128xf32> to vector<288x128xf32>
    %56 = arith.addf %53, %55 : vector<288x128xf32>
    %cst_36 = arith.constant 0.000000e+00 : f32
    %57 = vector.broadcast %cst_36 : f32 to vector<288x128xf32>
    %58 = arith.cmpf ogt, %56, %57 : vector<288x128xf32>
    %cst_37 = arith.constant 0.00999999977 : f32
    %59 = vector.broadcast %cst_37 : f32 to vector<288x128xf32>
    %60 = arith.mulf %59, %56 : vector<288x128xf32>
    %61 = arith.select %58, %56, %60 : vector<288x128xi1>, vector<288x128xf32>
    %62 = arith.truncf %11 : vector<288x128xf32> to vector<288x128xbf16>
    %c0_38 = arith.constant 0 : index
    %c0_39 = arith.constant 0 : index
    %63 = vector.load %arg5[%c0_38, %c0_39] : memref<288x128xbf16, #tpu.memory_space<vmem>>, vector<288x128xbf16>
    tpu.vector_store %arg5[%c0_38, %c0_39], %62 {strides = array<i32>} : memref<288x128xbf16, #tpu.memory_space<vmem>>, vector<288x128xbf16>,
    %64 = arith.truncf %61 : vector<288x128xf32> to vector<288x128xbf16>
    %c0_40 = arith.constant 0 : index
    %c0_41 = arith.constant 0 : index
    %65 = vector.load %arg6[%c0_40, %c0_41] : memref<288x128xbf16, #tpu.memory_space<vmem>>, vector<288x128xbf16>
    tpu.vector_store %arg6[%c0_40, %c0_41], %64 {strides = array<i32>} : memref<288x128xbf16, #tpu.memory_space<vmem>>, vector<288x128xbf16>,
    %66 = tpu.iota {dimensions = array<i32: 0>} : vector<288x1xi32>
    %c18_i32 = arith.constant 18 : i32
    %c0_i32 = arith.constant 0 : i32
    %67 = arith.cmpi eq, %c18_i32, %c0_i32 : i32
    %c1_i32 = arith.constant 1 : i32
    %68 = arith.select %67, %c1_i32, %c18_i32 : i32
    %69 = vector.broadcast %68 : i32 to vector<288x1xi32>
    %70 = arith.remsi %66, %69 : vector<288x1xi32>
    %c0_i32_42 = arith.constant 0 : i32
    %71 = vector.broadcast %c0_i32_42 : i32 to vector<288x1xi32>
    %72 = arith.cmpi ne, %70, %71 : vector<288x1xi32>
    %c0_i32_43 = arith.constant 0 : i32
    %73 = vector.broadcast %c0_i32_43 : i32 to vector<288x1xi32>
    %74 = arith.cmpi slt, %70, %73 : vector<288x1xi32>
    %c0_i32_44 = arith.constant 0 : i32
    %75 = arith.cmpi slt, %68, %c0_i32_44 : i32
    %76 = vector.broadcast %75 : i1 to vector<288x1xi1>
    %77 = vector.broadcast %76 : vector<288x1xi1> to vector<288x1xi1>
    %78 = arith.xori %74, %77 : vector<288x1xi1>
    %79 = arith.andi %78, %72 : vector<288x1xi1>
    %80 = vector.broadcast %68 : i32 to vector<288x1xi32>
    %81 = arith.addi %70, %80 : vector<288x1xi32>
    %82 = arith.select %79, %81, %70 : vector<288x1xi1>, vector<288x1xi32>
    %c16_i32 = arith.constant 16 : i32
    %83 = vector.broadcast %c16_i32 : i32 to vector<288x1xi32>
    %84 = arith.cmpi slt, %82, %83 : vector<288x1xi32>
    %85 = arith.extui %84 : vector<288x1xi1> to vector<288x1xi32>
    %86 = arith.sitofp %85 : vector<288x1xi32> to vector<288x1xf32>
    %87 = vector.broadcast %86 : vector<288x1xf32> to vector<288x128xf32>
    %88 = arith.mulf %61, %87 : vector<288x128xf32>
    %cst_45 = arith.constant dense<0.000000e+00> : vector<128xf32>
    %89 = vector.multi_reduction <add>, %88, %cst_45 [0] : vector<288x128xf32> to vector<128xf32>
    %90 = vector.shape_cast %89 : vector<128xf32> to vector<1x128xf32>
    %c0_46 = arith.constant 0 : index
    %c0_47 = arith.constant 0 : index
    %c0_48 = arith.constant 0 : index
    %91 = vector.load %arg7[%c0_46, %c0_47, %c0_48] : memref<1x2x128xf32, #tpu.memory_space<vmem>>, vector<1x1x128xf32>
    %92 = vector.shape_cast %91 : vector<1x1x128xf32> to vector<1x128xf32>
    %93 = vector.shape_cast %90 : vector<1x128xf32> to vector<1x1x128xf32>
    tpu.vector_store %arg7[%c0_46, %c0_47, %c0_48], %93 {strides = array<i32>} : memref<1x2x128xf32, #tpu.memory_space<vmem>>, vector<1x1x128xf32>,
    %94 = arith.mulf %88, %61 : vector<288x128xf32>
    %cst_49 = arith.constant dense<0.000000e+00> : vector<128xf32>
    %95 = vector.multi_reduction <add>, %94, %cst_49 [0] : vector<288x128xf32> to vector<128xf32>
    %96 = vector.shape_cast %95 : vector<128xf32> to vector<1x128xf32>
    %c0_50 = arith.constant 0 : index
    %c1_51 = arith.constant 1 : index
    %c0_52 = arith.constant 0 : index
    %97 = vector.load %arg7[%c0_50, %c1_51, %c0_52] : memref<1x2x128xf32, #tpu.memory_space<vmem>>, vector<1x1x128xf32>
    %98 = vector.shape_cast %97 : vector<1x1x128xf32> to vector<1x128xf32>
    %99 = vector.shape_cast %96 : vector<1x128xf32> to vector<1x1x128xf32>
    tpu.vector_store %arg7[%c0_50, %c1_51, %c0_52], %99 {strides = array<i32>} : memref<1x2x128xf32, #tpu.memory_space<vmem>>, vector<1x1x128xf32>,
    return
  }
  func.func @transform_0(%arg0: i32) -> (i32, i32) {
    %c0_i32 = arith.constant 0 : i32
    %c0_i32_0 = arith.constant 0 : i32
    return %arg0, %c0_i32 : i32, i32
  }
  func.func @transform_1(%arg0: i32) -> (i32, i32) {
    %c0_i32 = arith.constant 0 : i32
    %c0_i32_0 = arith.constant 0 : i32
    %c0_i32_1 = arith.constant 0 : i32
    return %c0_i32, %c0_i32_0 : i32, i32
  }
  func.func @transform_2(%arg0: i32) -> (i32, i32) {
    %c0_i32 = arith.constant 0 : i32
    %c0_i32_0 = arith.constant 0 : i32
    %c0_i32_1 = arith.constant 0 : i32
    return %c0_i32, %c0_i32_0 : i32, i32
  }
  func.func @transform_3(%arg0: i32) -> (i32, i32) {
    %c0_i32 = arith.constant 0 : i32
    %c0_i32_0 = arith.constant 0 : i32
    %c0_i32_1 = arith.constant 0 : i32
    return %c0_i32, %c0_i32_0 : i32, i32
  }
  func.func @transform_4(%arg0: i32) -> (i32, i32) {
    %c0_i32 = arith.constant 0 : i32
    %c0_i32_0 = arith.constant 0 : i32
    return %arg0, %c0_i32 : i32, i32
  }
  func.func @transform_5(%arg0: i32) -> (i32, i32) {
    %c0_i32 = arith.constant 0 : i32
    %c0_i32_0 = arith.constant 0 : i32
    return %arg0, %c0_i32 : i32, i32
  }
  func.func @transform_6(%arg0: i32) -> (i32, i32, i32) {
    %c0_i32 = arith.constant 0 : i32
    %c0_i32_0 = arith.constant 0 : i32
    %c0_i32_1 = arith.constant 0 : i32
    return %arg0, %c0_i32, %c0_i32_0 : i32, i32, i32
  }
}

</mosaic_0001>

<bundles_post_ra>
// kernel: tpu_custom_call.1
= control target key start
LH: loop header
LB: loop body
LE: loop exit
PB: predicated region body
PF: predicated region fallthrough
CT: control target
= control target key end

     0   :  { %12 = vsyncpa [#allocation3], 0  ;;  %s9227_s0 = inlined_call_operand.hbm [shape: f32[656,128], index: 0, kind: input, shape index: {}]   ;;  %s9228_s1 = inlined_call_operand.hbm [shape: bf16[128,128], index: 1, kind: input, shape index: {}]   ;;  %s9229_s2 = inlined_call_operand.hbm [shape: bf16[1152,128], index: 2, kind: input, shape index: {}]   ;;  %s9230_s3 = inlined_call_operand.vmem [shape: f32[2,128], index: 3, kind: input, shape index: {}]   ;;  %s9231_s4 = inlined_call_operand.hbm [shape: bf16[576,128], index: 4, kind: output, shape index: {0}]   ;;  %s9232_s5 = inlined_call_operand.hbm [shape: bf16[576,128], index: 5, kind: output, shape index: {1}]   ;;  %s9233_s6 = inlined_call_operand.hbm [shape: f32[2,2,128], index: 6, kind: output, shape index: {2}]  }
   0x1   :  { %14 = vsyncpa [#allocation3 + $0x1], 0 }
   0x2   :  { %15 = vsyncpa [#allocation6], 0 }
   0x3   :  { %16 = vsyncpa [#allocation4], 0 }
   0x4   :  { %18 = vsyncpa [#allocation4 + $0x1], 0 }
   0x5   :  { %19 = vsyncpa [#allocation10], 0 }
   0x6   :  { %21 = vsyncpa [#allocation10 + $0x1], 0  ;;  %s7242_s21 = smov 0   ;;  %s7244_s22 = smov 0  }
   0x7   :  { %s7246_s23 = smov 0   ;;  %s7248_s24 = smov 0  }
   0x8 LB: > { %s7263_s25 = sadd.s32 4294967295, %s7192_s24   ;;  %s9235_s26 = sadd.s32 4294967294, %s7192_s24   ;;  %s7192_s24 = sphi %s7248_s24, %s9389_s24   ;;  %s7188_s23 = sphi %s7246_s23, %s9388_s23   ;;  %s7184_s22 = sphi %s7244_s22, %s9387_s22   ;;  %s7180_s21 = sphi %s7242_s21, %s9386_s21  }
   0x9   : > { %p47_p0 = scmp.ne.s32.totalorder %s7184_s22, %s7180_s21  ;;  %p9234_p1 = scmp.eq.s32.totalorder %s7263_s25, 0 }
   0xa   : > { %p140_p3 = scmp.eq.s32.totalorder %s9235_s26, 1  ;;  %p5175_p5 = scmp.ge.s32.totalorder %s7192_s24, 1 }
   0xb   : > { %p7274_p4 = por %p9234_p1, %p47_p0  ;;  %p199_p7 = scmp.lt.s32.totalorder %s7192_s24, 3 }
   0xc   : > { %p7279_p6 = por %p140_p3, %p47_p0  ;;  %s7194_s30 = smov [#allocation5]  }
   0xd   : > { %s9240_s27 = scalar_select %p7274_p4, 1, 0 }
   0xe   : > { %s9241_s28 = scalar_select %p7279_p6, 1, 0 }
   0xf   : > { %p7284_p8 = pnand %p5175_p5, %p199_p7  ;;  %s211_s7 = sshll.u32 %s7194_s30, 4  ;;  %s7288_s7 = int_to_ptr.vmem [resolvable:$true] %s211_s7 }
  0x10   : > { %s7195_s9 = smov [#allocation7]   ;;  %s6976_s13 = scalar_lea.hbm %s9228_s1, 1024 }
  0x11   : > { %p6828_p9 = pneg %p7284_p8  ;;  %s224_s10 = sshll.u32 %s7195_s9, 4  ;;  %s7299_s10 = int_to_ptr.vmem [resolvable:$true] %s224_s10 }
  0x12   : > { %p6977_p12 = scmp.ne.s32.totalorder %s9228_s1, %s6976_s13  ;;  %p6983_p5 = scmp.lt.u32.totalorder %s6976_s13, %s9228_s1 }
  0x13   : > { %p7295_p11 = pnand %p6828_p9, %p9234_p1 }
  0x15   : > { %p6978_p13 = pneg %p7295_p11 }
  0x17   : > { %p6979_p0 = pnand %p6978_p13, %p6977_p12 }
  0x19   : > { %p6980_p3 = pneg %p6979_p0 }
  0x1b   : > { %p6985_p7 = pnand %p6983_p5, %p6980_p3 }
  0x1d   : > { %6988 = shalt.err (!%p6985_p7)
}
  0x1e   : > { %s6989_s18 = scalar_lea.vmem %s7288_s7, 1024  ;;  %p6997_p2 = scmp.lt.s32.totalorder %s7288_s7, %s7288_s7 }
  0x1f   : > { %p6990_p9 = scmp.ne.s32.totalorder %s7288_s7, %s6989_s18  ;;  %p6998_p12 = scmp.lt.s32.totalorder %s6989_s18, %s6989_s18 }
  0x21   : > { %p6992_p10 = pnand %p6990_p9, %p6978_p13  ;;  %p6999_p0 = por %p6998_p12, %p6997_p2 }
  0x23   : > { %p6993_p1 = pneg %p6992_p10 }
  0x25   : > { %p7000_p6 = pnand %p6999_p0, %p6993_p1 }
  0x27   : > { %7003 = shalt.err (!%p7000_p6)
}
  0x28   : > { %s7196_s19 = smov 64   ;;  %s7197_s20 = smov 4  }
  0x29   : > { %6831 = dma.hbm_to_vmem [thread:$0]  (!%p7295_p11), %s9228_s1, 1024, %s7288_s7, [#allocation6], %s7196_s19, %s7196_s19, %s7197_s20  }
  0x2a   : > { %s7004_s13 = scalar_lea.hbm %s9229_s2, 9216 }
  0x2b   : > { %p7005_p2 = scmp.ne.s32.totalorder %s9229_s2, %s7004_s13  ;;  %p7011_p10 = scmp.lt.u32.totalorder %s7004_s13, %s9229_s2 }
  0x2d   : > { %p7007_p1 = pnand %p7005_p2, %p6978_p13 }
  0x2f   : > { %p7008_p6 = pneg %p7007_p1 }
  0x31   : > { %p7013_p3 = pnand %p7011_p10, %p7008_p6 }
  0x33   : > { %7016 = shalt.err (!%p7013_p3)
}
  0x34   : > { %s7017_s7 = scalar_lea.vmem %s7299_s10, 9216  ;;  %p7025_p12 = scmp.lt.s32.totalorder %s7299_s10, %s7299_s10 }
  0x35   : > { %p7018_p5 = scmp.ne.s32.totalorder %s7299_s10, %s7017_s7  ;;  %p7026_p0 = scmp.lt.s32.totalorder %s7017_s7, %s7017_s7 }
  0x37   : > { %p7020_p7 = pnand %p7018_p5, %p6978_p13  ;;  %p7027_p2 = por %p7026_p0, %p7025_p12 }
  0x39   : > { %p7021_p9 = pneg %p7020_p7 }
  0x3b   : > { %p7028_p1 = pnand %p7027_p2, %p7021_p9 }
  0x3d   : > { %7031 = shalt.err (!%p7028_p1)
}
  0x3e   : > { %6834 = dma.hbm_to_vmem [thread:$0]  (!%p7295_p11), %s9229_s2, 9216, %s7299_s10, [#allocation6], %s7196_s19, %s7196_s19, %s7197_s20  }
  0x3f   : > { %s7354_s9 = sadd.s32 1, %s7192_s24   ;;  %s34_s8 = sadd.s32 1, %s7188_s23 }
  0x40   : > { %s31_s11 = ssub.s32 %s7192_s24, %s7354_s9  ;;  %p41_p13 = scmp.ne.s32.totalorder %s7188_s23, %s7184_s22 }
  0x41   : > { %p32_p6 = scmp.eq.s32.totalorder %s31_s11, 0  ;;  %p42_p10 = scmp.eq.s32.totalorder %s7192_s24, 0 }
  0x42   : > { %p9244_p3 = scmp.eq.s32.totalorder %s7263_s25, 1  ;;  %p6851_p7 = scmp.lt.s32.totalorder %s7192_s24, 2 }
  0x43   : > { %s7370_s13 = scalar_select %p32_p6, %s7188_s23, %s34_s8  }
  0x44   : > { %p7364_p5 = por %p9244_p3, %p41_p13  ;;  %p43_p9 = por %p42_p10, %p41_p13 }
  0x45   : > { %s241_s14 = sand.u32 1, %s7188_s23   ;;  %s5380_s10 = smul.u32 5248, %s7192_s24 }
  0x46   : > { %s9245_s12 = scalar_select %p7364_p5, 1, 0 }
  0x47   : > { %s6737_s15 = smul.u32 328, %s241_s14  ;;  %p7374_p11 = pnand %p6851_p7, %p43_p9 }
  0x48   : > { %s7381_s17 = scalar_lea.hbm %s9227_s0, %s5380_s10  ;;  %s7385_s30 = scalar_lea.sflag [#allocation3], %s241_s14 }
  0x49   : > { %s245_s7 = scalar_lea.vmem [#allocation2], %s6737_s15  ;;  %s7032_s8 = scalar_lea.hbm %s7381_s17, 5248 }
  0x4a   : > { %s252_s18 = sshll.u32 %s245_s7, 4  ;;  %p7033_p12 = scmp.ne.s32.totalorder %s7381_s17, %s7032_s8  ;;  %s7383_s18 = int_to_ptr.vmem [resolvable:$true] %s252_s18 }
  0x4b   : > { %p7034_p0 = pneg %p7374_p11  ;;  %s7037_s20 = scalar_lea.hbm %s9227_s0, 10496 }
  0x4c   : > { %p7038_p13 = scmp.lt.u32.totalorder %s7381_s17, %s9227_s0  ;;  %p7039_p6 = scmp.lt.u32.totalorder %s7037_s20, %s7032_s8 }
  0x4d   : > { %p7035_p2 = pnand %p7034_p0, %p7033_p12  ;;  %p7041_p3 = scmp.lt.u32.totalorder %s7032_s8, %s7381_s17 }
  0x4e   : > { %p7040_p10 = por %p7039_p6, %p7038_p13 }
  0x4f   : > { %p7036_p1 = pneg %p7035_p2 }
  0x50   : > { %p7042_p7 = por %p7041_p3, %p7040_p10 }
  0x52   : > { %p7043_p9 = pnand %p7042_p7, %p7036_p1 }
  0x54   : > { %7046 = shalt.err (!%p7043_p9)
}
  0x55   : > { %s7047_s14 = scalar_lea.vmem %s7383_s18, 5248  ;;  %s7198_s15 = smov [#allocation2]  }
  0x56   : > { %p7048_p12 = scmp.ne.s32.totalorder %s7383_s18, %s7047_s14  ;;  %s7052_s7 = sshll.u32 %s7198_s15, 4  ;;  %s7053_s7 = int_to_ptr.vmem [resolvable:$false] %s7052_s7 }
  0x57   : > { %s7054_s26 = scalar_lea.vmem %s7053_s7, 10496  ;;  %p7055_p4 = scmp.lt.s32.totalorder %s7383_s18, %s7053_s7 }
  0x58   : > { %p7050_p2 = pnand %p7048_p12, %p7034_p0  ;;  %p7056_p13 = scmp.lt.s32.totalorder %s7054_s26, %s7047_s14 }
  0x5a   : > { %p7051_p5 = pneg %p7050_p2  ;;  %p7057_p6 = por %p7056_p13, %p7055_p4 }
  0x5c   : > { %p7058_p10 = pnand %p7057_p6, %p7051_p5 }
  0x5e   : > { %7061 = shalt.err (!%p7058_p10)
}
  0x5f   : > { %s7199_s8 = smov 128   ;;  %s7200_s11 = smov 8  }
  0x60   : > { %6838 = dma.hbm_to_vmem [thread:$0]  (!%p7374_p11), %s7381_s17, 5248, %s7383_s18, %s7385_s30, %s7199_s8, %s7199_s8, %s7200_s11  }
  0x61   : > { %264 = sbr.rel (%p7284_p8) target bundleno = 780 (0x30c), region = 36 }
  0x68   : > { %s7416_s10 = sand.u32 1, %s7184_s22   ;;  %p9247_p4 = scmp.ne.s32.totalorder %s9240_s27, 0 }
  0x69   : > { %s6738_s20 = smul.u32 328, %s7416_s10  ;;  %s267_s16 = scalar_lea.sflag [#allocation3], %s7416_s10 }
  0x6b   : > { %s7420_s14 = scalar_lea.vmem [#allocation2], %s6738_s20 }
  0x6c   : > { %7163 = dma.done.wait (%p9247_p4), %s267_s16, 5248  }
  0x6d   : > { %7165 = vsyncadd (%p9247_p4), %s267_s16, 4294962048  ;;  %p9248_p5 = scmp.eq.s32.totalorder %s7263_s25, 0 }
  0x6f   : > { %7167 = dma.done.wait (%p9248_p5), [#allocation6], 10240   ;;  %p9249_p8 = pmov %p9248_p5 }
  0x70   : > { %v6896_v0 = vld [vmem:[#allocation5] sm:$0xff]   ;;  %v6898_v2 = vld [vmem:[#allocation5 + $0x8] sm:$0xff]   ;;  %v6900_v4 = vld [vmem:[#allocation5 + $0x10] sm:$0xff]   ;;  %s6739_s19 = smul.u32 144, %s7416_s10  ;;  %s4969_s8 = scalar_lea.sflag [#allocation4], %s7416_s10 }
  0x71   : > { %7169 = vsyncadd (%p9249_p8), [#allocation6], 4294957056  ;;  %v6897_v1 = vld [vmem:[#allocation7 + $0xc0] sm:$0xff]   ;;  %5929 = vmatprep.subr.bf16.mxu0 %v6896_v0  ;;  %v6899_v3 = vld [vmem:[#allocation7 + $0xc8] sm:$0xff]   ;;  %s5453_s18 = smul.u32 2304, %s7263_s25  ;;  %p9322_p0 = scmp.ne.s32.totalorder %s9245_s12, 0 }
  0x72   : > { %6189 = vmatprep.subr.bf16.mxu1 %v6897_v1  ;;  %5930 = vmatpush3.bf16.msra.mxu0 %v6896_v0  ;;  %v6901_v5 = vld [vmem:[#allocation7 + $0xd0] sm:$0xff]   ;;  %v6902_v6 = vld [vmem:[#allocation5 + $0x18] sm:$0xff]   ;;  %v6904_v8 = vld [vmem:[#allocation5 + $0x20] sm:$0xff]   ;;  %s7776_s17 = scalar_lea.vmem [#allocation8], %s6739_s19  ;;  %s7202_s20 = smov [#allocation8]  }
  0x73   : > { %6190 = vmatpush3.bf16.msra.mxu1 %v6897_v1  ;;  %5931 = vmatprep.subr.bf16.mxu0 %v6898_v2  ;;  %v6903_v7 = vld [vmem:[#allocation7 + $0xd8] sm:$0xff]   ;;  %v6905_v9 = vld [vmem:[#allocation7 + $0xe0] sm:$0xff]   ;;  %v6906_v10 = vld [vmem:[#allocation5 + $0x28] sm:$0xff]   ;;  %s8629_s7 = scalar_lea.hbm %s9231_s4, %s5453_s18  ;;  %s4992_s26 = sshll.u32 %s7776_s17, 4  ;;  %s8646_s26 = int_to_ptr.vmem [resolvable:$true] %s4992_s26 }
  0x74   : > { %6191 = vmatprep.subr.bf16.mxu1 %v6899_v3  ;;  %v321_v11 = vld [vmem:[%s7420_s14 + $0x13] sm:$0xff]  ;;  %v322_v12 = vld [vmem:[%s7420_s14 + $0x1b] sm:$0xff]  ;;  %v323_v22 = vld [vmem:[%s7420_s14 + $0x23] sm:$0xff]  ;;  %s7062_s11 = scalar_lea.vmem %s8646_s26, 2304  ;;  %s7066_s16 = sshll.u32 %s7202_s20, 4  ;;  %s7067_s16 = int_to_ptr.vmem [resolvable:$false] %s7066_s16 }
  0x75   : > { %v1927_v13 = vld [vmem:[%s7420_s14 + $0x12] sm:$0xff]  ;;  %v7433_v15 = vpack.c.bf16 %v322_v12, %v321_v11  ;;  %v1928_v16 = vld [vmem:[%s7420_s14 + $0x1a] sm:$0xff]  ;;  %v1929_v25 = vld [vmem:[%s7420_s14 + $0x22] sm:$0xff]  ;;  %p7063_p11 = scmp.ne.s32.totalorder %s8646_s26, %s7062_s11  ;;  %p7069_p7 = scmp.lt.s32.totalorder %s8646_s26, %s7067_s16 }
  0x76   : > { %5932 = vmatpush3.bf16.msra.mxu0 %v6898_v2  ;;  %v6907_v14 = vld [vmem:[#allocation7 + $0xe8] sm:$0xff]   ;;  %v1963_v17 = vpack.c.bf16 %v1928_v16, %v1927_v13  ;;  %v6908_v18 = vld [vmem:[#allocation5 + $0x30] sm:$0xff]   ;;  %v6910_v20 = vld [vmem:[#allocation5 + $0x38] sm:$0xff]  }
  0x77   : > { %6192 = vmatpush3.bf16.msra.mxu1 %v6899_v3  ;;  %5933 = vmatprep.subr.bf16.mxu0 %v6900_v4  ;;  %v6909_v19 = vld [vmem:[#allocation7 + $0xf0] sm:$0xff]   ;;  %v6911_v21 = vld [vmem:[#allocation7 + $0xf8] sm:$0xff]   ;;  %v6912_v24 = vld [vmem:[#allocation7] sm:$0xff]   ;;  %p7064_p1 = pnand %p7063_p11, %p9322_p0 }
  0x78   : > { %6193 = vmatprep.subr.bf16.mxu1 %v6901_v5  ;;  %5945 = vmatprep.mubr.bf16.mxu0 %v7433_v15  ;;  %v324_v23 = vld [vmem:[%s7420_s14 + $0x2b] sm:$0xff]  ;;  %v325_v28 = vld [vmem:[%s7420_s14 + $0x33] sm:$0xff]  ;;  %v326_v29 = vld [vmem:[%s7420_s14 + $0x3b] sm:$0xff] }
  0x79   : > { %6205 = vmatprep.mubr.bf16.mxu1 %v1963_v17  ;;  %v1930_v26 = vld [vmem:[%s7420_s14 + $0x2a] sm:$0xff]  ;;  %v7443_v30 = vpack.c.bf16 %v324_v23, %v323_v22  ;;  %v1931_v31 = vld [vmem:[%s7420_s14 + $0x32] sm:$0xff]  ;;  %v1932_v32 = vld [vmem:[%s7420_s14 + $0x3a] sm:$0xff]  ;;  %v7447_v34 = vpack.c.bf16 %v326_v29, %v325_v28  ;;  %p7065_p3 = pneg %p7064_p1 }
  0x7a   : > { %5934 = vmatpush3.bf16.msra.mxu0 %v6900_v4  ;;  %v6913_v27 = vld [vmem:[#allocation7 + $0x140] sm:$0xff]   ;;  %v1964_v33 = vpack.c.bf16 %v1930_v26, %v1929_v25  ;;  %v1965_v35 = vpack.c.bf16 %v1932_v32, %v1931_v31  ;;  %v6914_v38 = vld [vmem:[#allocation7 + $0x8] sm:$0xff]   ;;  %v6916_v46 = vld [vmem:[#allocation7 + $0x10] sm:$0xff]  }
  0x7b   : > { %6194 = vmatpush3.bf16.msra.mxu1 %v6901_v5  ;;  %5935 = vmatprep.subr.bf16.mxu0 %v6902_v6  ;;  %v327_v36 = vld [vmem:[%s7420_s14 + $0x43] sm:$0xff]  ;;  %v328_v37 = vld [vmem:[%s7420_s14 + $0x4b] sm:$0xff]  ;;  %v329_v42 = vld [vmem:[%s7420_s14 + $0x53] sm:$0xff] }
  0x7c   : > { %6195 = vmatprep.subr.bf16.mxu1 %v6903_v7  ;;  %v1933_v39 = vld [vmem:[%s7420_s14 + $0x42] sm:$0xff]  ;;  %v6915_v40 = vld [vmem:[#allocation7 + $0x148] sm:$0xff]   ;;  %v7459_v48 = vpack.c.bf16 %v328_v37, %v327_v36 }
  0x7d   : > { %v1934_v41 = vld [vmem:[%s7420_s14 + $0x4a] sm:$0xff]  ;;  %v330_v43 = vld [vmem:[%s7420_s14 + $0x5b] sm:$0xff]  ;;  %v1935_v44 = vld [vmem:[%s7420_s14 + $0x52] sm:$0xff] }
  0x7e   : > { %5936 = vmatpush3.bf16.msra.mxu0 %v6902_v6  ;;  %v1936_v45 = vld [vmem:[%s7420_s14 + $0x5a] sm:$0xff]  ;;  %v1966_v49 = vpack.c.bf16 %v1934_v41, %v1933_v39  ;;  %v7461_v50 = vpack.c.bf16 %v330_v43, %v329_v42  ;;  %v331_v52 = vld [vmem:[%s7420_s14 + $0x63] sm:$0xff]  ;;  %v332_v53 = vld [vmem:[%s7420_s14 + $0x6b] sm:$0xff] }
  0x7f   : > { %6196 = vmatpush3.bf16.msra.mxu1 %v6903_v7  ;;  %5937 = vmatprep.subr.bf16.mxu0 %v6904_v8  ;;  %v6917_v47 = vld [vmem:[#allocation7 + $0x150] sm:$0xff]   ;;  %v1967_v51 = vpack.c.bf16 %v1936_v45, %v1935_v44  ;;  %v6918_v54 = vld [vmem:[#allocation7 + $0x18] sm:$0xff]   ;;  %v6920_v62 = vld [vmem:[#allocation7 + $0x20] sm:$0xff]   ;;  %v7473_v63 = vpack.c.bf16 %v332_v53, %v331_v52 }
  0x80   : > { %6197 = vmatprep.subr.bf16.mxu1 %v6905_v9  ;;  %v6919_v55 = vld [vmem:[#allocation7 + $0x158] sm:$0xff]   ;;  %v333_v58 = vld [vmem:[%s7420_s14 + $0x73] sm:$0xff] }
  0x81   : > { %v1937_v56 = vld [vmem:[%s7420_s14 + $0x62] sm:$0xff]  ;;  %v1938_v57 = vld [vmem:[%s7420_s14 + $0x6a] sm:$0xff]  ;;  %v1939_v60 = vld [vmem:[%s7420_s14 + $0x72] sm:$0xff] }
  0x82   : > { %5938 = vmatpush3.bf16.msra.mxu0 %v6904_v8  ;;  %v334_v59 = vld [vmem:[%s7420_s14 + $0x7b] sm:$0xff]  ;;  %v6921_v0 = vld [vmem:[#allocation7 + $0x160] sm:$0xff]   ;;  %v1968_v1 = vpack.c.bf16 %v1938_v57, %v1937_v56 }
  0x83   : > { %6198 = vmatpush3.bf16.msra.mxu1 %v6905_v9  ;;  %5939 = vmatprep.subr.bf16.mxu0 %v6906_v10  ;;  %v1940_v61 = vld [vmem:[%s7420_s14 + $0x7a] sm:$0xff]  ;;  %v7475_v2 = vpack.c.bf16 %v334_v59, %v333_v58  ;;  %v335_v4 = vld [vmem:[%s7420_s14 + $0x83] sm:$0xff]  ;;  %v336_v6 = vld [vmem:[%s7420_s14 + $0x8b] sm:$0xff] }
  0x84   : > { %6199 = vmatprep.subr.bf16.mxu1 %v6907_v14  ;;  %v1969_v3 = vpack.c.bf16 %v1940_v61, %v1939_v60  ;;  %v6922_v5 = vld [vmem:[#allocation7 + $0x28] sm:$0xff]   ;;  %v1941_v7 = vld [vmem:[%s7420_s14 + $0x82] sm:$0xff]  ;;  %v7487_v16 = vpack.c.bf16 %v336_v6, %v335_v4 }
  0x85   : > { %v6923_v8 = vld [vmem:[#allocation7 + $0x168] sm:$0xff]   ;;  %v6925_v17 = vld [vmem:[#allocation7 + $0x170] sm:$0xff]   ;;  %v6926_v23 = vld [vmem:[#allocation7 + $0x38] sm:$0xff]  }
  0x86   : > { %5940 = vmatpush3.bf16.msra.mxu0 %v6906_v10  ;;  %v1942_v9 = vld [vmem:[%s7420_s14 + $0x8a] sm:$0xff]  ;;  %v337_v10 = vld [vmem:[%s7420_s14 + $0x93] sm:$0xff]  ;;  %v338_v11 = vld [vmem:[%s7420_s14 + $0x9b] sm:$0xff] }
  0x87   : > { %6200 = vmatpush3.bf16.msra.mxu1 %v6907_v14  ;;  %5941 = vmatprep.subr.bf16.mxu0 %v6908_v18  ;;  %v1943_v12 = vld [vmem:[%s7420_s14 + $0x92] sm:$0xff]  ;;  %v1944_v13 = vld [vmem:[%s7420_s14 + $0x9a] sm:$0xff]  ;;  %v1945_v25 = vld [vmem:[%s7420_s14 + $0xa2] sm:$0xff] }
  0x88   : > { %6201 = vmatprep.subr.bf16.mxu1 %v6909_v19  ;;  %v6924_v14 = vld [vmem:[#allocation7 + $0x30] sm:$0xff]   ;;  %v340_v22 = vld [vmem:[%s7420_s14 + $0xab] sm:$0xff] }
  0x89   : > { %v1946_v26 = vld [vmem:[%s7420_s14 + $0xaa] sm:$0xff]  ;;  %v342_v28 = vld [vmem:[%s7420_s14 + $0xbb] sm:$0xff]  ;;  %v1947_v29 = vld [vmem:[%s7420_s14 + $0xb2] sm:$0xff] }
  0x8a   : > { %5942 = vmatpush3.bf16.msra.mxu0 %v6908_v18  ;;  %v1970_v18 = vpack.c.bf16 %v1942_v9, %v1941_v7  ;;  %v1948_v31 = vld [vmem:[%s7420_s14 + $0xba] sm:$0xff]  ;;  %v7501_v32 = vld [vmem:[#allocation7 + $0x100] sm:$0xff]   ;;  %v1972_v36 = vpack.c.bf16 %v1946_v26, %v1945_v25 }
  0x8b   : > { %6202 = vmatpush3.bf16.msra.mxu1 %v6909_v19  ;;  %5943 = vmatprep.subr.bf16.mxu0 %v6910_v20  ;;  %v7489_v19 = vpack.c.bf16 %v338_v11, %v337_v10  ;;  %v343_v39 = vld [vmem:[%s7420_s14 + $0xc3] sm:$0xff]  ;;  %v345_v43 = vld [vmem:[%s7420_s14 + $0xd3] sm:$0xff]  ;;  %v346_v44 = vld [vmem:[%s7420_s14 + $0xdb] sm:$0xff] }
  0x8c   : > { %6203 = vmatprep.subr.bf16.mxu1 %v6911_v21  ;;  %v1949_v41 = vld [vmem:[%s7420_s14 + $0xc2] sm:$0xff]  ;;  %v1950_v42 = vld [vmem:[%s7420_s14 + $0xca] sm:$0xff]  ;;  %v1951_v45 = vld [vmem:[%s7420_s14 + $0xd2] sm:$0xff] }
  0x8d   : > { %v347_v53 = vld [vmem:[%s7420_s14 + $0xe3] sm:$0xff]  ;;  %v349_v57 = vld [vmem:[%s7420_s14 + $0xf3] sm:$0xff]  ;;  %v350_v58 = vld [vmem:[%s7420_s14 + $0xfb] sm:$0xff] }
  0x8e   : > { %5944 = vmatpush3.bf16.msra.mxu0 %v6910_v20  ;;  %v1971_v20 = vpack.c.bf16 %v1944_v13, %v1943_v12  ;;  %v1954_v56 = vld [vmem:[%s7420_s14 + $0xea] sm:$0xff]  ;;  %v1955_v59 = vld [vmem:[%s7420_s14 + $0xf2] sm:$0xff]  ;;  %v1956_v60 = vld [vmem:[%s7420_s14 + $0xfa] sm:$0xff] }
  0x8f   : > { %6204 = vmatpush3.bf16.msra.mxu1 %v6911_v21  ;;  %5981 = vmatprep.subr.bf16.mxu0 %v6912_v24  ;;  %v339_v21 = vld [vmem:[%s7420_s14 + $0xa3] sm:$0xff]  ;;  %v352_v4 = vld [vmem:[%s7420_s14 + $0x10b] sm:$0xff]  ;;  %v353_v7 = vld [vmem:[%s7420_s14 + $0x113] sm:$0xff] }
  0x90   : > { %6241 = vmatprep.subr.bf16.mxu1 %v6913_v27  ;;  %v1958_v6 = vld [vmem:[%s7420_s14 + $0x10a] sm:$0xff]  ;;  %v1959_v9 = vld [vmem:[%s7420_s14 + $0x112] sm:$0xff]  ;;  %v1960_v10 = vld [vmem:[%s7420_s14 + $0x11a] sm:$0xff] }
  0x91   : > { %5946 = vmatmul.mubr.bf16.vlgmr.msra.gmra.mrb[0].mxu0 %v7443_v30  ;;  %v2259_v25 = vld [vmem:[%s7420_s14 + $0x1c] sm:$0xff] }
  0x92   : > { %6206 = vmatmul.mubr.bf16.vlgmr.msra.gmra.mrb[0].mxu1 %v1964_v33  ;;  %5982 = vmatpush3.bf16.msra.mxu0 %v6912_v24  ;;  %v6927_v24 = vld [vmem:[#allocation7 + $0x178] sm:$0xff]   ;;  %v7503_v33 = vpack.c.bf16 %v340_v22, %v339_v21 }
  0x93   : > { %6242 = vmatpush3.bf16.msra.mxu1 %v6913_v27  ;;  %5949 = vmatprep.mubr.bf16.mxu0 %v7447_v34  ;;  %v341_v27 = vld [vmem:[%s7420_s14 + $0xb3] sm:$0xff]  ;;  %v1962_v21 = vld [vmem:[%s7420_s14 + $0x12a] sm:$0xff]  ;;  %v745_v22 = vld [vmem:[%s7420_s14] sm:$0xff] }
  0x94   : > { %6209 = vmatprep.mubr.bf16.mxu1 %v1965_v35  ;;  %5983 = vmatprep.subr.bf16.mxu0 %v6914_v38  ;;  %v7505_v35 = vld [vmem:[#allocation7 + $0x180] sm:$0xff]   ;;  %v7507_v37 = vpack.c.bf16 %v342_v28, %v341_v27 }
  0x95   : > { %6243 = vmatprep.subr.bf16.mxu1 %v6915_v40 }
  0x96   : > { %5984 = vmatpush3.bf16.msra.mxu0 %v6914_v38  ;;  %v1973_v38 = vpack.c.bf16 %v1948_v31, %v1947_v29  ;;  %v747_v31 = vld [vmem:[%s7420_s14 + $0x10] sm:$0xff] }
  0x97   : > { %6244 = vmatpush3.bf16.msra.mxu1 %v6915_v40  ;;  %5985 = vmatprep.subr.bf16.mxu0 %v6916_v46  ;;  %v344_v40 = vld [vmem:[%s7420_s14 + $0xcb] sm:$0xff] }
  0x98   : > { %6245 = vmatprep.subr.bf16.mxu1 %v6917_v47 }
  0x99   : > { %5950 = vmatmul.mubr.bf16.gmra.mrb[4].mxu0 %v7459_v48 }
  0x9a   : > { %6210 = vmatmul.mubr.bf16.gmra.mrb[4].mxu1 %v1966_v49  ;;  %5953 = vmatprep.mubr.bf16.mxu0 %v7461_v50  ;;  %v1974_v49 = vpack.c.bf16 %v1950_v42, %v1949_v41  ;;  %v750_v41 = vld [vmem:[%s7420_s14 + $0x28] sm:$0xff]  ;;  %v2262_v42 = vld [vmem:[%s7420_s14 + $0x34] sm:$0xff] }
  0x9b   : > { %6213 = vmatprep.mubr.bf16.mxu1 %v1967_v51  ;;  %5986 = vmatpush3.bf16.msra.mxu0 %v6916_v46  ;;  %v1952_v46 = vld [vmem:[%s7420_s14 + $0xda] sm:$0xff]  ;;  %v7523_v51 = vpack.c.bf16 %v346_v44, %v345_v43 }
  0x9c   : > { %6246 = vmatpush3.bf16.msra.mxu1 %v6917_v47  ;;  %5987 = vmatprep.subr.bf16.mxu0 %v6918_v54  ;;  %v7521_v47 = vpack.c.bf16 %v344_v40, %v343_v39  ;;  %v1975_v52 = vpack.c.bf16 %v1952_v46, %v1951_v45  ;;  %v2261_v39 = vld [vmem:[%s7420_s14 + $0x2c] sm:$0xff]  ;;  %v749_v40 = vld [vmem:[%s7420_s14 + $0x20] sm:$0xff] }
  0x9d   : > { %6247 = vmatprep.subr.bf16.mxu1 %v6919_v55  ;;  %v2263_v44 = vld [vmem:[%s7420_s14 + $0x3c] sm:$0xff]  ;;  %v783_v46 = vpack.c.bf16 %v750_v41, %v749_v40  ;;  %v762_v41 = vld [vmem:[%s7420_s14 + $0x88] sm:$0xff] }
  0x9e   : > { %v761_v40 = vld [vmem:[%s7420_s14 + $0x80] sm:$0xff] }
  0x9f   : > { %5988 = vmatpush3.bf16.msra.mxu0 %v6918_v54  ;;  %v348_v54 = vld [vmem:[%s7420_s14 + $0xeb] sm:$0xff] }
  0xa0   : > { %6248 = vmatpush3.bf16.msra.mxu1 %v6919_v55  ;;  %5989 = vmatprep.subr.bf16.mxu0 %v6920_v62  ;;  %v1953_v55 = vld [vmem:[%s7420_s14 + $0xe2] sm:$0xff]  ;;  %v7535_v61 = vpack.c.bf16 %v348_v54, %v347_v53  ;;  %v751_v53 = vld [vmem:[%s7420_s14 + $0x30] sm:$0xff]  ;;  %v752_v54 = vld [vmem:[%s7420_s14 + $0x38] sm:$0xff] }
  0xa1   : > { %5954 = vmatmul.mubr.bf16.gmra.mrb[8].mxu0 %v7473_v63  ;;  %6249 = vmatprep.subr.bf16.mxu1 %v6921_v0 }
  0xa2   : > { %6214 = vmatmul.mubr.bf16.gmra.mrb[8].mxu1 %v1968_v1  ;;  %5957 = vmatprep.mubr.bf16.mxu0 %v7475_v2  ;;  %v1977_v1 = vpack.c.bf16 %v1956_v60, %v1955_v59  ;;  %v754_v59 = vld [vmem:[%s7420_s14 + $0x48] sm:$0xff]  ;;  %v2266_v60 = vld [vmem:[%s7420_s14 + $0x54] sm:$0xff] }
  0xa3   : > { %6217 = vmatprep.mubr.bf16.mxu1 %v1969_v3  ;;  %5990 = vmatpush3.bf16.msra.mxu0 %v6920_v62  ;;  %v1976_v62 = vpack.c.bf16 %v1954_v56, %v1953_v55  ;;  %v351_v3 = vld [vmem:[%s7420_s14 + $0x103] sm:$0xff]  ;;  %v6931_v55 = vld [vmem:[#allocation7 + $0x188] sm:$0xff]  }
  0xa4   : > { %6250 = vmatpush3.bf16.msra.mxu1 %v6921_v0  ;;  %5991 = vmatprep.subr.bf16.mxu0 %v6922_v5  ;;  %v7537_v0 = vpack.c.bf16 %v350_v58, %v349_v57  ;;  %v7549_v11 = vpack.c.bf16 %v352_v4, %v351_v3  ;;  %v2264_v56 = vld [vmem:[%s7420_s14 + $0x44] sm:$0xff]  ;;  %v2265_v57 = vld [vmem:[%s7420_s14 + $0x4c] sm:$0xff]  ;;  %v784_v4 = vpack.c.bf16 %v752_v54, %v751_v53 }
  0xa5   : > { %6251 = vmatprep.subr.bf16.mxu1 %v6923_v8  ;;  %v753_v58 = vld [vmem:[%s7420_s14 + $0x40] sm:$0xff]  ;;  %v789_v54 = vpack.c.bf16 %v762_v41, %v761_v40  ;;  %v2285_v41 = vld [vmem:[%s7420_s14 + $0xec] sm:$0xff] }
  0xa6   : > { %v6933_v3 = vld [vmem:[#allocation7 + $0x190] sm:$0xff]  }
  0xa7   : > { %5992 = vmatpush3.bf16.msra.mxu0 %v6922_v5  ;;  %v1957_v5 = vld [vmem:[%s7420_s14 + $0x102] sm:$0xff] }
  0xa8   : > { %6252 = vmatpush3.bf16.msra.mxu1 %v6923_v8  ;;  %5993 = vmatprep.subr.bf16.mxu0 %v6924_v14  ;;  %v354_v8 = vld [vmem:[%s7420_s14 + $0x11b] sm:$0xff]  ;;  %v1978_v12 = vpack.c.bf16 %v1958_v6, %v1957_v5  ;;  %v7590_v5 = vpack.c.bf16 %v2265_v57, %v2264_v56  ;;  %v2284_v40 = vld [vmem:[%s7420_s14 + $0xe4] sm:$0xff] }
  0xa9   : > { %5958 = vmatmul.mubr.bf16.gmra.mrb[12].mxu0 %v7487_v16  ;;  %6253 = vmatprep.subr.bf16.mxu1 %v6925_v17  ;;  %v7551_v13 = vpack.c.bf16 %v354_v8, %v353_v7  ;;  %v6934_v6 = vld [vmem:[#allocation7 + $0x118] sm:$0xff]   ;;  %v755_v8 = vld [vmem:[%s7420_s14 + $0x50] sm:$0xff] }
  0xaa   : > { %6218 = vmatmul.mubr.bf16.gmra.mrb[12].mxu1 %v1970_v18  ;;  %5961 = vmatprep.mubr.bf16.mxu0 %v7489_v19  ;;  %v356_v18 = vld [vmem:[%s7420_s14 + $0x12b] sm:$0xff] }
  0xab   : > { %6221 = vmatprep.mubr.bf16.mxu1 %v1971_v20  ;;  %5994 = vmatpush3.bf16.msra.mxu0 %v6924_v14  ;;  %v1979_v14 = vpack.c.bf16 %v1960_v10, %v1959_v9  ;;  %v1961_v20 = vld [vmem:[%s7420_s14 + $0x122] sm:$0xff]  ;;  %v756_v9 = vld [vmem:[%s7420_s14 + $0x58] sm:$0xff] }
  0xac   : > { %6254 = vmatpush3.bf16.msra.mxu1 %v6925_v17  ;;  %5995 = vmatprep.subr.bf16.mxu0 %v6926_v23  ;;  %v355_v17 = vld [vmem:[%s7420_s14 + $0x123] sm:$0xff]  ;;  %v1980_v27 = vpack.c.bf16 %v1962_v21, %v1961_v20 }
  0xad   : > { %6255 = vmatprep.subr.bf16.mxu1 %v6927_v24  ;;  %v7563_v26 = vpack.c.bf16 %v356_v18, %v355_v17  ;;  %v6935_v7 = vld [vmem:[#allocation7 + $0x198] sm:$0xff]   ;;  %v2270_v18 = vld [vmem:[%s7420_s14 + $0x74] sm:$0xff] }
  0xae   : > { %v2268_v10 = vld [vmem:[%s7420_s14 + $0x64] sm:$0xff]  ;;  %v2271_v20 = vld [vmem:[%s7420_s14 + $0x7c] sm:$0xff] }
  0xaf   : > { %5996 = vmatpush3.bf16.msra.mxu0 %v6926_v23  ;;  %v746_v23 = vld [vmem:[%s7420_s14 + $0x8] sm:$0xff] }
  0xb0   : > { %6256 = vmatpush3.bf16.msra.mxu1 %v6927_v24  ;;  %6033 = vmatprep.subr.bf16.mxu0 %v7501_v32  ;;  %v2258_v24 = vld [vmem:[%s7420_s14 + $0x14] sm:$0xff]  ;;  %v781_v28 = vpack.c.bf16 %v746_v23, %v745_v22  ;;  %v758_v17 = vld [vmem:[%s7420_s14 + $0x68] sm:$0xff]  ;;  %v786_v23 = vpack.c.bf16 %v756_v9, %v755_v8 }
  0xb1   : > { %5962 = vmatmul.mubr.bf16.gmra.mrb[16].mxu0 %v7503_v33  ;;  %6293 = vmatprep.subr.bf16.mxu1 %v7505_v35  ;;  %v2294_v29 = vpack.c.bf16 %v2259_v25, %v2258_v24  ;;  %v6936_v21 = vld [vmem:[#allocation7 + $0x120] sm:$0xff]   ;;  %v6942_v56 = vld [vmem:[#allocation7 + $0x138] sm:$0xff]  }
  0xb2   : > { %6222 = vmatmul.mubr.bf16.gmra.mrb[16].mxu1 %v1972_v36  ;;  %5965 = vmatprep.mubr.bf16.mxu0 %v7507_v37  ;;  %v748_v36 = vld [vmem:[%s7420_s14 + $0x18] sm:$0xff]  ;;  %v6937_v22 = vld [vmem:[#allocation7 + $0x1a0] sm:$0xff]   ;;  %v6943_v57 = vld [vmem:[#allocation7 + $0x1b8] sm:$0xff]  }
  0xb3   : > { %6225 = vmatprep.mubr.bf16.mxu1 %v1973_v38  ;;  %v2260_v38 = vld [vmem:[%s7420_s14 + $0x24] sm:$0xff]  ;;  %v782_v43 = vpack.c.bf16 %v748_v36, %v747_v31  ;;  %v6938_v31 = vld [vmem:[#allocation7 + $0x128] sm:$0xff]  }
  0xb4   : > { %v7574_v45 = vpack.c.bf16 %v2261_v39, %v2260_v38  ;;  %v6939_v36 = vld [vmem:[#allocation7 + $0x1a8] sm:$0xff]   ;;  %v2272_v38 = vld [vmem:[%s7420_s14 + $0x84] sm:$0xff] }
  0xb5   : > { %v2273_v39 = vld [vmem:[%s7420_s14 + $0x8c] sm:$0xff] }
  0xb6   : > { %v7618_v53 = vpack.c.bf16 %v2273_v39, %v2272_v38  ;;  %v7634_v8 = vld [vmem:[#allocation7 + $0x1c0] sm:$0xff]   ;;  %v772_v39 = vld [vmem:[%s7420_s14 + $0xd8] sm:$0xff] }
  0xb7   : > { %v771_v38 = vld [vmem:[%s7420_s14 + $0xd0] sm:$0xff] }
  0xb9   : > { %5966 = vmatmul.mubr.bf16.gmra.mrb[20].mxu0 %v7521_v47 }
  0xba   : > { %6226 = vmatmul.mubr.bf16.gmra.mrb[20].mxu1 %v1974_v49  ;;  %5969 = vmatprep.mubr.bf16.mxu0 %v7523_v51  ;;  %v6930_v49 = vld [vmem:[#allocation7 + $0x108] sm:$0xff]  }
  0xbb   : > { %6229 = vmatprep.mubr.bf16.mxu1 %v1975_v52  ;;  %v7576_v52 = vpack.c.bf16 %v2263_v44, %v2262_v42  ;;  %v2274_v42 = vld [vmem:[%s7420_s14 + $0x94] sm:$0xff] }
  0xbc   : > { %v6940_v44 = vld [vmem:[#allocation7 + $0x130] sm:$0xff]  }
  0xc1   : > { %5970 = vmatmul.mubr.bf16.gmra.mrb[24].mxu0 %v7535_v61 }
  0xc2   : > { %6230 = vmatmul.mubr.bf16.gmra.mrb[24].mxu1 %v1976_v62  ;;  %5973 = vmatprep.mubr.bf16.mxu0 %v7537_v0  ;;  %v2267_v62 = vld [vmem:[%s7420_s14 + $0x5c] sm:$0xff] }
  0xc3   : > { %6233 = vmatprep.mubr.bf16.mxu1 %v1977_v1  ;;  %v6932_v1 = vld [vmem:[#allocation7 + $0x110] sm:$0xff]  }
  0xc9   : > { %5974 = vmatmul.mubr.bf16.gmra.mrb[28].mxu0 %v7549_v11 }
  0xca   : > { %6234 = vmatmul.mubr.bf16.gmra.mrb[28].mxu1 %v1978_v12  ;;  %5977 = vmatprep.mubr.bf16.mxu0 %v7551_v13  ;;  %v2269_v12 = vld [vmem:[%s7420_s14 + $0x6c] sm:$0xff] }
  0xcb   : > { %6237 = vmatprep.mubr.bf16.mxu1 %v1979_v14  ;;  %v757_v14 = vld [vmem:[%s7420_s14 + $0x60] sm:$0xff]  ;;  %v7604_v24 = vpack.c.bf16 %v2269_v12, %v2268_v10 }
  0xcc   : > { %v787_v25 = vpack.c.bf16 %v758_v17, %v757_v14  ;;  %v767_v14 = vld [vmem:[%s7420_s14 + $0xb0] sm:$0xff]  ;;  %v768_v17 = vld [vmem:[%s7420_s14 + $0xb8] sm:$0xff] }
  0xd1   : > { %5978 = vmatmul.mubr.bf16.gmra.mrb[32].mxu0 %v7563_v26 }
  0xd2   : > { %6238 = vmatmul.mubr.bf16.gmra.mrb[32].mxu1 %v1980_v27  ;;  %5997 = vmatprep.mubr.bf16.mxu0 %v781_v28  ;;  %v7606_v27 = vpack.c.bf16 %v2271_v20, %v2270_v18  ;;  %v759_v28 = vld [vmem:[%s7420_s14 + $0x70] sm:$0xff]  ;;  %v2280_v18 = vld [vmem:[%s7420_s14 + $0xc4] sm:$0xff] }
  0xd3   : > { %6257 = vmatprep.mubr.bf16.mxu1 %v2294_v29  ;;  %v760_v29 = vld [vmem:[%s7420_s14 + $0x78] sm:$0xff]  ;;  %v2281_v20 = vld [vmem:[%s7420_s14 + $0xcc] sm:$0xff] }
  0xd9   : > { %5998 = vmatmul.mubr.bf16.vlgmr.msra.gmra.mrb[36].mxu0 %v782_v43  ;;  %v2275_v43 = vld [vmem:[%s7420_s14 + $0x9c] sm:$0xff] }
  0xda   : > { %6258 = vmatmul.mubr.bf16.vlgmr.msra.gmra.mrb[0].mxu1 %v7574_v45  ;;  %6034 = vmatpush3.bf16.msra.mxu0 %v7501_v32  ;;  %v785_v32 = vpack.c.bf16 %v754_v59, %v753_v58  ;;  %v763_v58 = vld [vmem:[%s7420_s14 + $0x90] sm:$0xff]  ;;  %v764_v59 = vld [vmem:[%s7420_s14 + $0x98] sm:$0xff] }
  0xdb   : > { %6294 = vmatpush3.bf16.msra.mxu1 %v7505_v35  ;;  %6001 = vmatprep.mubr.bf16.mxu0 %v783_v46  ;;  %v7592_v35 = vpack.c.bf16 %v2267_v62, %v2266_v60  ;;  %v6941_v46 = vld [vmem:[#allocation7 + $0x1b0] sm:$0xff]   ;;  %v2277_v62 = vld [vmem:[%s7420_s14 + $0xac] sm:$0xff] }
  0xdc   : > { %6261 = vmatprep.mubr.bf16.mxu1 %v7576_v52  ;;  %6035 = vmatprep.subr.bf16.mxu0 %v6930_v49  ;;  %v2276_v60 = vld [vmem:[%s7420_s14 + $0xa4] sm:$0xff] }
  0xdd   : > { %6295 = vmatprep.subr.bf16.mxu1 %v6931_v55  ;;  %v7636_v9 = vpack.c.bf16 %v2277_v62, %v2276_v60  ;;  %v2288_v60 = vld [vmem:[%s7420_s14 + $0x104] sm:$0xff]  ;;  %v2289_v62 = vld [vmem:[%s7420_s14 + $0x10c] sm:$0xff] }
  0xde   : > { %6036 = vmatpush3.bf16.msra.mxu0 %v6930_v49  ;;  %v788_v49 = vpack.c.bf16 %v760_v29, %v759_v28  ;;  %v792_v28 = vpack.c.bf16 %v768_v17, %v767_v14  ;;  %v7652_v29 = vpack.c.bf16 %v2281_v20, %v2280_v18  ;;  %v779_v18 = vld [vmem:[%s7420_s14 + $0x110] sm:$0xff]  ;;  %v780_v20 = vld [vmem:[%s7420_s14 + $0x118] sm:$0xff] }
  0xdf   : > { %6296 = vmatpush3.bf16.msra.mxu1 %v6931_v55  ;;  %6037 = vmatprep.subr.bf16.mxu0 %v6932_v1  ;;  %v7620_v55 = vpack.c.bf16 %v2275_v43, %v2274_v42  ;;  %v773_v42 = vld [vmem:[%s7420_s14 + $0xe0] sm:$0xff]  ;;  %v774_v43 = vld [vmem:[%s7420_s14 + $0xe8] sm:$0xff] }
  0xe0   : > { %6297 = vmatprep.subr.bf16.mxu1 %v6933_v3 }
  0xe1   : > { %6002 = vmatmul.mubr.bf16.gmra.mrb[40].mxu0 %v784_v4  ;;  %v2278_v4 = vld [vmem:[%s7420_s14 + $0xb4] sm:$0xff] }
  0xe2   : > { %6262 = vmatmul.mubr.bf16.gmra.mrb[4].mxu1 %v7590_v5  ;;  %6005 = vmatprep.mubr.bf16.mxu0 %v785_v32  ;;  %v2279_v32 = vld [vmem:[%s7420_s14 + $0xbc] sm:$0xff] }
  0xe3   : > { %6265 = vmatprep.mubr.bf16.mxu1 %v7592_v35  ;;  %6038 = vmatpush3.bf16.msra.mxu0 %v6932_v1  ;;  %v765_v1 = vld [vmem:[%s7420_s14 + $0xa0] sm:$0xff]  ;;  %v7638_v12 = vpack.c.bf16 %v2279_v32, %v2278_v4  ;;  %v2290_v4 = vld [vmem:[%s7420_s14 + $0x114] sm:$0xff] }
  0xe4   : > { %6298 = vmatpush3.bf16.msra.mxu1 %v6933_v3  ;;  %6039 = vmatprep.subr.bf16.mxu0 %v6934_v6  ;;  %v766_v3 = vld [vmem:[%s7420_s14 + $0xa8] sm:$0xff]  ;;  %v2291_v32 = vld [vmem:[%s7420_s14 + $0x11c] sm:$0xff] }
  0xe5   : > { %6299 = vmatprep.subr.bf16.mxu1 %v6935_v7  ;;  %v791_v10 = vpack.c.bf16 %v766_v3, %v765_v1  ;;  %v777_v1 = vld [vmem:[%s7420_s14 + $0x100] sm:$0xff]  ;;  %v778_v3 = vld [vmem:[%s7420_s14 + $0x108] sm:$0xff]  ;;  %v7682_v17 = vpack.c.bf16 %v2291_v32, %v2290_v4 }
  0xe6   : > { %v797_v14 = vpack.c.bf16 %v778_v3, %v777_v1  ;;  %v1271_v1 = vld [vmem:[%s7420_s14 + $0x31] sm:$0xff]  ;;  %v1272_v32 = vld [vmem:[%s7420_s14 + $0x39] sm:$0xff] }
  0xe7   : > { %6040 = vmatpush3.bf16.msra.mxu0 %v6934_v6  ;;  %v7632_v6 = vld [vmem:[#allocation7 + $0x40] sm:$0xff]   ;;  %v6963_v3 = vld [vmem:[#allocation7 + $0x208] sm:$0xff]  }
  0xe8   : > { %6300 = vmatpush3.bf16.msra.mxu1 %v6935_v7  ;;  %6041 = vmatprep.subr.bf16.mxu0 %v6936_v21  ;;  %v790_v7 = vpack.c.bf16 %v764_v59, %v763_v58  ;;  %v775_v58 = vld [vmem:[%s7420_s14 + $0xf0] sm:$0xff]  ;;  %v776_v59 = vld [vmem:[%s7420_s14 + $0xf8] sm:$0xff] }
  0xe9   : > { %6006 = vmatmul.mubr.bf16.gmra.mrb[44].mxu0 %v786_v23  ;;  %6301 = vmatprep.subr.bf16.mxu1 %v6937_v22  ;;  %v2282_v23 = vld [vmem:[%s7420_s14 + $0xd4] sm:$0xff] }
  0xea   : > { %6266 = vmatmul.mubr.bf16.gmra.mrb[8].mxu1 %v7604_v24  ;;  %6009 = vmatprep.mubr.bf16.mxu0 %v787_v25  ;;  %v2283_v25 = vld [vmem:[%s7420_s14 + $0xdc] sm:$0xff] }
  0xeb   : > { %6269 = vmatprep.mubr.bf16.mxu1 %v7606_v27  ;;  %6042 = vmatpush3.bf16.msra.mxu0 %v6936_v21  ;;  %v769_v21 = vld [vmem:[%s7420_s14 + $0xc0] sm:$0xff] }
  0xec   : > { %6302 = vmatpush3.bf16.msra.mxu1 %v6937_v22  ;;  %6043 = vmatprep.subr.bf16.mxu0 %v6938_v31  ;;  %v770_v22 = vld [vmem:[%s7420_s14 + $0xc8] sm:$0xff] }
  0xed   : > { %6303 = vmatprep.subr.bf16.mxu1 %v6939_v36 }
  0xef   : > { %6044 = vmatpush3.bf16.msra.mxu0 %v6938_v31  ;;  %v793_v31 = vpack.c.bf16 %v770_v22, %v769_v21  ;;  %v2292_v21 = vld [vmem:[%s7420_s14 + $0x124] sm:$0xff]  ;;  %v2293_v22 = vld [vmem:[%s7420_s14 + $0x12c] sm:$0xff] }
  0xf0   : > { %6304 = vmatpush3.bf16.msra.mxu1 %v6939_v36  ;;  %6045 = vmatprep.subr.bf16.mxu0 %v6940_v44  ;;  %v7654_v36 = vpack.c.bf16 %v2283_v25, %v2282_v23  ;;  %v798_v23 = vpack.c.bf16 %v780_v20, %v779_v18  ;;  %v7690_v25 = vpack.c.bf16 %v2293_v22, %v2292_v21  ;;  %v1273_v18 = vld [vmem:[%s7420_s14 + $0x41] sm:$0xff]  ;;  %v1274_v20 = vld [vmem:[%s7420_s14 + $0x49] sm:$0xff] }
  0xf1   : > { %6010 = vmatmul.mubr.bf16.gmra.mrb[48].mxu0 %v788_v49  ;;  %6305 = vmatprep.subr.bf16.mxu1 %v6941_v46  ;;  %v794_v49 = vpack.c.bf16 %v772_v39, %v771_v38  ;;  %v6948_v38 = vld [vmem:[#allocation7 + $0x50] sm:$0xff]  }
  0xf2   : > { %6270 = vmatmul.mubr.bf16.gmra.mrb[12].mxu1 %v7618_v53  ;;  %6013 = vmatprep.mubr.bf16.mxu0 %v789_v54  ;;  %v7666_v54 = vpack.c.bf16 %v2285_v41, %v2284_v40  ;;  %v6949_v39 = vld [vmem:[#allocation7 + $0x1d0] sm:$0xff]   ;;  %v2925_v41 = vld [vmem:[%s7420_s14 + $0x4d] sm:$0xff] }
  0xf3   : > { %6273 = vmatprep.mubr.bf16.mxu1 %v7620_v55  ;;  %6046 = vmatpush3.bf16.msra.mxu0 %v6940_v44  ;;  %v2286_v44 = vld [vmem:[%s7420_s14 + $0xf4] sm:$0xff]  ;;  %v2924_v40 = vld [vmem:[%s7420_s14 + $0x45] sm:$0xff] }
  0xf4   : > { %6306 = vmatpush3.bf16.msra.mxu1 %v6941_v46  ;;  %6047 = vmatprep.subr.bf16.mxu0 %v6942_v56  ;;  %v2287_v46 = vld [vmem:[%s7420_s14 + $0xfc] sm:$0xff] }
  0xf5   : > { %6307 = vmatprep.subr.bf16.mxu1 %v6943_v57  ;;  %v6964_v21 = vld [vmem:[#allocation7 + $0x90] sm:$0xff]  }
  0xf7   : > { %6048 = vmatpush3.bf16.msra.mxu0 %v6942_v56  ;;  %v795_v56 = vpack.c.bf16 %v774_v43, %v773_v42 }
  0xf8   : > { %6308 = vmatpush3.bf16.msra.mxu1 %v6943_v57  ;;  %6085 = vmatprep.subr.bf16.mxu0 %v7632_v6  ;;  %v7668_v57 = vpack.c.bf16 %v2287_v46, %v2286_v44 }
  0xf9   : > { %6014 = vmatmul.mubr.bf16.gmra.mrb[52].mxu0 %v790_v7  ;;  %6345 = vmatprep.subr.bf16.mxu1 %v7634_v8  ;;  %v796_v7 = vpack.c.bf16 %v776_v59, %v775_v58  ;;  %v2958_v59 = vpack.c.bf16 %v2925_v41, %v2924_v40  ;;  %v2933_v40 = vld [vmem:[%s7420_s14 + $0x8d] sm:$0xff] }
  0xfa   : > { %6274 = vmatmul.mubr.bf16.gmra.mrb[16].mxu1 %v7636_v9  ;;  %6017 = vmatprep.mubr.bf16.mxu0 %v791_v10  ;;  %v7680_v10 = vpack.c.bf16 %v2289_v62, %v2288_v60  ;;  %v6962_v60 = vld [vmem:[#allocation7 + $0x88] sm:$0xff]   ;;  %v6968_v41 = vld [vmem:[#allocation7 + $0xa0] sm:$0xff]  }
  0xfb   : > { %6277 = vmatprep.mubr.bf16.mxu1 %v7638_v12 }
 0x101   : > { %6018 = vmatmul.mubr.bf16.gmra.mrb[56].mxu0 %v792_v28  ;;  %v6946_v28 = vld [vmem:[#allocation7 + $0x48] sm:$0xff]  }
 0x102   : > { %6278 = vmatmul.mubr.bf16.gmra.mrb[20].mxu1 %v7652_v29  ;;  %6021 = vmatprep.mubr.bf16.mxu0 %v793_v31  ;;  %v6947_v31 = vld [vmem:[#allocation7 + $0x1c8] sm:$0xff]  }
 0x103   : > { %6281 = vmatprep.mubr.bf16.mxu1 %v7654_v36 }
 0x109   : > { %6022 = vmatmul.mubr.bf16.gmra.mrb[60].mxu0 %v794_v49 }
 0x10a   : > { %6282 = vmatmul.mubr.bf16.gmra.mrb[24].mxu1 %v7666_v54  ;;  %6025 = vmatprep.mubr.bf16.mxu0 %v795_v56 }
 0x10b   : > { %6285 = vmatprep.mubr.bf16.mxu1 %v7668_v57 }
 0x111   : > { %6026 = vmatmul.mubr.bf16.gmra.mrb[64].mxu0 %v796_v7  ;;  %v2926_v7 = vld [vmem:[%s7420_s14 + $0x55] sm:$0xff] }
 0x112   : > { %6286 = vmatmul.mubr.bf16.gmra.mrb[28].mxu1 %v7680_v10  ;;  %6029 = vmatprep.mubr.bf16.mxu0 %v797_v14 }
 0x113   : > { %6289 = vmatprep.mubr.bf16.mxu1 %v7682_v17 }
 0x119   : > { %6030 = vmatmul.mubr.bf16.gmra.mrb[68].mxu0 %v798_v23 }
 0x11a   : > { %6290 = vmatmul.mubr.bf16.gmra.mrb[32].mxu1 %v7690_v25  ;;  %6049 = vmatprep.mubr.bf16.mxu0 %v7433_v15  ;;  %v6950_v15 = vld [vmem:[#allocation7 + $0x58] sm:$0xff]  }
 0x11b   : > { %6309 = vmatprep.mubr.bf16.mxu1 %v7574_v45  ;;  %v6953_v45 = vld [vmem:[#allocation7 + $0x1e0] sm:$0xff]  }
 0x121   : > { %6050 = vmatmul.mubr.bf16.vlgmr.msra.gmra.mrb[36].mxu0 %v7443_v30  ;;  %v6951_v30 = vld [vmem:[#allocation7 + $0x1d8] sm:$0xff]  }
 0x122   : > { %6310 = vmatmul.mubr.bf16.vlgmr.msra.gmra.mrb[0].mxu1 %v7576_v52  ;;  %6086 = vmatpush3.bf16.msra.mxu0 %v7632_v6  ;;  %v6954_v52 = vld [vmem:[#allocation7 + $0x68] sm:$0xff]  }
 0x123   : > { %6346 = vmatpush3.bf16.msra.mxu1 %v7634_v8  ;;  %6053 = vmatprep.mubr.bf16.mxu0 %v7447_v34  ;;  %v6952_v34 = vld [vmem:[#allocation7 + $0x60] sm:$0xff]   ;;  %v2923_v6 = vld [vmem:[%s7420_s14 + $0x3d] sm:$0xff] }
 0x124   : > { %6313 = vmatprep.mubr.bf16.mxu1 %v7590_v5  ;;  %6087 = vmatprep.subr.bf16.mxu0 %v6946_v28  ;;  %v6957_v5 = vld [vmem:[#allocation7 + $0x1f0] sm:$0xff]  }
 0x125   : > { %6347 = vmatprep.subr.bf16.mxu1 %v6947_v31 }
 0x126   : > { %6088 = vmatpush3.bf16.msra.mxu0 %v6946_v28 }
 0x127   : > { %6348 = vmatpush3.bf16.msra.mxu1 %v6947_v31  ;;  %6089 = vmatprep.subr.bf16.mxu0 %v6948_v38  ;;  %v2928_v31 = vld [vmem:[%s7420_s14 + $0x65] sm:$0xff] }
 0x128   : > { %6349 = vmatprep.subr.bf16.mxu1 %v6949_v39 }
 0x129   : > { %6054 = vmatmul.mubr.bf16.gmra.mrb[40].mxu0 %v7459_v48  ;;  %v6955_v48 = vld [vmem:[#allocation7 + $0x1e8] sm:$0xff]  }
 0x12a   : > { %6314 = vmatmul.mubr.bf16.gmra.mrb[4].mxu1 %v7592_v35  ;;  %6057 = vmatprep.mubr.bf16.mxu0 %v7461_v50  ;;  %v6956_v50 = vld [vmem:[#allocation7 + $0x70] sm:$0xff]   ;;  %v6958_v35 = vld [vmem:[#allocation7 + $0x78] sm:$0xff]  }
 0x12b   : > { %6317 = vmatprep.mubr.bf16.mxu1 %v7604_v24  ;;  %6090 = vmatpush3.bf16.msra.mxu0 %v6948_v38  ;;  %v7715_v24 = vld [vmem:[#allocation7 + $0x200] sm:$0xff]  }
 0x12c   : > { %6350 = vmatpush3.bf16.msra.mxu1 %v6949_v39  ;;  %6091 = vmatprep.subr.bf16.mxu0 %v6950_v15  ;;  %v2929_v38 = vld [vmem:[%s7420_s14 + $0x6d] sm:$0xff]  ;;  %v6965_v39 = vld [vmem:[#allocation7 + $0x210] sm:$0xff]  }
 0x12d   : > { %6351 = vmatprep.subr.bf16.mxu1 %v6951_v30 }
 0x12f   : > { %6092 = vmatpush3.bf16.msra.mxu0 %v6950_v15 }
 0x130   : > { %6352 = vmatpush3.bf16.msra.mxu1 %v6951_v30  ;;  %6093 = vmatprep.subr.bf16.mxu0 %v6952_v34 }
 0x131   : > { %6058 = vmatmul.mubr.bf16.gmra.mrb[44].mxu0 %v7473_v63  ;;  %6353 = vmatprep.subr.bf16.mxu1 %v6953_v45  ;;  %v6959_v63 = vld [vmem:[#allocation7 + $0x1f8] sm:$0xff]  }
 0x132   : > { %6318 = vmatmul.mubr.bf16.gmra.mrb[8].mxu1 %v7606_v27  ;;  %6061 = vmatprep.mubr.bf16.mxu0 %v7475_v2  ;;  %v7713_v2 = vld [vmem:[#allocation7 + $0x80] sm:$0xff]  }
 0x133   : > { %6321 = vmatprep.mubr.bf16.mxu1 %v7618_v53  ;;  %6094 = vmatpush3.bf16.msra.mxu0 %v6952_v34  ;;  %v1267_v27 = vld [vmem:[%s7420_s14 + $0x11] sm:$0xff]  ;;  %v1268_v53 = vld [vmem:[%s7420_s14 + $0x19] sm:$0xff] }
 0x134   : > { %6354 = vmatpush3.bf16.msra.mxu1 %v6953_v45  ;;  %6095 = vmatprep.subr.bf16.mxu0 %v6954_v52  ;;  %v1304_v45 = vpack.c.bf16 %v1272_v32, %v1271_v1  ;;  %v6970_v32 = vld [vmem:[#allocation7 + $0xa8] sm:$0xff]  }
 0x135   : > { %6355 = vmatprep.subr.bf16.mxu1 %v6955_v48 }
 0x137   : > { %6096 = vmatpush3.bf16.msra.mxu0 %v6954_v52 }
 0x138   : > { %6356 = vmatpush3.bf16.msra.mxu1 %v6955_v48  ;;  %6097 = vmatprep.subr.bf16.mxu0 %v6956_v50 }
 0x139   : > { %6062 = vmatmul.mubr.bf16.gmra.mrb[48].mxu0 %v7487_v16  ;;  %6357 = vmatprep.subr.bf16.mxu1 %v6957_v5  ;;  %v2623_v16 = vld [vmem:[%s7420_s14 + $0x134] sm:$0xff] }
 0x13a   : > { %6322 = vmatmul.mubr.bf16.gmra.mrb[12].mxu1 %v7620_v55  ;;  %6065 = vmatprep.mubr.bf16.mxu0 %v7489_v19  ;;  %v2624_v19 = vld [vmem:[%s7420_s14 + $0x13c] sm:$0xff] }
 0x13b   : > { %6325 = vmatprep.mubr.bf16.mxu1 %v7636_v9  ;;  %6098 = vmatpush3.bf16.msra.mxu0 %v6956_v50  ;;  %v2922_v55 = vld [vmem:[%s7420_s14 + $0x35] sm:$0xff]  ;;  %v1269_v9 = vld [vmem:[%s7420_s14 + $0x21] sm:$0xff] }
 0x13c   : > { %6358 = vmatpush3.bf16.msra.mxu1 %v6957_v5  ;;  %6099 = vmatprep.subr.bf16.mxu0 %v6958_v35  ;;  %v2957_v44 = vpack.c.bf16 %v2923_v6, %v2922_v55  ;;  %v1305_v5 = vpack.c.bf16 %v1274_v20, %v1273_v18  ;;  %v2931_v55 = vld [vmem:[%s7420_s14 + $0x7d] sm:$0xff]  ;;  %v2934_v20 = vld [vmem:[%s7420_s14 + $0x95] sm:$0xff] }
 0x13d   : > { %6359 = vmatprep.subr.bf16.mxu1 %v6959_v63  ;;  %v1277_v6 = vld [vmem:[%s7420_s14 + $0x61] sm:$0xff]  ;;  %v1280_v18 = vld [vmem:[%s7420_s14 + $0x79] sm:$0xff] }
 0x13f   : > { %6100 = vmatpush3.bf16.msra.mxu0 %v6958_v35 }
 0x140   : > { %6360 = vmatpush3.bf16.msra.mxu1 %v6959_v63  ;;  %6137 = vmatprep.subr.bf16.mxu0 %v7713_v2 }
 0x141   : > { %6066 = vmatmul.mubr.bf16.gmra.mrb[52].mxu0 %v7503_v33  ;;  %6397 = vmatprep.subr.bf16.mxu1 %v7715_v24  ;;  %v1265_v33 = vld [vmem:[%s7420_s14 + $0x1] sm:$0xff] }
 0x142   : > { %6326 = vmatmul.mubr.bf16.gmra.mrb[16].mxu1 %v7638_v12  ;;  %6069 = vmatprep.mubr.bf16.mxu0 %v7507_v37  ;;  %v1266_v37 = vld [vmem:[%s7420_s14 + $0x9] sm:$0xff] }
 0x143   : > { %6329 = vmatprep.mubr.bf16.mxu1 %v7652_v29  ;;  %v1270_v12 = vld [vmem:[%s7420_s14 + $0x29] sm:$0xff] }
 0x144   : > { %v1303_v56 = vpack.c.bf16 %v1270_v12, %v1269_v9 }
 0x149   : > { %6070 = vmatmul.mubr.bf16.gmra.mrb[56].mxu0 %v7521_v47  ;;  %v2920_v47 = vld [vmem:[%s7420_s14 + $0x25] sm:$0xff] }
 0x14a   : > { %6330 = vmatmul.mubr.bf16.gmra.mrb[20].mxu1 %v7654_v36  ;;  %6073 = vmatprep.mubr.bf16.mxu0 %v7523_v51  ;;  %v2921_v51 = vld [vmem:[%s7420_s14 + $0x2d] sm:$0xff]  ;;  %v1302_v36 = vpack.c.bf16 %v1268_v53, %v1267_v27 }
 0x14b   : > { %6333 = vmatprep.mubr.bf16.mxu1 %v7666_v54 }
 0x151   : > { %6074 = vmatmul.mubr.bf16.gmra.mrb[60].mxu0 %v7535_v61  ;;  %v2642_v61 = vpack.c.bf16 %v2624_v19, %v2623_v16 }
 0x152   : > { %6334 = vmatmul.mubr.bf16.gmra.mrb[24].mxu1 %v7668_v57  ;;  %6077 = vmatprep.mubr.bf16.mxu0 %v7537_v0  ;;  %v1301_v0 = vpack.c.bf16 %v1266_v37, %v1265_v33  ;;  %v6966_v33 = vld [vmem:[#allocation7 + $0x98] sm:$0xff]  }
 0x153   : > { %6337 = vmatprep.mubr.bf16.mxu1 %v7680_v10  ;;  %v2927_v10 = vld [vmem:[%s7420_s14 + $0x5d] sm:$0xff] }
 0x154   : > { %v2959_v50 = vpack.c.bf16 %v2927_v10, %v2926_v7  ;;  %v6971_v10 = vld [vmem:[#allocation7 + $0x228] sm:$0xff]  }
 0x159   : > { %6078 = vmatmul.mubr.bf16.gmra.mrb[64].mxu0 %v7549_v11  ;;  %v2956_v11 = vpack.c.bf16 %v2921_v51, %v2920_v47  ;;  %v6967_v47 = vld [vmem:[#allocation7 + $0x218] sm:$0xff]  }
 0x15a   : > { %6338 = vmatmul.mubr.bf16.gmra.mrb[28].mxu1 %v7682_v17  ;;  %6081 = vmatprep.mubr.bf16.mxu0 %v7551_v13  ;;  %v7745_v13 = vld [vmem:[%s9230_s3] ss:$0 sm:$0xff] }
 0x15b   : > { %6341 = vmatprep.mubr.bf16.mxu1 %v7690_v25 }
 0x161   : > { %6082 = vmatmul.mubr.bf16.gmra.mrb[68].mxu0 %v7563_v26 }
 0x162   : > { %6342 = vmatmul.mubr.bf16.gmra.mrb[32].mxu1 %v2642_v61  ;;  %6101 = vmatprep.mubr.bf16.mxu0 %v1301_v0  ;;  %v1275_v61 = vld [vmem:[%s7420_s14 + $0x51] sm:$0xff]  ;;  %v1276_v0 = vld [vmem:[%s7420_s14 + $0x59] sm:$0xff] }
 0x163   : > { %6361 = vmatprep.mubr.bf16.mxu1 %v2956_v11  ;;  %v2930_v11 = vld [vmem:[%s7420_s14 + $0x75] sm:$0xff] }
 0x164   : > { %v5947_v8 = vpop.f32.mrb[0].mxu0 }
 0x165   : > { %v487_v29 = vadd.f32 %v5947_v8, %v7745_v13  ;;  %v478_v26 = vpop.f32.mrb[1].mxu0  ;;  %v1278_v8 = vld [vmem:[%s7420_s14 + $0x69] sm:$0xff] }
 0x166   : > { %v479_v42 = vadd.f32 %v7745_v13, %v478_v26  ;;  %v5948_v43 = vpop.f32.mrb[2].mxu0 }
 0x167   : > { %v659_v46 = vmul.f32 0.01, %v487_v29  ;;  %v490_v49 = vadd.f32 %v5948_v43, %v7745_v13  ;;  %v481_v54 = vpop.f32.mrb[3].mxu0  ;;  %vm623_vm0 = vcmp.gt.f32.partialorder %v487_v29, 0.0 }
 0x168   : > { %v657_v57 = vmul.f32 0.01, %v479_v42  ;;  %v482_v58 = vadd.f32 %v7745_v13, %v481_v54  ;;  %vm621_vm1 = vcmp.gt.f32.partialorder %v479_v42, 0.0 }
 0x169   : > { %vm624_vm2 = vcmp.gt.f32.partialorder %v490_v49, 0.0  ;;  %v660_v62 = vmul.f32 0.01, %v490_v49  ;;  %6102 = vmatmul.mubr.bf16.vlgmr.msra.gmra.mrb[36].mxu0 %v1302_v36  ;;  %v695_v14 = vsel %vm623_vm0, %v487_v29, %v659_v46  ;;  %v2932_v36 = vld [vmem:[%s7420_s14 + $0x85] sm:$0xff]  ;;  %v1306_v46 = vpack.c.bf16 %v1276_v0, %v1275_v61 }
 0x16a   : > { %vm622_vm3 = vcmp.gt.f32.partialorder %v482_v58, 0.0  ;;  %v658_v4 = vmul.f32 0.01, %v482_v58  ;;  %6362 = vmatmul.mubr.bf16.vlgmr.msra.gmra.mrb[0].mxu1 %v2957_v44  ;;  %6138 = vmatpush3.bf16.msra.mxu0 %v7713_v2  ;;  %v693_v22 = vsel %vm621_vm1, %v479_v42, %v657_v57  ;;  %v2961_v57 = vpack.c.bf16 %v2931_v55, %v2930_v11  ;;  %v6974_v0 = vld [vmem:[#allocation7 + $0xb8] sm:$0xff]   ;;  %v1283_v55 = vld [vmem:[%s7420_s14 + $0x91] sm:$0xff] }
 0x16b   : > { %v696_v17 = vsel %vm624_vm2, %v490_v49, %v660_v62  ;;  %6398 = vmatpush3.bf16.msra.mxu1 %v7715_v24  ;;  %6105 = vmatprep.mubr.bf16.mxu0 %v1303_v56  ;;  %v2960_v24 = vpack.c.bf16 %v2929_v38, %v2928_v31  ;;  %v6969_v49 = vld [vmem:[#allocation7 + $0x220] sm:$0xff]   ;;  %v2962_v1 = vpack.c.bf16 %v2933_v40, %v2932_v36 }
 0x16c   : > { %v5463_v23 = vpack.c.bf16 %v696_v17, %v695_v14  ;;  %v694_v25 = vsel %vm622_vm3, %v482_v58, %v658_v4  ;;  %v5951_v28 = vpop.f32.mrb[4].mxu0  ;;  %6365 = vmatprep.mubr.bf16.mxu1 %v2958_v59  ;;  %6139 = vmatprep.subr.bf16.mxu0 %v6962_v60  ;;  %v1307_v58 = vpack.c.bf16 %v1278_v8, %v1277_v6  ;;  %v1279_v17 = vld [vmem:[%s7420_s14 + $0x71] sm:$0xff]  ;;  %v1284_v6 = vld [vmem:[%s7420_s14 + $0x99] sm:$0xff]  ;;  %v1286_v36 = vld [vmem:[%s7420_s14 + $0xa9] sm:$0xff] }
 0x16d   : > { %v5458_v15 = vpack.c.bf16 %v694_v25, %v693_v22  ;;  %v503_v30 = vadd.f32 %v5951_v28, %v7745_v13  ;;  %v494_v34 = vpop.f32.mrb[5].mxu0  ;;  %6399 = vmatprep.subr.bf16.mxu1 %v6963_v3  ;;  %v1281_v25 = vld [vmem:[%s7420_s14 + $0x81] sm:$0xff]  ;;  %v1282_v28 = vld [vmem:[%s7420_s14 + $0x89] sm:$0xff]  ;;  %v2938_v8 = vld [vmem:[%s7420_s14 + $0xb5] sm:$0xff] }
 0x16e   : > { %5635 = vst [vmem:[%s7776_s17 + $0x8] sm:$0xff] %v5463_v23   ;;  %v495_v52 = vadd.f32 %v7745_v13, %v494_v34  ;;  %v5952_v48 = vpop.f32.mrb[6].mxu0  ;;  %6140 = vmatpush3.bf16.msra.mxu0 %v6962_v60  ;;  %v2935_v23 = vld [vmem:[%s7420_s14 + $0x9d] sm:$0xff]  ;;  %v2937_v34 = vld [vmem:[%s7420_s14 + $0xad] sm:$0xff] }
 0x16f   : > { %5459 = vst [vmem:[%s7776_s17] sm:$0xff] %v5458_v15   ;;  %v663_v35 = vmul.f32 0.01, %v503_v30  ;;  %v506_v63 = vadd.f32 %v5952_v48, %v7745_v13  ;;  %v497_v2 = vpop.f32.mrb[7].mxu0  ;;  %6400 = vmatpush3.bf16.msra.mxu1 %v6963_v3  ;;  %6141 = vmatprep.subr.bf16.mxu0 %v6964_v21  ;;  %vm627_vm4 = vcmp.gt.f32.partialorder %v503_v30, 0.0 }
 0x170   : > { %v661_v16 = vmul.f32 0.01, %v495_v52  ;;  %v498_v19 = vadd.f32 %v7745_v13, %v497_v2  ;;  %6401 = vmatprep.subr.bf16.mxu1 %v6965_v39  ;;  %vm625_vm5 = vcmp.gt.f32.partialorder %v495_v52, 0.0 }
 0x171   : > { %vm628_vm6 = vcmp.gt.f32.partialorder %v506_v63, 0.0  ;;  %v664_v37 = vmul.f32 0.01, %v506_v63  ;;  %6106 = vmatmul.mubr.bf16.gmra.mrb[40].mxu0 %v1304_v45  ;;  %v699_v27 = vsel %vm627_vm4, %v503_v30, %v663_v35  ;;  %v2936_v30 = vld [vmem:[%s7420_s14 + $0xa5] sm:$0xff] }
 0x172   : > { %vm626_vm7 = vcmp.gt.f32.partialorder %v498_v19, 0.0  ;;  %v662_v51 = vmul.f32 0.01, %v498_v19  ;;  %6366 = vmatmul.mubr.bf16.gmra.mrb[4].mxu1 %v2959_v50  ;;  %6109 = vmatprep.mubr.bf16.mxu0 %v1305_v5  ;;  %v697_v9 = vsel %vm625_vm5, %v495_v52, %v661_v16  ;;  %v6972_v45 = vld [vmem:[#allocation7 + $0xb0] sm:$0xff]   ;;  %v1308_v5 = vpack.c.bf16 %v1280_v18, %v1279_v17 }
 0x173   : > { %v700_v53 = vsel %vm628_vm6, %v506_v63, %v664_v37  ;;  %6369 = vmatprep.mubr.bf16.mxu1 %v2960_v24  ;;  %6142 = vmatpush3.bf16.msra.mxu0 %v6964_v21  ;;  %v6973_v35 = vld [vmem:[#allocation7 + $0x230] sm:$0xff]   ;;  %v2963_v24 = vpack.c.bf16 %v2935_v23, %v2934_v20  ;;  %v1309_v16 = vpack.c.bf16 %v1282_v28, %v1281_v25 }
 0x174   : > { %v5473_v12 = vpack.c.bf16 %v700_v53, %v699_v27  ;;  %v698_v29 = vsel %vm626_vm7, %v498_v19, %v662_v51  ;;  %v5955_v26 = vpop.f32.mrb[8].mxu0  ;;  %6402 = vmatpush3.bf16.msra.mxu1 %v6965_v39  ;;  %6143 = vmatprep.subr.bf16.mxu0 %v6966_v33  ;;  %v6975_v27 = vld [vmem:[#allocation7 + $0x238] sm:$0xff]   ;;  %v1287_v18 = vld [vmem:[%s7420_s14 + $0xb1] sm:$0xff] }
 0x175   : > { %v5468_v42 = vpack.c.bf16 %v698_v29, %v697_v9  ;;  %v519_v43 = vadd.f32 %v5955_v26, %v7745_v13  ;;  %v510_v44 = vpop.f32.mrb[9].mxu0  ;;  %6403 = vmatprep.subr.bf16.mxu1 %v6967_v47  ;;  %v2939_v29 = vld [vmem:[%s7420_s14 + $0xbd] sm:$0xff] }
 0x176   : > { %5637 = vst [vmem:[%s7776_s17 + $0x18] sm:$0xff] %v5473_v12   ;;  %v511_v54 = vadd.f32 %v7745_v13, %v510_v44  ;;  %v5956_v56 = vpop.f32.mrb[10].mxu0  ;;  %v1285_v26 = vld [vmem:[%s7420_s14 + $0xa1] sm:$0xff]  ;;  %v1288_v20 = vld [vmem:[%s7420_s14 + $0xb9] sm:$0xff] }
 0x177   : > { %5636 = vst [vmem:[%s7776_s17 + $0x10] sm:$0xff] %v5468_v42   ;;  %v667_v59 = vmul.f32 0.01, %v519_v43  ;;  %v522_v60 = vadd.f32 %v5956_v56, %v7745_v13  ;;  %v513_v62 = vpop.f32.mrb[11].mxu0  ;;  %6144 = vmatpush3.bf16.msra.mxu0 %v6966_v33  ;;  %vm631_vm8 = vcmp.gt.f32.partialorder %v519_v43, 0.0  ;;  %v2940_v44 = vld [vmem:[%s7420_s14 + $0xc5] sm:$0xff] }
 0x178   : > { %v665_v3 = vmul.f32 0.01, %v511_v54  ;;  %v514_v4 = vadd.f32 %v7745_v13, %v513_v62  ;;  %6404 = vmatpush3.bf16.msra.mxu1 %v6967_v47  ;;  %6145 = vmatprep.subr.bf16.mxu0 %v6968_v41  ;;  %vm629_vm9 = vcmp.gt.f32.partialorder %v511_v54, 0.0  ;;  %v2964_v47 = vpack.c.bf16 %v2937_v34, %v2936_v30  ;;  %v2943_v25 = vld [vmem:[%s7420_s14 + $0xdd] sm:$0xff]  ;;  %v2944_v34 = vld [vmem:[%s7420_s14 + $0xe5] sm:$0xff] }
 0x179   : > { %vm632_vm10 = vcmp.gt.f32.partialorder %v522_v60, 0.0  ;;  %v668_v7 = vmul.f32 0.01, %v522_v60  ;;  %6110 = vmatmul.mubr.bf16.gmra.mrb[44].mxu0 %v1306_v46  ;;  %6405 = vmatprep.subr.bf16.mxu1 %v6969_v49  ;;  %v703_v21 = vsel %vm631_vm8, %v519_v43, %v667_v59  ;;  %v2941_v46 = vld [vmem:[%s7420_s14 + $0xcd] sm:$0xff]  ;;  %v1311_v62 = vpack.c.bf16 %v1286_v36, %v1285_v26  ;;  %v1289_v28 = vld [vmem:[%s7420_s14 + $0xc1] sm:$0xff] }
 0x17a   : > { %vm630_vm11 = vcmp.gt.f32.partialorder %v514_v4, 0.0  ;;  %v666_v14 = vmul.f32 0.01, %v514_v4  ;;  %6370 = vmatmul.mubr.bf16.gmra.mrb[8].mxu1 %v2961_v57  ;;  %6113 = vmatprep.mubr.bf16.mxu0 %v1307_v58  ;;  %v701_v31 = vsel %vm629_vm9, %v511_v54, %v665_v3  ;;  %v1310_v57 = vpack.c.bf16 %v1284_v6, %v1283_v55 }
 0x17b   : > { %v704_v22 = vsel %vm632_vm10, %v522_v60, %v668_v7  ;;  %6373 = vmatprep.mubr.bf16.mxu1 %v2962_v1  ;;  %6146 = vmatpush3.bf16.msra.mxu0 %v6968_v41  ;;  %v2965_v60 = vpack.c.bf16 %v2939_v29, %v2938_v8  ;;  %v2947_v8 = vld [vmem:[%s7420_s14 + $0xfd] sm:$0xff] }
 0x17c   : > { %v5483_v38 = vpack.c.bf16 %v704_v22, %v703_v21  ;;  %v702_v39 = vsel %vm630_vm11, %v514_v4, %v666_v14  ;;  %v5959_v15 = vpop.f32.mrb[12].mxu0  ;;  %6406 = vmatpush3.bf16.msra.mxu1 %v6969_v49  ;;  %6147 = vmatprep.subr.bf16.mxu0 %v6970_v32  ;;  %v2942_v21 = vld [vmem:[%s7420_s14 + $0xd5] sm:$0xff] }
 0x17d   : > { %v5478_v52 = vpack.c.bf16 %v702_v39, %v701_v31  ;;  %v535_v48 = vadd.f32 %v5959_v15, %v7745_v13  ;;  %v526_v50 = vpop.f32.mrb[13].mxu0  ;;  %6407 = vmatprep.subr.bf16.mxu1 %v6971_v10  ;;  %v1290_v31 = vld [vmem:[%s7420_s14 + $0xc9] sm:$0xff] }
 0x17e   : > { %5639 = vst [vmem:[%s7776_s17 + $0x28] sm:$0xff] %v5483_v38   ;;  %v527_v63 = vadd.f32 %v7745_v13, %v526_v50  ;;  %v5960_v2 = vpop.f32.mrb[14].mxu0 }
 0x17f   : > { %5638 = vst [vmem:[%s7776_s17 + $0x20] sm:$0xff] %v5478_v52   ;;  %v671_v19 = vmul.f32 0.01, %v535_v48  ;;  %v538_v33 = vadd.f32 %v5960_v2, %v7745_v13  ;;  %v529_v37 = vpop.f32.mrb[15].mxu0  ;;  %6148 = vmatpush3.bf16.msra.mxu0 %v6970_v32  ;;  %vm635_vm12 = vcmp.gt.f32.partialorder %v535_v48, 0.0  ;;  %v2966_v32 = vpack.c.bf16 %v2941_v46, %v2940_v44 }
 0x180   : > { %v669_v51 = vmul.f32 0.01, %v527_v63  ;;  %v530_v61 = vadd.f32 %v7745_v13, %v529_v37  ;;  %6408 = vmatpush3.bf16.msra.mxu1 %v6971_v10  ;;  %6149 = vmatprep.subr.bf16.mxu0 %v6972_v45  ;;  %vm633_vm13 = vcmp.gt.f32.partialorder %v527_v63, 0.0  ;;  %v2967_v2 = vpack.c.bf16 %v2943_v25, %v2942_v21  ;;  %v2951_v21 = vld [vmem:[%s7420_s14 + $0x11d] sm:$0xff] }
 0x181   : > { %vm636_vm14 = vcmp.gt.f32.partialorder %v538_v33, 0.0  ;;  %v672_v11 = vmul.f32 0.01, %v538_v33  ;;  %6114 = vmatmul.mubr.bf16.gmra.mrb[48].mxu0 %v1308_v5  ;;  %6409 = vmatprep.subr.bf16.mxu1 %v6973_v35  ;;  %v707_v9 = vsel %vm635_vm12, %v535_v48, %v671_v19  ;;  %v1312_v5 = vpack.c.bf16 %v1288_v20, %v1287_v18 }
 0x182   : > { %vm634_vm15 = vcmp.gt.f32.partialorder %v530_v61, 0.0  ;;  %v670_v53 = vmul.f32 0.01, %v530_v61  ;;  %6374 = vmatmul.mubr.bf16.gmra.mrb[12].mxu1 %v2963_v24  ;;  %6117 = vmatprep.mubr.bf16.mxu0 %v1309_v16  ;;  %v705_v40 = vsel %vm633_vm13, %v527_v63, %v669_v51  ;;  %v1313_v24 = vpack.c.bf16 %v1290_v31, %v1289_v28 }
 0x183   : > { %v708_v12 = vsel %vm636_vm14, %v538_v33, %v672_v11  ;;  %6377 = vmatprep.mubr.bf16.mxu1 %v2964_v47  ;;  %6150 = vmatpush3.bf16.msra.mxu0 %v6972_v45  ;;  %v2945_v45 = vld [vmem:[%s7420_s14 + $0xed] sm:$0xff] }
 0x184   : > { %v5493_v41 = vpack.c.bf16 %v708_v12, %v707_v9  ;;  %v706_v42 = vsel %vm634_vm15, %v530_v61, %v670_v53  ;;  %v5963_v43 = vpop.f32.mrb[16].mxu0  ;;  %6410 = vmatpush3.bf16.msra.mxu1 %v6973_v35  ;;  %6151 = vmatprep.subr.bf16.mxu0 %v6974_v0  ;;  %v2968_v37 = vpack.c.bf16 %v2945_v45, %v2944_v34  ;;  %v1291_v11 = vld [vmem:[%s7420_s14 + $0xd1] sm:$0xff]  ;;  %v1293_v9 = vld [vmem:[%s7420_s14 + $0xe1] sm:$0xff]  ;;  %v1294_v12 = vld [vmem:[%s7420_s14 + $0xe9] sm:$0xff] }
 0x185   : > { %v5488_v49 = vpack.c.bf16 %v706_v42, %v705_v40  ;;  %v551_v54 = vadd.f32 %v5963_v43, %v7745_v13  ;;  %v542_v56 = vpop.f32.mrb[17].mxu0  ;;  %6411 = vmatprep.subr.bf16.mxu1 %v6975_v27  ;;  %v2946_v53 = vld [vmem:[%s7420_s14 + $0xf5] sm:$0xff]  ;;  %v2949_v42 = vld [vmem:[%s7420_s14 + $0x10d] sm:$0xff] }
 0x186   : > { %5641 = vst [vmem:[%s7776_s17 + $0x38] sm:$0xff] %v5493_v41   ;;  %v543_v58 = vadd.f32 %v7745_v13, %v542_v56  ;;  %v5964_v59 = vpop.f32.mrb[18].mxu0  ;;  %v2948_v41 = vld [vmem:[%s7420_s14 + $0x105] sm:$0xff] }
 0x187   : > { %5640 = vst [vmem:[%s7776_s17 + $0x30] sm:$0xff] %v5488_v49   ;;  %v675_v1 = vmul.f32 0.01, %v551_v54  ;;  %v554_v3 = vadd.f32 %v5964_v59, %v7745_v13  ;;  %v545_v4 = vpop.f32.mrb[19].mxu0  ;;  %6152 = vmatpush3.bf16.msra.mxu0 %v6974_v0  ;;  %vm639_vm0 = vcmp.gt.f32.partialorder %v551_v54, 0.0 }
 0x188   : > { %v673_v7 = vmul.f32 0.01, %v543_v58  ;;  %v546_v10 = vadd.f32 %v7745_v13, %v545_v4  ;;  %6412 = vmatpush3.bf16.msra.mxu1 %v6975_v27  ;;  %vm637_vm1 = vcmp.gt.f32.partialorder %v543_v58, 0.0  ;;  %v1292_v27 = vld [vmem:[%s7420_s14 + $0xd9] sm:$0xff] }
 0x189   : > { %vm640_vm2 = vcmp.gt.f32.partialorder %v554_v3, 0.0  ;;  %v676_v14 = vmul.f32 0.01, %v554_v3  ;;  %6118 = vmatmul.mubr.bf16.gmra.mrb[52].mxu0 %v1310_v57  ;;  %v711_v22 = vsel %vm639_vm0, %v551_v54, %v675_v1  ;;  %v1314_v49 = vpack.c.bf16 %v1292_v27, %v1291_v11 }
 0x18a   : > { %vm638_vm3 = vcmp.gt.f32.partialorder %v546_v10, 0.0  ;;  %v674_v17 = vmul.f32 0.01, %v546_v10  ;;  %6378 = vmatmul.mubr.bf16.gmra.mrb[16].mxu1 %v2965_v60  ;;  %6121 = vmatprep.mubr.bf16.mxu0 %v1311_v62  ;;  %v709_v38 = vsel %vm637_vm1, %v543_v58, %v673_v7  ;;  %v2969_v57 = vpack.c.bf16 %v2947_v8, %v2946_v53  ;;  %v2955_v53 = vld [vmem:[%s7420_s14 + $0x13d] sm:$0xff] }
 0x18b   : > { %v712_v23 = vsel %vm640_vm2, %v554_v3, %v676_v14  ;;  %6381 = vmatprep.mubr.bf16.mxu1 %v2966_v32  ;;  %v1315_v58 = vpack.c.bf16 %v1294_v12, %v1293_v9  ;;  %v2970_v1 = vpack.c.bf16 %v2949_v42, %v2948_v41  ;;  %v1296_v14 = vld [vmem:[%s7420_s14 + $0xf9] sm:$0xff] }
 0x18c   : > { %v5503_v39 = vpack.c.bf16 %v712_v23, %v711_v22  ;;  %v710_v15 = vsel %vm638_vm3, %v546_v10, %v674_v17  ;;  %v5967_v30 = vpop.f32.mrb[20].mxu0  ;;  %v1295_v10 = vld [vmem:[%s7420_s14 + $0xf1] sm:$0xff]  ;;  %v1297_v22 = vld [vmem:[%s7420_s14 + $0x101] sm:$0xff]  ;;  %v1298_v23 = vld [vmem:[%s7420_s14 + $0x109] sm:$0xff] }
 0x18d   : > { %v5498_v52 = vpack.c.bf16 %v710_v15, %v709_v38  ;;  %v567_v48 = vadd.f32 %v5967_v30, %v7745_v13  ;;  %v558_v50 = vpop.f32.mrb[21].mxu0  ;;  %v2950_v17 = vld [vmem:[%s7420_s14 + $0x115] sm:$0xff]  ;;  %v2953_v15 = vld [vmem:[%s7420_s14 + $0x12d] sm:$0xff] }
 0x18e   : > { %5643 = vst [vmem:[%s7776_s17 + $0x48] sm:$0xff] %v5503_v39   ;;  %v559_v35 = vadd.f32 %v7745_v13, %v558_v50  ;;  %v5968_v63 = vpop.f32.mrb[22].mxu0  ;;  %v2952_v39 = vld [vmem:[%s7420_s14 + $0x125] sm:$0xff] }
 0x18f   : > { %5642 = vst [vmem:[%s7776_s17 + $0x40] sm:$0xff] %v5498_v52   ;;  %v679_v16 = vmul.f32 0.01, %v567_v48  ;;  %v570_v19 = vadd.f32 %v5968_v63, %v7745_v13  ;;  %v561_v33 = vpop.f32.mrb[23].mxu0  ;;  %vm643_vm4 = vcmp.gt.f32.partialorder %v567_v48, 0.0  ;;  %v1316_v52 = vpack.c.bf16 %v1296_v14, %v1295_v10 }
 0x190   : > { %v677_v47 = vmul.f32 0.01, %v559_v35  ;;  %v562_v51 = vadd.f32 %v7745_v13, %v561_v33  ;;  %vm641_vm5 = vcmp.gt.f32.partialorder %v559_v35, 0.0 }
 0x191   : > { %vm644_vm6 = vcmp.gt.f32.partialorder %v570_v19, 0.0  ;;  %v680_v61 = vmul.f32 0.01, %v570_v19  ;;  %6122 = vmatmul.mubr.bf16.gmra.mrb[56].mxu0 %v1312_v5  ;;  %v715_v55 = vsel %vm643_vm4, %v567_v48, %v679_v16  ;;  %v2971_v5 = vpack.c.bf16 %v2951_v21, %v2950_v17  ;;  %v1600_v17 = vld [vmem:[%s7420_s14 + $0x22] sm:$0xff] }
 0x192   : > { %vm642_vm7 = vcmp.gt.f32.partialorder %v562_v51, 0.0  ;;  %v678_v0 = vmul.f32 0.01, %v562_v51  ;;  %6382 = vmatmul.mubr.bf16.gmra.mrb[20].mxu1 %v2967_v2  ;;  %6125 = vmatprep.mubr.bf16.mxu0 %v1313_v24  ;;  %v713_v29 = vsel %vm641_vm5, %v559_v35, %v677_v47  ;;  %v1317_v35 = vpack.c.bf16 %v1298_v23, %v1297_v22  ;;  %v3255_v23 = vld [vmem:[%s7420_s14 + $0x46] sm:$0xff] }
 0x193   : > { %v716_v6 = vsel %vm644_vm6, %v570_v19, %v680_v61  ;;  %6385 = vmatprep.mubr.bf16.mxu1 %v2968_v37  ;;  %v2972_v16 = vpack.c.bf16 %v2953_v15, %v2952_v39  ;;  %v1300_v61 = vld [vmem:[%s7420_s14 + $0x119] sm:$0xff] }
 0x194   : > { %v5513_v26 = vpack.c.bf16 %v716_v6, %v715_v55  ;;  %v714_v36 = vsel %vm642_vm7, %v562_v51, %v678_v0  ;;  %v5971_v40 = vpop.f32.mrb[24].mxu0  ;;  %v1299_v51 = vld [vmem:[%s7420_s14 + $0x111] sm:$0xff]  ;;  %v1596_v55 = vld [vmem:[%s7420_s14 + $0x2] sm:$0xff] }
 0x195   : > { %v5508_v43 = vpack.c.bf16 %v714_v36, %v713_v29  ;;  %v583_v44 = vadd.f32 %v5971_v40, %v7745_v13  ;;  %v574_v46 = vpop.f32.mrb[25].mxu0  ;;  %v2954_v0 = vld [vmem:[%s7420_s14 + $0x135] sm:$0xff]  ;;  %v1597_v6 = vld [vmem:[%s7420_s14 + $0xa] sm:$0xff] }
 0x196   : > { %5645 = vst [vmem:[%s7776_s17 + $0x58] sm:$0xff] %v5513_v26   ;;  %v575_v54 = vadd.f32 %v7745_v13, %v574_v46  ;;  %v5972_v56 = vpop.f32.mrb[26].mxu0  ;;  %v3251_v26 = vld [vmem:[%s7420_s14 + $0x26] sm:$0xff]  ;;  %v3252_v36 = vld [vmem:[%s7420_s14 + $0x2e] sm:$0xff] }
 0x197   : > { %5644 = vst [vmem:[%s7776_s17 + $0x50] sm:$0xff] %v5508_v43   ;;  %v683_v59 = vmul.f32 0.01, %v583_v44  ;;  %v586_v60 = vadd.f32 %v5972_v56, %v7745_v13  ;;  %v577_v62 = vpop.f32.mrb[27].mxu0  ;;  %vm647_vm8 = vcmp.gt.f32.partialorder %v583_v44, 0.0  ;;  %v1318_v43 = vpack.c.bf16 %v1300_v61, %v1299_v51  ;;  %v1608_v51 = vld [vmem:[%s7420_s14 + $0x62] sm:$0xff] }
 0x198   : > { %v681_v3 = vmul.f32 0.01, %v575_v54  ;;  %v578_v4 = vadd.f32 %v7745_v13, %v577_v62  ;;  %vm645_vm9 = vcmp.gt.f32.partialorder %v575_v54, 0.0  ;;  %v1609_v61 = vld [vmem:[%s7420_s14 + $0x6a] sm:$0xff] }
 0x199   : > { %vm648_vm10 = vcmp.gt.f32.partialorder %v586_v60, 0.0  ;;  %v684_v32 = vmul.f32 0.01, %v586_v60  ;;  %6126 = vmatmul.mubr.bf16.gmra.mrb[60].mxu0 %v1314_v49  ;;  %v719_v18 = vsel %vm647_vm8, %v583_v44, %v683_v59  ;;  %v2973_v49 = vpack.c.bf16 %v2955_v53, %v2954_v0  ;;  %v3263_v0 = vld [vmem:[%s7420_s14 + $0x86] sm:$0xff] }
 0x19a   : > { %vm646_vm11 = vcmp.gt.f32.partialorder %v578_v4, 0.0  ;;  %v682_v7 = vmul.f32 0.01, %v578_v4  ;;  %6386 = vmatmul.mubr.bf16.gmra.mrb[24].mxu1 %v2969_v57  ;;  %6129 = vmatprep.mubr.bf16.mxu0 %v1315_v58  ;;  %v717_v25 = vsel %vm645_vm9, %v575_v54, %v681_v3  ;;  %v1632_v54 = vpack.c.bf16 %v1597_v6, %v1596_v55 }
 0x19b   : > { %v720_v20 = vsel %vm648_vm10, %v586_v60, %v684_v32  ;;  %6389 = vmatprep.mubr.bf16.mxu1 %v2970_v1  ;;  %v3287_v59 = vpack.c.bf16 %v3252_v36, %v3251_v26  ;;  %v1599_v32 = vld [vmem:[%s7420_s14 + $0x1a] sm:$0xff]  ;;  %v1638_v55 = vpack.c.bf16 %v1609_v61, %v1608_v51  ;;  %v1612_v26 = vld [vmem:[%s7420_s14 + $0x82] sm:$0xff]  ;;  %v1613_v36 = vld [vmem:[%s7420_s14 + $0x8a] sm:$0xff] }
 0x19c   : > { %v5523_v28 = vpack.c.bf16 %v720_v20, %v719_v18  ;;  %v718_v31 = vsel %vm646_vm11, %v578_v4, %v682_v7  ;;  %v5975_v38 = vpop.f32.mrb[28].mxu0  ;;  %v1598_v4 = vld [vmem:[%s7420_s14 + $0x12] sm:$0xff]  ;;  %v1601_v18 = vld [vmem:[%s7420_s14 + $0x2a] sm:$0xff] }
 0x19d   : > { %v5518_v30 = vpack.c.bf16 %v718_v31, %v717_v25  ;;  %v599_v34 = vadd.f32 %v5975_v38, %v7745_v13  ;;  %v590_v45 = vpop.f32.mrb[29].mxu0  ;;  %v3253_v7 = vld [vmem:[%s7420_s14 + $0x36] sm:$0xff]  ;;  %v3256_v25 = vld [vmem:[%s7420_s14 + $0x4e] sm:$0xff]  ;;  %v1633_v31 = vpack.c.bf16 %v1599_v32, %v1598_v4  ;;  %v1634_v39 = vpack.c.bf16 %v1601_v18, %v1600_v17  ;;  %v1620_v17 = vld [vmem:[%s7420_s14 + $0xc2] sm:$0xff] }
 0x19e   : > { %5647 = vst [vmem:[%s7776_s17 + $0x68] sm:$0xff] %v5523_v28   ;;  %v591_v48 = vadd.f32 %v7745_v13, %v590_v45  ;;  %v5976_v50 = vpop.f32.mrb[30].mxu0  ;;  %v3289_v15 = vpack.c.bf16 %v3256_v25, %v3255_v23  ;;  %v3257_v45 = vld [vmem:[%s7420_s14 + $0x56] sm:$0xff]  ;;  %v1621_v18 = vld [vmem:[%s7420_s14 + $0xca] sm:$0xff] }
 0x19f   : > { %5646 = vst [vmem:[%s7776_s17 + $0x60] sm:$0xff] %v5518_v30   ;;  %v687_v63 = vmul.f32 0.01, %v599_v34  ;;  %v602_v2 = vadd.f32 %v5976_v50, %v7745_v13  ;;  %v593_v24 = vpop.f32.mrb[31].mxu0  ;;  %vm651_vm12 = vcmp.gt.f32.partialorder %v599_v34, 0.0  ;;  %v1602_v30 = vld [vmem:[%s7420_s14 + $0x32] sm:$0xff]  ;;  %v1644_v25 = vpack.c.bf16 %v1621_v18, %v1620_v17 }
 0x1a0   : > { %v685_v19 = vmul.f32 0.01, %v591_v48  ;;  %v594_v33 = vadd.f32 %v7745_v13, %v593_v24  ;;  %vm649_vm13 = vcmp.gt.f32.partialorder %v591_v48, 0.0  ;;  %v1605_v50 = vld [vmem:[%s7420_s14 + $0x4a] sm:$0xff] }
 0x1a1   : > { %vm652_vm14 = vcmp.gt.f32.partialorder %v602_v2, 0.0  ;;  %v688_v37 = vmul.f32 0.01, %v602_v2  ;;  %6130 = vmatmul.mubr.bf16.gmra.mrb[64].mxu0 %v1316_v52  ;;  %v723_v11 = vsel %vm651_vm12, %v599_v34, %v687_v63  ;;  %v1603_v34 = vld [vmem:[%s7420_s14 + $0x3a] sm:$0xff] }
 0x1a2   : > { %vm650_vm15 = vcmp.gt.f32.partialorder %v594_v33, 0.0  ;;  %v686_v47 = vmul.f32 0.01, %v594_v33  ;;  %6390 = vmatmul.mubr.bf16.gmra.mrb[28].mxu1 %v2971_v5  ;;  %6133 = vmatprep.mubr.bf16.mxu0 %v1317_v35  ;;  %v721_v8 = vsel %vm649_vm13, %v591_v48, %v685_v19  ;;  %v3258_v52 = vld [vmem:[%s7420_s14 + $0x5e] sm:$0xff]  ;;  %v3259_v5 = vld [vmem:[%s7420_s14 + $0x66] sm:$0xff]  ;;  %v3260_v35 = vld [vmem:[%s7420_s14 + $0x6e] sm:$0xff]  ;;  %v1635_v63 = vpack.c.bf16 %v1603_v34, %v1602_v30 }
 0x1a3   : > { %v724_v27 = vsel %vm652_vm14, %v602_v2, %v688_v37  ;;  %6393 = vmatprep.mubr.bf16.mxu1 %v2972_v16  ;;  %v1604_v48 = vld [vmem:[%s7420_s14 + $0x42] sm:$0xff]  ;;  %v3290_v2 = vpack.c.bf16 %v3258_v52, %v3257_v45  ;;  %v3291_v16 = vpack.c.bf16 %v3260_v35, %v3259_v5  ;;  %v1606_v19 = vld [vmem:[%s7420_s14 + $0x52] sm:$0xff]  ;;  %v1625_v34 = vld [vmem:[%s7420_s14 + $0xea] sm:$0xff] }
 0x1a4   : > { %v5533_v9 = vpack.c.bf16 %v724_v27, %v723_v11  ;;  %v722_v12 = vsel %vm650_vm15, %v594_v33, %v686_v47  ;;  %v5979_v29 = vpop.f32.mrb[32].mxu0  ;;  %v1636_v24 = vpack.c.bf16 %v1605_v50, %v1604_v48  ;;  %v1607_v33 = vld [vmem:[%s7420_s14 + $0x5a] sm:$0xff]  ;;  %v3264_v11 = vld [vmem:[%s7420_s14 + $0x8e] sm:$0xff]  ;;  %v1624_v30 = vld [vmem:[%s7420_s14 + $0xe2] sm:$0xff] }
 0x1a5   : > { %v5528_v40 = vpack.c.bf16 %v722_v12, %v721_v8  ;;  %v615_v41 = vadd.f32 %v5979_v29, %v7745_v13  ;;  %v606_v42 = vpop.f32.mrb[33].mxu0  ;;  %v3261_v37 = vld [vmem:[%s7420_s14 + $0x76] sm:$0xff]  ;;  %v3262_v47 = vld [vmem:[%s7420_s14 + $0x7e] sm:$0xff]  ;;  %v1637_v27 = vpack.c.bf16 %v1607_v33, %v1606_v19  ;;  %v3293_v6 = vpack.c.bf16 %v3264_v11, %v3263_v0  ;;  %v3279_v45 = vld [vmem:[%s7420_s14 + $0x106] sm:$0xff] }
 0x1a6   : > { %5649 = vst [vmem:[%s7776_s17 + $0x78] sm:$0xff] %v5533_v9   ;;  %v607_v44 = vadd.f32 %v7745_v13, %v606_v42  ;;  %v5980_v46 = vpop.f32.mrb[34].mxu0  ;;  %v3292_v53 = vpack.c.bf16 %v3262_v47, %v3261_v37  ;;  %v1610_v8 = vld [vmem:[%s7420_s14 + $0x72] sm:$0xff]  ;;  %v1611_v9 = vld [vmem:[%s7420_s14 + $0x7a] sm:$0xff]  ;;  %v1646_v5 = vpack.c.bf16 %v1625_v34, %v1624_v30  ;;  %v1628_v19 = vld [vmem:[%s7420_s14 + $0x102] sm:$0xff] }
 0x1a7   : > { %5648 = vst [vmem:[%s7776_s17 + $0x70] sm:$0xff] %v5528_v40   ;;  %v691_v56 = vmul.f32 0.01, %v615_v41  ;;  %v618_v57 = vadd.f32 %v5980_v46, %v7745_v13  ;;  %v609_v58 = vpop.f32.mrb[35].mxu0  ;;  %vm655_vm0 = vcmp.gt.f32.partialorder %v615_v41, 0.0  ;;  %v3265_v12 = vld [vmem:[%s7420_s14 + $0x96] sm:$0xff]  ;;  %v1639_v42 = vpack.c.bf16 %v1611_v9, %v1610_v8 }
 0x1a8   : > { %v689_v60 = vmul.f32 0.01, %v607_v44  ;;  %v610_v62 = vadd.f32 %v7745_v13, %v609_v58  ;;  %vm653_vm1 = vcmp.gt.f32.partialorder %v607_v44, 0.0  ;;  %v3254_v13 = vld [vmem:[%s7420_s14 + $0x3e] sm:$0xff]  ;;  %v3267_v40 = vld [vmem:[%s7420_s14 + $0xa6] sm:$0xff]  ;;  %v3280_v52 = vld [vmem:[%s7420_s14 + $0x10e] sm:$0xff] }
 0x1a9   : > { %vm656_vm2 = vcmp.gt.f32.partialorder %v618_v57, 0.0  ;;  %v692_v1 = vmul.f32 0.01, %v618_v57  ;;  %6134 = vmatmul.mubr.bf16.gmra.mrb[68].mxu0 %v1318_v43  ;;  %v727_v10 = vsel %vm655_vm0, %v615_v41, %v691_v56  ;;  %v3288_v38 = vpack.c.bf16 %v3254_v13, %v3253_v7  ;;  %v3266_v29 = vld [vmem:[%s7420_s14 + $0x9e] sm:$0xff]  ;;  %v3268_v41 = vld [vmem:[%s7420_s14 + $0xae] sm:$0xff]  ;;  %v3269_v56 = vld [vmem:[%s7420_s14 + $0xb6] sm:$0xff] }
 0x1aa   : > { %vm654_vm3 = vcmp.gt.f32.partialorder %v610_v62, 0.0  ;;  %v690_v3 = vmul.f32 0.01, %v610_v62  ;;  %6394 = vmatmul.mubr.bf16.gmra.mrb[32].mxu1 %v2973_v49  ;;  %6153 = vmatprep.mubr.bf16.mxu0 %v1632_v54  ;;  %v725_v20 = vsel %vm653_vm1, %v607_v44, %v689_v60  ;;  %v3294_v43 = vpack.c.bf16 %v3266_v29, %v3265_v12  ;;  %v1614_v49 = vld [vmem:[%s7420_s14 + $0x92] sm:$0xff]  ;;  %v1615_v54 = vld [vmem:[%s7420_s14 + $0x9a] sm:$0xff]  ;;  %v1616_v58 = vld [vmem:[%s7420_s14 + $0xa2] sm:$0xff] }
 0x1ab   : > { %v728_v14 = vsel %vm656_vm2, %v618_v57, %v692_v1  ;;  %6413 = vmatprep.mubr.bf16.mxu1 %v3287_v59  ;;  %v1640_v44 = vpack.c.bf16 %v1613_v36, %v1612_v26  ;;  %v3295_v46 = vpack.c.bf16 %v3268_v41, %v3267_v40  ;;  %v3270_v57 = vld [vmem:[%s7420_s14 + $0xbe] sm:$0xff]  ;;  %v1617_v59 = vld [vmem:[%s7420_s14 + $0xaa] sm:$0xff]  ;;  %v1641_v1 = vpack.c.bf16 %v1615_v54, %v1614_v49  ;;  %v1618_v7 = vld [vmem:[%s7420_s14 + $0xb2] sm:$0xff] }
 0x1ac   : > { %v5543_v21 = vpack.c.bf16 %v728_v14, %v727_v10  ;;  %v726_v22 = vsel %vm654_vm3, %v610_v62, %v690_v3  ;;  %v3271_v60 = vld [vmem:[%s7420_s14 + $0xc6] sm:$0xff]  ;;  %v3272_v62 = vld [vmem:[%s7420_s14 + $0xce] sm:$0xff]  ;;  %v3296_v3 = vpack.c.bf16 %v3270_v57, %v3269_v56  ;;  %v1642_v4 = vpack.c.bf16 %v1617_v59, %v1616_v58  ;;  %v1619_v10 = vld [vmem:[%s7420_s14 + $0xba] sm:$0xff] }
 0x1ad   : > { %v5538_v28 = vpack.c.bf16 %v726_v22, %v725_v20  ;;  %v3297_v32 = vpack.c.bf16 %v3272_v62, %v3271_v60  ;;  %v3273_v14 = vld [vmem:[%s7420_s14 + $0xd6] sm:$0xff]  ;;  %v3274_v13 = vld [vmem:[%s7420_s14 + $0xde] sm:$0xff]  ;;  %v3275_v20 = vld [vmem:[%s7420_s14 + $0xe6] sm:$0xff]  ;;  %v1643_v22 = vpack.c.bf16 %v1619_v10, %v1618_v7  ;;  %v3301_v35 = vpack.c.bf16 %v3280_v52, %v3279_v45 }
 0x1ae   : > { %5651 = vst [vmem:[%s7776_s17 + $0x88] sm:$0xff] %v5543_v21   ;;  %v3276_v21 = vld [vmem:[%s7420_s14 + $0xee] sm:$0xff]  ;;  %v3298_v23 = vpack.c.bf16 %v3274_v13, %v3273_v14  ;;  %v3283_v37 = vld [vmem:[%s7420_s14 + $0x126] sm:$0xff]  ;;  %v4091_v12 = vlaneseq }
 0x1af   : > { %5650 = vst [vmem:[%s7776_s17 + $0x80] sm:$0xff] %v5538_v28   ;;  %v3299_v28 = vpack.c.bf16 %v3276_v21, %v3275_v20  ;;  %v1629_v33 = vld [vmem:[%s7420_s14 + $0x10a] sm:$0xff] }
 0x1b0   : > { %v3284_v47 = vld [vmem:[%s7420_s14 + $0x12e] sm:$0xff]  ;;  %v1648_v0 = vpack.c.bf16 %v1629_v33, %v1628_v19  ;;  %v7965_v29 = vshrl.u32 %v4091_v12, 7  ;;  %v9238_v12 = vmov 0.0  }
 0x1b1   : > { %6154 = vmatmul.mubr.bf16.vlgmr.msra.gmra.mrb[36].mxu0 %v1633_v31  ;;  %v1622_v31 = vld [vmem:[%s7420_s14 + $0xd2] sm:$0xff]  ;;  %v3303_v11 = vpack.c.bf16 %v3284_v47, %v3283_v37 }
 0x1b2   : > { %6414 = vmatmul.mubr.bf16.vlgmr.msra.gmra.mrb[0].mxu1 %v3288_v38  ;;  %6157 = vmatprep.mubr.bf16.mxu0 %v1634_v39  ;;  %v1623_v38 = vld [vmem:[%s7420_s14 + $0xda] sm:$0xff]  ;;  %v4094_v26 = vadd.s32 16, %v7965_v29  ;;  %v4095_v41 = vadd.s32 24, %v7965_v29  ;;  %v4098_v62 = vadd.s32 48, %v7965_v29  ;;  %v4099_v10 = vadd.s32 56, %v7965_v29 }
 0x1b3   : > { %6417 = vmatprep.mubr.bf16.mxu1 %v3289_v15  ;;  %v3277_v39 = vld [vmem:[%s7420_s14 + $0xf6] sm:$0xff]  ;;  %v3278_v15 = vld [vmem:[%s7420_s14 + $0xfe] sm:$0xff]  ;;  %v1645_v48 = vpack.c.bf16 %v1623_v38, %v1622_v31  ;;  %v8012_v34 = vadd.s32 80, %v7965_v29  ;;  %v8015_v45 = vadd.s32 64, %v7965_v29 }
 0x1b4   : > { %v3300_v50 = vpack.c.bf16 %v3278_v15, %v3277_v39  ;;  %v7968_v36 = vmul.u32.u64.low 3817748708, %v4094_v26  ;;  %v7969_v40 = vmul.u32.u64.high 3817748708, %v4094_v26, %v7968_v36 }
 0x1b5   : > { %v7990_v14 = vmul.u32.u64.low 3817748708, %v4098_v62  ;;  %v7991_v13 = vmul.u32.u64.high 3817748708, %v4098_v62, %v7990_v14  ;;  %v8035_v37 = vmul.u32.u64.low 3817748708, %v8015_v45  ;;  %v8036_v47 = vmul.u32.u64.high 3817748708, %v8015_v45, %v8035_v37 }
 0x1b6   : > { %v4156_v57 = vshrl.u32 %v7969_v40, 4 }
 0x1b8   : > { %v4157_v59 = vmul.u32 18, %v4156_v57  ;;  %v8083_v57 = vadd.s32 96, %v7965_v29 }
 0x1b9   : > { %6158 = vmatmul.mubr.bf16.gmra.mrb[40].mxu0 %v1635_v63  ;;  %v1626_v63 = vld [vmem:[%s7420_s14 + $0xf2] sm:$0xff] }
 0x1ba   : > { %6418 = vmatmul.mubr.bf16.gmra.mrb[4].mxu1 %v3290_v2  ;;  %6161 = vmatprep.mubr.bf16.mxu0 %v1636_v24  ;;  %v1627_v2 = vld [vmem:[%s7420_s14 + $0xfa] sm:$0xff] }
 0x1bb   : > { %6421 = vmatprep.mubr.bf16.mxu1 %v3291_v16  ;;  %v3281_v24 = vld [vmem:[%s7420_s14 + $0x116] sm:$0xff]  ;;  %v3282_v16 = vld [vmem:[%s7420_s14 + $0x11e] sm:$0xff]  ;;  %v1647_v51 = vpack.c.bf16 %v1627_v2, %v1626_v63 }
 0x1bc   : > { %v3302_v61 = vpack.c.bf16 %v3282_v16, %v3281_v24  ;;  %v8030_v24 = vmul.u32.u64.low 3817748708, %v8012_v34  ;;  %v8031_v16 = vmul.u32.u64.high 3817748708, %v8012_v34, %v8030_v24 }
 0x1c1   : > { %6162 = vmatmul.mubr.bf16.gmra.mrb[44].mxu0 %v1637_v27  ;;  %v1630_v27 = vld [vmem:[%s7420_s14 + $0x112] sm:$0xff] }
 0x1c2   : > { %6422 = vmatmul.mubr.bf16.gmra.mrb[8].mxu1 %v3292_v53  ;;  %6165 = vmatprep.mubr.bf16.mxu0 %v1638_v55  ;;  %v1631_v53 = vld [vmem:[%s7420_s14 + $0x11a] sm:$0xff] }
 0x1c3   : > { %6425 = vmatprep.mubr.bf16.mxu1 %v3293_v6  ;;  %v3285_v55 = vld [vmem:[%s7420_s14 + $0x136] sm:$0xff]  ;;  %v3286_v6 = vld [vmem:[%s7420_s14 + $0x13e] sm:$0xff]  ;;  %v1649_v8 = vpack.c.bf16 %v1631_v53, %v1630_v27  ;;  %v8047_v53 = vadd.s32 88, %v7965_v29  ;;  %s7068_s14 = scalar_lea.vmem %s7067_s16, 4608 }
 0x1c4   : > { %v3304_v9 = vpack.c.bf16 %v3286_v6, %v3285_v55  ;;  %p7070_p9 = scmp.lt.s32.totalorder %s7068_s14, %s7062_s11 }
 0x1c6   : > { %p7071_p12 = por %p7070_p9, %p7069_p7 }
 0x1c8   : > { %p7072_p2 = pnand %p7071_p12, %p7065_p3 }
 0x1c9   : > { %6166 = vmatmul.mubr.bf16.gmra.mrb[48].mxu0 %v1639_v42 }
 0x1ca   : > { %6426 = vmatmul.mubr.bf16.gmra.mrb[12].mxu1 %v3294_v43  ;;  %6169 = vmatprep.mubr.bf16.mxu0 %v1640_v44  ;;  %v7973_v42 = vmul.u32.u64.low 3817748708, %v7965_v29  ;;  %v7974_v43 = vmul.u32.u64.high 3817748708, %v7965_v29, %v7973_v42  ;;  %v4093_v44 = vadd.s32 8, %v7965_v29 }
 0x1cb   : > { %6429 = vmatprep.mubr.bf16.mxu1 %v3295_v46  ;;  %v7977_v46 = vmul.u32.u64.low 3817748708, %v4095_v41  ;;  %v7978_v49 = vmul.u32.u64.high 3817748708, %v4095_v41, %v7977_v46 }
 0x1cc   : > { %v7980_v54 = vmul.u32.u64.low 3817748708, %v4093_v44  ;;  %v7981_v56 = vmul.u32.u64.high 3817748708, %v4093_v44, %v7980_v54  ;;  %v4134_v58 = vshrl.u32 %v7974_v43, 4  ;;  %v8075_v46 = vadd.s32 112, %v7965_v29 }
 0x1cd   : > { %v4167_v60 = vshrl.u32 %v7978_v49, 4 }
 0x1cf   : > { %v4168_v7 = vmul.u32 18, %v4167_v60 }
 0x1d1   : > { %6170 = vmatmul.mubr.bf16.gmra.mrb[52].mxu0 %v1641_v1  ;;  %v4135_v1 = vmul.u32 18, %v4134_v58 }
 0x1d2   : > { %6430 = vmatmul.mubr.bf16.gmra.mrb[16].mxu1 %v3296_v3  ;;  %6173 = vmatprep.mubr.bf16.mxu0 %v1642_v4  ;;  %v4145_v3 = vshrl.u32 %v7981_v56, 4  ;;  %v4096_v4 = vadd.s32 32, %v7965_v29  ;;  %v4244_v56 = vshrl.u32 %v8031_v16, 4 }
 0x1d3   : > { %6433 = vmatprep.mubr.bf16.mxu1 %v3297_v32  ;;  %v4158_v32 = vsub.s32 %v4094_v26, %v4157_v59  ;;  %v4136_v17 = vsub.s32 %v7965_v29, %v4135_v1  ;;  %v4222_v59 = vshrl.u32 %v8036_v47, 4 }
 0x1d4   : > { %v4146_v18 = vmul.u32 18, %v4145_v3  ;;  %v7994_v20 = vmul.u32.u64.low 3817748708, %v4096_v4  ;;  %v7995_v21 = vmul.u32.u64.high 3817748708, %v4096_v4, %v7994_v20  ;;  %v8096_v3 = vadd.s32 120, %v7965_v29 }
 0x1d5   : > { %vm4526_vm4 = vcmp.ne.s32.totalorder %v4158_v32, 0  ;;  %vm4562_vm5 = vcmp.lt.s32.totalorder %v4158_v32, 0  ;;  %v4634_v31 = vadd.s32 18, %v4158_v32  ;;  %vm4524_vm7 = vcmp.ne.s32.totalorder %v4136_v17, 0 }
 0x1d6   : > { %vm8003_vm6 = vmand %vm4562_vm5, %vm4526_vm4  ;;  %v4147_v39 = vsub.s32 %v4093_v44, %v4146_v18  ;;  %vm4560_vm8 = vcmp.lt.s32.totalorder %v4136_v17, 0  ;;  %v4178_v63 = vshrl.u32 %v7995_v21, 4  ;;  %v4223_v21 = vmul.u32 18, %v4222_v59 }
 0x1d7   : > { %v4670_v52 = vsel %vm8003_vm6, %v4634_v31, %v4158_v32  ;;  %vm8020_vm11 = vmand %vm4560_vm8, %vm4524_vm7  ;;  %v8071_v43 = vmul.u32.u64.low 3817748708, %v8047_v53  ;;  %v8072_v44 = vmul.u32.u64.high 3817748708, %v8047_v53, %v8071_v43  ;;  %v8130_v31 = vadd.s32 144, %v7965_v29 }
 0x1d8   : > { %vm4525_vm12 = vcmp.ne.s32.totalorder %v4147_v39, 0  ;;  %vm4561_vm13 = vcmp.lt.s32.totalorder %v4147_v39, 0  ;;  %v4633_v19 = vadd.s32 18, %v4147_v39  ;;  %vm4706_vm15 = vcmp.lt.s32.totalorder %v4670_v52, 16 }
 0x1d9   : > { %6174 = vmatmul.mubr.bf16.gmra.mrb[56].mxu0 %v1643_v22  ;;  %v7998_v22 = vadd.s32 40, %v7965_v29  ;;  %vm8038_vm0 = vmand %vm4561_vm13, %vm4525_vm12  ;;  %v4179_v27 = vmul.u32 18, %v4178_v63  ;;  %v8056_v26 = vsel %vm4706_vm15, 1.0, %v9238_v12  ;;  %v8296_v63 = vadd.s32 160, %v7965_v29 }
 0x1da   : > { %6434 = vmatmul.mubr.bf16.gmra.mrb[20].mxu1 %v3298_v23  ;;  %6177 = vmatprep.mubr.bf16.mxu0 %v1644_v25  ;;  %v4169_v23 = vsub.s32 %v4095_v41, %v4168_v7  ;;  %v4669_v6 = vsel %vm8038_vm0, %v4633_v19, %v4147_v39  ;;  %v4245_v7 = vmul.u32 18, %v4244_v56  ;;  %v8174_v19 = vadd.s32 128, %v7965_v29 }
 0x1db   : > { %6437 = vmatprep.mubr.bf16.mxu1 %v3299_v28  ;;  %v8000_v25 = vmul.u32.u64.low 3817748708, %v4099_v10  ;;  %v8001_v28 = vmul.u32.u64.high 3817748708, %v4099_v10, %v8000_v25  ;;  %v8008_v15 = vmul.u32.u64.low 3817748708, %v7998_v22  ;;  %v8009_v30 = vmul.u32.u64.high 3817748708, %v7998_v22, %v8008_v15 }
 0x1dc   : > { %vm4527_vm9 = vcmp.ne.s32.totalorder %v4169_v23, 0  ;;  %vm4563_vm10 = vcmp.lt.s32.totalorder %v4169_v23, 0  ;;  %v8068_v42 = vsub.s32 %v4096_v4, %v4179_v27  ;;  %vm8077_vm3 = vcmp.lt.s32.totalorder %v4669_v6, 16 }
 0x1dd   : > { %vm8025_vm14 = vmand %vm4563_vm10, %vm4527_vm9  ;;  %v4211_v33 = vshrl.u32 %v8001_v28, 4  ;;  %v4189_v55 = vshrl.u32 %v8009_v30, 4  ;;  %v8101_v4 = vmul.u32.u64.low 3817748708, %v8075_v46  ;;  %v8102_v32 = vmul.u32.u64.high 3817748708, %v8075_v46, %v8101_v4 }
 0x1de   : > { %vm4528_vm6 = vcmp.ne.s32.totalorder %v8068_v42, 0  ;;  %vm4564_vm7 = vcmp.lt.s32.totalorder %v8068_v42, 0  ;;  %v4636_v18 = vadd.s32 18, %v8068_v42  ;;  %v8145_v39 = vsel %vm8077_vm3, 1.0, %v9238_v12 }
 0x1df   : > { %v4190_v54 = vmul.u32 18, %v4189_v55  ;;  %vm8120_vm10 = vmand %vm4564_vm7, %vm4528_vm6  ;;  %v8126_v25 = vmul.u32.u64.low 3817748708, %v8096_v3  ;;  %v8127_v28 = vmul.u32.u64.high 3817748708, %v8096_v3, %v8126_v25  ;;  %v4255_v15 = vshrl.u32 %v8072_v44, 4 }
 0x1e0   : > { %v4246_v52 = vsub.s32 %v8012_v34, %v4245_v7  ;;  %v4224_v34 = vsub.s32 %v8015_v45, %v4223_v21  ;;  %v8170_v24 = vmul.u32.u64.low 3817748708, %v8130_v31  ;;  %v8171_v16 = vmul.u32.u64.high 3817748708, %v8130_v31, %v8170_v24 }
 0x1e1   : > { %6178 = vmatmul.mubr.bf16.gmra.mrb[60].mxu0 %v1645_v48  ;;  %v4632_v48 = vadd.s32 18, %v4136_v17  ;;  %v8118_v20 = vsub.s32 %v7998_v22, %v4190_v54  ;;  %v4256_v37 = vmul.u32 18, %v4255_v15  ;;  %v4288_v47 = vshrl.u32 %v8102_v32, 4 }
 0x1e2   : > { %6438 = vmatmul.mubr.bf16.gmra.mrb[24].mxu1 %v3300_v50  ;;  %6181 = vmatprep.mubr.bf16.mxu0 %v1646_v5  ;;  %v4200_v50 = vshrl.u32 %v7991_v13, 4  ;;  %v8109_v13 = vadd.s32 104, %v7965_v29  ;;  %vm4534_vm15 = vcmp.ne.s32.totalorder %v4246_v52, 0  ;;  %vm4570_vm0 = vcmp.lt.s32.totalorder %v4246_v52, 0 }
 0x1e3   : > { %6441 = vmatprep.mubr.bf16.mxu1 %v3301_v35  ;;  %v4635_v35 = vadd.s32 18, %v4169_v23  ;;  %vm4529_vm13 = vcmp.ne.s32.totalorder %v8118_v20, 0  ;;  %vm4568_vm3 = vcmp.lt.s32.totalorder %v4224_v34, 0  ;;  %v4299_v55 = vshrl.u32 %v8127_v28, 4  ;;  %vm8202_vm6 = vmand %vm4570_vm0, %vm4534_vm15 }
 0x1e4   : > { %v4640_v43 = vadd.s32 18, %v4224_v34  ;;  %v4332_v4 = vshrl.u32 %v8171_v16, 4  ;;  %v8501_v56 = vadd.s32 224, %v7965_v29 }
 0x1e6   : > { %v4333_v25 = vmul.u32 18, %v4332_v4 }
 0x1e9   : > { %6182 = vmatmul.mubr.bf16.gmra.mrb[64].mxu0 %v1647_v51 }
 0x1ea   : > { %6442 = vmatmul.mubr.bf16.gmra.mrb[28].mxu1 %v3302_v61  ;;  %6185 = vmatprep.mubr.bf16.mxu0 %v1648_v0  ;;  %v4201_v61 = vmul.u32 18, %v4200_v50  ;;  %v4668_v0 = vsel %vm8020_vm11, %v4632_v48, %v4136_v17  ;;  %v8151_v48 = vmul.u32.u64.low 3817748708, %v8109_v13  ;;  %v8152_v50 = vmul.u32.u64.high 3817748708, %v8109_v13, %v8151_v48 }
 0x1eb   : > { %6445 = vmatprep.mubr.bf16.mxu1 %v3303_v11  ;;  %v4671_v11 = vsel %vm8025_vm14, %v4635_v35, %v4169_v23  ;;  %vm8058_vm1 = vcmp.lt.s32.totalorder %v4668_v0, 16  ;;  %v4672_v35 = vsel %vm8120_vm10, %v4636_v18, %v8068_v42  ;;  %vm4565_vm14 = vcmp.lt.s32.totalorder %v8118_v20, 0 }
 0x1ec   : > { %vm8062_vm2 = vcmp.lt.s32.totalorder %v4671_v11, 16  ;;  %v8066_v41 = vsub.s32 %v4098_v62, %v4201_v61  ;;  %v8135_v38 = vsel %vm8058_vm1, 1.0, %v9238_v12  ;;  %v4642_v61 = vadd.s32 18, %v4246_v52 }
 0x1ed   : > { %v8140_v22 = vsel %vm8062_vm2, 1.0, %v9238_v12  ;;  %vm4532_vm1 = vcmp.ne.s32.totalorder %v4224_v34, 0  ;;  %v8184_v11 = vadd.s32 152, %v7965_v29  ;;  %vm8188_vm2 = vmand %vm4565_vm14, %vm4529_vm13  ;;  %v4289_v42 = vmul.u32 18, %v4288_v47 }
 0x1ee   : > { %vm4530_vm4 = vcmp.ne.s32.totalorder %v8066_v41, 0  ;;  %vm4566_vm5 = vcmp.lt.s32.totalorder %v8066_v41, 0  ;;  %v4638_v1 = vadd.s32 18, %v8066_v41  ;;  %v4277_v49 = vshrl.u32 %v8152_v50, 4 }
 0x1ef   : > { %vm8111_vm8 = vmand %vm4566_vm5, %vm4530_vm4  ;;  %vm8197_vm5 = vcmp.lt.s32.totalorder %v4672_v35, 16  ;;  %v8241_v7 = vsub.s32 %v8075_v46, %v4289_v42  ;;  %v8260_v46 = vadd.s32 136, %v7965_v29  ;;  %v8288_v48 = vadd.s32 176, %v7965_v29 }
 0x1f0   : > { %v4674_v5 = vsel %vm8111_vm8, %v4638_v1, %v8066_v41  ;;  %v8207_v41 = vsub.s32 %v8047_v53, %v4256_v37  ;;  %vm8214_vm8 = vmand %vm4568_vm3, %vm4532_vm1  ;;  %v8222_v53 = vmul.u32.u64.low 3817748708, %v8184_v11  ;;  %v8223_v59 = vmul.u32.u64.high 3817748708, %v8184_v11, %v8222_v53 }
 0x1f1   : > { %6186 = vmatmul.mubr.bf16.gmra.mrb[68].mxu0 %v1649_v8  ;;  %v4212_v8 = vmul.u32 18, %v4211_v33  ;;  %v4637_v33 = vadd.s32 18, %v8118_v20  ;;  %vm4710_vm4 = vcmp.lt.s32.totalorder %v4674_v5, 16  ;;  %v4300_v1 = vmul.u32 18, %v4299_v55 }
 0x1f2   : > { %6446 = vmatmul.mubr.bf16.gmra.mrb[32].mxu1 %v3304_v9  ;;  %v8053_v9 = vadd.s32 72, %v7965_v29  ;;  %v8234_v32 = vsel %vm8197_vm5, 1.0, %v9238_v12  ;;  %v4278_v18 = vmul.u32 18, %v4277_v49  ;;  %v4643_v21 = vadd.s32 18, %v8207_v41 }
 0x1f3   : > { %v8085_v58 = vsub.s32 %v4099_v10, %v4212_v8  ;;  %v8105_v10 = vmul.u32.u64.low 3817748708, %v8083_v57  ;;  %v8106_v14 = vmul.u32.u64.high 3817748708, %v8083_v57, %v8105_v10  ;;  %v4673_v54 = vsel %vm8188_vm2, %v4637_v33, %v8118_v20 }
 0x1f4   : > { %v8089_v60 = vmul.u32.u64.low 3817748708, %v8053_v9  ;;  %v8090_v62 = vmul.u32.u64.high 3817748708, %v8053_v9, %v8089_v60  ;;  %v8194_v6 = vmul.u32.u64.low 3817748708, %v8174_v19  ;;  %v8195_v8 = vmul.u32.u64.high 3817748708, %v8174_v19, %v8194_v6 }
 0x1f5   : > { %vm4531_vm9 = vcmp.ne.s32.totalorder %v8085_v58, 0  ;;  %vm4567_vm11 = vcmp.lt.s32.totalorder %v8085_v58, 0  ;;  %v4639_v30 = vadd.s32 18, %v8085_v58  ;;  %v4266_v51 = vshrl.u32 %v8106_v14, 4 }
 0x1f6   : > { %vm8162_vm12 = vmand %vm4567_vm11, %vm4531_vm9  ;;  %v4233_v2 = vshrl.u32 %v8090_v62, 4  ;;  %v8226_v60 = vsel %vm4710_vm4, 1.0, %v9238_v12  ;;  %v4678_v62 = vsel %vm8202_vm6, %v4642_v61, %v4246_v52  ;;  %vm4535_vm9 = vcmp.ne.s32.totalorder %v8207_v41, 0 }
 0x1f7   : > { %v4675_v45 = vsel %vm8162_vm12, %v4639_v30, %v8085_v58  ;;  %v4267_v44 = vmul.u32 18, %v4266_v51  ;;  %vm8243_vm10 = vcmp.lt.s32.totalorder %v4673_v54, 16  ;;  %v4676_v14 = vsel %vm8214_vm8, %v4640_v43, %v4224_v34 }
 0x1f8   : > { %v4234_v0 = vmul.u32 18, %v4233_v2  ;;  %vm4711_vm7 = vcmp.lt.s32.totalorder %v4675_v45, 16  ;;  %vm4571_vm11 = vcmp.lt.s32.totalorder %v8207_v41, 0  ;;  %vm8253_vm12 = vcmp.lt.s32.totalorder %v4678_v62, 16 }
 0x1f9   : > { %v8251_v17 = vsub.s32 %v8083_v57, %v4267_v44  ;;  %v4301_v23 = vsub.s32 %v8096_v3, %v4300_v1  ;;  %v4310_v57 = vshrl.u32 %v8195_v8, 4  ;;  %vm8265_vm15 = vcmp.lt.s32.totalorder %v4676_v14, 16  ;;  %vm8271_vm0 = vmand %vm4571_vm11, %vm4535_vm9 }
 0x1fa   : > { %v8219_v58 = vsub.s32 %v8053_v9, %v4234_v0  ;;  %v8237_v9 = vsel %vm4711_vm7, 1.0, %v9238_v12  ;;  %vm4538_vm1 = vcmp.ne.s32.totalorder %v8241_v7, 0  ;;  %vm4574_vm2 = vcmp.lt.s32.totalorder %v8241_v7, 0 }
 0x1fb   : > { %vm4536_vm4 = vcmp.ne.s32.totalorder %v8251_v17, 0  ;;  %vm4572_vm5 = vcmp.lt.s32.totalorder %v8251_v17, 0  ;;  %v8285_v52 = vsub.s32 %v8109_v13, %v4278_v18  ;;  %v4343_v50 = vshrl.u32 %v8223_v59, 4  ;;  %vm8309_vm8 = vmand %vm4574_vm2, %vm4538_vm1 }
 0x1fc   : > { %vm4533_vm13 = vcmp.ne.s32.totalorder %v8219_v58, 0  ;;  %vm4569_vm14 = vcmp.lt.s32.totalorder %v8219_v58, 0  ;;  %v4641_v30 = vadd.s32 18, %v8219_v58  ;;  %vm4539_vm6 = vcmp.ne.s32.totalorder %v4301_v23, 0  ;;  %vm8319_vm9 = vmand %vm4572_vm5, %vm4536_vm4 }
 0x1fd   : > { %vm8278_vm3 = vmand %vm4569_vm14, %vm4533_vm13  ;;  %v8292_v5 = vmul.u32.u64.low 3817748708, %v8260_v46  ;;  %v8293_v35 = vmul.u32.u64.high 3817748708, %v8260_v46, %v8292_v5  ;;  %vm4575_vm7 = vcmp.lt.s32.totalorder %v4301_v23, 0  ;;  %v4334_v34 = vsub.s32 %v8130_v31, %v4333_v25 }
 0x1fe   : > { %v4311_v2 = vmul.u32 18, %v4310_v57  ;;  %v4679_v13 = vsel %vm8271_vm0, %v4643_v21, %v8207_v41  ;;  %v4677_v24 = vsel %vm8278_vm3, %v4641_v30, %v8219_v58  ;;  %v4646_v33 = vadd.s32 18, %v8241_v7  ;;  %vm8328_vm13 = vmand %vm4575_vm7, %vm4539_vm6 }
 0x1ff   : > { %v4644_v31 = vadd.s32 18, %v8251_v17  ;;  %v4647_v47 = vadd.s32 18, %v4301_v23  ;;  %vm4537_vm11 = vcmp.ne.s32.totalorder %v8285_v52, 0  ;;  %vm4573_vm14 = vcmp.lt.s32.totalorder %v8285_v52, 0 }
 0x200   : > { %v8325_v45 = vmul.u32.u64.low 3817748708, %v8288_v48  ;;  %v8326_v51 = vmul.u32.u64.high 3817748708, %v8288_v48, %v8325_v45  ;;  %v4344_v0 = vmul.u32 18, %v4343_v50  ;;  %vm4542_vm0 = vcmp.ne.s32.totalorder %v4334_v34, 0 }
 0x201   : > { %v8334_v27 = vmul.u32.u64.low 3817748708, %v8296_v63  ;;  %v8335_v55 = vmul.u32.u64.high 3817748708, %v8296_v63, %v8334_v27  ;;  %vm4578_vm1 = vcmp.lt.s32.totalorder %v4334_v34, 0  ;;  %v4312_v6 = vsub.s32 %v8174_v19, %v4311_v2 }
 0x202   : > { %v8339_v8 = vadd.s32 184, %v7965_v29  ;;  %v8344_v36 = vsel %vm8243_vm10, 1.0, %v9238_v12  ;;  %v8349_v40 = vsel %vm8253_vm12, 1.0, %v9238_v12  ;;  %v8354_v41 = vsel %vm8265_vm15, 1.0, %v9238_v12  ;;  %vm8369_vm10 = vmand %vm4573_vm14, %vm4537_vm11 }
 0x203   : > { %v4645_v19 = vadd.s32 18, %v8285_v52  ;;  %v4682_v42 = vsel %vm8309_vm8, %v4646_v33, %v8241_v7  ;;  %v4680_v43 = vsel %vm8319_vm9, %v4644_v31, %v8251_v17  ;;  %v4683_v44 = vsel %vm8328_vm13, %v4647_v47, %v4301_v23  ;;  %vm8383_vm2 = vmand %vm4578_vm1, %vm4542_vm0 }
 0x204   : > { %v4650_v54 = vadd.s32 18, %v4334_v34  ;;  %vm8373_vm12 = vcmp.lt.s32.totalorder %v4679_v13, 16  ;;  %vm8377_vm15 = vcmp.lt.s32.totalorder %v4677_v24, 16  ;;  %v4345_v59 = vsub.s32 %v8184_v11, %v4344_v0 }
 0x205   : > { %v4321_v62 = vshrl.u32 %v8293_v35, 4  ;;  %vm4540_vm3 = vcmp.ne.s32.totalorder %v4312_v6, 0  ;;  %vm4576_vm4 = vcmp.lt.s32.totalorder %v4312_v6, 0  ;;  %vm4718_vm5 = vcmp.lt.s32.totalorder %v4682_v42, 16 }
 0x206   : > { %v8390_v1 = vmul.u32.u64.low 3817748708, %v8339_v8  ;;  %v8391_v4 = vmul.u32.u64.high 3817748708, %v8339_v8, %v8390_v1  ;;  %vm8393_vm6 = vcmp.lt.s32.totalorder %v4680_v43, 16  ;;  %vm8397_vm7 = vcmp.lt.s32.totalorder %v4683_v44, 16  ;;  %vm8410_vm8 = vmand %vm4576_vm4, %vm4540_vm3 }
 0x207   : > { %v4681_v11 = vsel %vm8369_vm10, %v4645_v19, %v8285_v52  ;;  %v4686_v14 = vsel %vm8383_vm2, %v4650_v54, %v4334_v34  ;;  %v4648_v17 = vadd.s32 18, %v4312_v6  ;;  %v4376_v18 = vshrl.u32 %v8326_v51, 4 }
 0x208   : > { %v8408_v20 = vadd.s32 168, %v7965_v29  ;;  %vm4543_vm9 = vcmp.ne.s32.totalorder %v4345_v59, 0  ;;  %vm4579_vm11 = vcmp.lt.s32.totalorder %v4345_v59, 0  ;;  %v4322_v23 = vmul.u32 18, %v4321_v62 }
 0x209   : > { %v4354_v25 = vshrl.u32 %v8335_v55, 4  ;;  %v8418_v57 = vsel %vm8373_vm12, 1.0, %v9238_v12  ;;  %v8423_v28 = vsel %vm8377_vm15, 1.0, %v9238_v12  ;;  %v8426_v15 = vsel %vm4718_vm5, 1.0, %v9238_v12  ;;  %vm8444_vm0 = vmand %vm4579_vm11, %vm4543_vm9 }
 0x20a   : > { %v8429_v30 = vadd.s32 208, %v7965_v29  ;;  %v8434_v3 = vsel %vm8393_vm6, 1.0, %v9238_v12  ;;  %v8439_v52 = vsel %vm8397_vm7, 1.0, %v9238_v12  ;;  %vm4717_vm13 = vcmp.lt.s32.totalorder %v4681_v11, 16 }
 0x20b   : > { %v4651_v50 = vadd.s32 18, %v4345_v59  ;;  %vm4722_vm14 = vcmp.lt.s32.totalorder %v4686_v14, 16  ;;  %v4684_v5 = vsel %vm8410_vm8, %v4648_v17, %v4312_v6  ;;  %v4377_v34 = vmul.u32 18, %v4376_v18 }
 0x20c   : > { %v8449_v2 = vadd.s32 192, %v7965_v29  ;;  %v4323_v13 = vsub.s32 %v8260_v46, %v4322_v23  ;;  %v4355_v24 = vmul.u32 18, %v4354_v25  ;;  %v4387_v31 = vshrl.u32 %v8391_v4, 4 }
 0x20d   : > { %v8453_v16 = vmul.u32.u64.low 3817748708, %v8408_v20  ;;  %v8454_v33 = vmul.u32.u64.high 3817748708, %v8408_v20, %v8453_v16  ;;  %v8458_v37 = vmul.u32.u64.low 3817748708, %v8429_v30  ;;  %v8459_v47 = vmul.u32.u64.high 3817748708, %v8429_v30, %v8458_v37 }
 0x20e   : > { %v8462_v45 = vadd.s32 216, %v7965_v29  ;;  %v8465_v51 = vsel %vm4717_vm13, 1.0, %v9238_v12  ;;  %v8468_v61 = vsel %vm4722_vm14, 1.0, %v9238_v12  ;;  %v4687_v46 = vsel %vm8444_vm0, %v4651_v50, %v4345_v59 }
 0x20f   : > { %v8473_v0 = vadd.s32 200, %v7965_v29  ;;  %v8476_v27 = vsub.s32 %v8288_v48, %v4377_v34  ;;  %v8479_v55 = vmul.u32.u64.low 3817748708, %v8449_v2  ;;  %v8480_v6 = vmul.u32.u64.high 3817748708, %v8449_v2, %v8479_v55 }
 0x210   : > { %v8483_v19 = vadd.s32 240, %v7965_v29  ;;  %vm8485_vm1 = vcmp.lt.s32.totalorder %v4684_v5, 16  ;;  %vm4541_vm10 = vcmp.ne.s32.totalorder %v4323_v13, 0  ;;  %vm4577_vm12 = vcmp.lt.s32.totalorder %v4323_v13, 0 }
 0x211   : > { %v8490_v43 = vsub.s32 %v8296_v63, %v4355_v24  ;;  %vm8492_vm15 = vcmp.lt.s32.totalorder %v4687_v46, 16  ;;  %v4388_v48 = vmul.u32 18, %v4387_v31  ;;  %v4649_v58 = vadd.s32 18, %v4323_v13  ;;  %vm8520_vm3 = vmand %vm4577_vm12, %vm4541_vm10 }
 0x212   : > { %v8497_v49 = vmul.u32.u64.low 3817748708, %v8462_v45  ;;  %v8498_v54 = vmul.u32.u64.high 3817748708, %v8462_v45, %v8497_v49  ;;  %v8504_v53 = vmul.u32.u64.low 3817748708, %v8473_v0  ;;  %v8505_v59 = vmul.u32.u64.high 3817748708, %v8473_v0, %v8504_v53 }
 0x213   : > { %v8508_v63 = vadd.s32 248, %v7965_v29  ;;  %vm4546_vm2 = vcmp.ne.s32.totalorder %v8476_v27, 0  ;;  %v8512_v62 = vmul.u32.u64.low 3817748708, %v8483_v19  ;;  %v8513_v1 = vmul.u32.u64.high 3817748708, %v8483_v19, %v8512_v62 }
 0x214   : > { %v8516_v4 = vadd.s32 232, %v7965_v29  ;;  %vm4582_vm4 = vcmp.lt.s32.totalorder %v8476_v27, 0  ;;  %v4654_v10 = vadd.s32 18, %v8476_v27  ;;  %v4365_v11 = vshrl.u32 %v8454_v33, 4 }
 0x215   : > { %v8528_v14 = vadd.s32 272, %v7965_v29  ;;  %v8531_v17 = vsub.s32 %v8339_v8, %v4388_v48  ;;  %v4420_v18 = vshrl.u32 %v8459_v47, 4  ;;  %vm4544_vm5 = vcmp.ne.s32.totalorder %v8490_v43, 0  ;;  %vm8548_vm7 = vmand %vm4582_vm4, %vm4546_vm2 }
 0x216   : > { %v8535_v21 = vmul.u32.u64.low 3817748708, %v8501_v56  ;;  %v8536_v23 = vmul.u32.u64.high 3817748708, %v8501_v56, %v8535_v21  ;;  %vm4580_vm6 = vcmp.lt.s32.totalorder %v8490_v43, 0  ;;  %v4685_v5 = vsel %vm8520_vm3, %v4649_v58, %v4323_v13 }
 0x217   : > { %v8541_v25 = vmul.u32.u64.low 3817748708, %v8508_v63  ;;  %v8542_v50 = vmul.u32.u64.high 3817748708, %v8508_v63, %v8541_v25  ;;  %v4398_v35 = vshrl.u32 %v8480_v6, 4  ;;  %v4366_v16 = vmul.u32 18, %v4365_v11  ;;  %vm8584_vm13 = vmand %vm4580_vm6, %vm4544_vm5 }
 0x218   : > { %v8554_v34 = vmul.u32.u64.low 3817748708, %v8516_v4  ;;  %v8555_v24 = vmul.u32.u64.high 3817748708, %v8516_v4, %v8554_v34  ;;  %v8558_v33 = vmul.u32.u64.low 3817748708, %v8528_v14  ;;  %v8559_v31 = vmul.u32.u64.high 3817748708, %v8528_v14, %v8558_v33 }
 0x219   : > { %v8562_v37 = vadd.s32 256, %v7965_v29  ;;  %vm4547_vm8 = vcmp.ne.s32.totalorder %v8531_v17, 0  ;;  %vm4583_vm9 = vcmp.lt.s32.totalorder %v8531_v17, 0  ;;  %v4421_v13 = vmul.u32 18, %v4420_v18 }
 0x21a   : > { %v4431_v47 = vshrl.u32 %v8498_v54, 4  ;;  %v8570_v46 = vsel %vm8485_vm1, 1.0, %v9238_v12  ;;  %v4690_v55 = vsel %vm8548_vm7, %v4654_v10, %v8476_v27  ;;  %v8576_v6 = vadd.s32 18, %v8490_v43  ;;  %vm8601_vm14 = vmand %vm4583_vm9, %vm4547_vm8 }
 0x21b   : > { %v4409_v48 = vshrl.u32 %v8505_v59, 4  ;;  %vm4721_vm11 = vcmp.lt.s32.totalorder %v4685_v5, 16  ;;  %v8589_v42 = vadd.s32 18, %v8531_v17  ;;  %v4399_v27 = vmul.u32 18, %v4398_v35 }
 0x21c   : > { %v4464_v54 = vshrl.u32 %v8513_v1, 4  ;;  %v8595_v58 = vsel %vm8492_vm15, 1.0, %v9238_v12  ;;  %v8606_v59 = vsub.s32 %v8408_v20, %v4366_v16  ;;  %vm4726_vm0 = vcmp.lt.s32.totalorder %v4690_v55, 16 }
 0x21d   : > { %v8609_v62 = vmul.u32.u64.low 3817748708, %v8562_v37  ;;  %v8610_v1 = vmul.u32.u64.high 3817748708, %v8562_v37, %v8609_v62  ;;  %v8613_v44 = vsub.s32 %v8429_v30, %v4421_v13  ;;  %v4432_v7 = vmul.u32 18, %v4431_v47 }
 0x21e   : > { %v4442_v10 = vshrl.u32 %v8536_v23, 4  ;;  %v8617_v11 = vsel %vm4721_vm11, 1.0, %v9238_v12  ;;  %v4688_v20 = vsel %vm8584_vm13, %v8576_v6, %v8490_v43  ;;  %v4410_v18 = vmul.u32 18, %v4409_v48 }
 0x21f   : > { %v4475_v21 = vshrl.u32 %v8542_v50, 4  ;;  %v4691_v30 = vsel %vm8601_vm14, %v8589_v42, %v8531_v17  ;;  %v8636_v23 = vsub.s32 %v8449_v2, %v4399_v27  ;;  %v4465_v43 = vmul.u32 18, %v4464_v54 }
 0x220   : > { %v4453_v25 = vshrl.u32 %v8555_v24, 4  ;;  %v8641_v50 = vsel %vm4726_vm0, 1.0, %v9238_v12  ;;  %vm4545_vm1 = vcmp.ne.s32.totalorder %v8606_v59, 0  ;;  %vm4581_vm10 = vcmp.lt.s32.totalorder %v8606_v59, 0 }
 0x221   : > { %v4508_v5 = vshrl.u32 %v8559_v31, 4  ;;  %v8649_v2 = vadd.s32 18, %v8606_v59  ;;  %vm4550_vm12 = vcmp.ne.s32.totalorder %v8613_v44, 0  ;;  %v8653_v17 = vsub.s32 %v8462_v45, %v4432_v7 }
 0x222   : > { %v4443_v8 = vmul.u32 18, %v4442_v10 }
 0x223   : > { %7075 = shalt.err (!%p7072_p2)
}
 0x224   : > { %s7076_s27 = scalar_lea.hbm %s8629_s7, 2304  ;;  %s7080_s30 = scalar_lea.hbm %s9231_s4, 4608 }
 0x225   : > { %p7077_p13 = scmp.ne.s32.totalorder %s8629_s7, %s7076_s27  ;;  %p7081_p4 = scmp.lt.u32.totalorder %s8629_s7, %s9231_s4 }
 0x226   : > { %p7082_p5 = scmp.lt.u32.totalorder %s7080_s30, %s7076_s27  ;;  %p7084_p11 = scmp.lt.u32.totalorder %s7076_s27, %s8629_s7 }
 0x227   : > { %p7078_p6 = pnand %p7077_p13, %p9322_p0 }
 0x228   : > { %p7083_p8 = por %p7082_p5, %p7081_p4 }
 0x229   : > { %p7079_p10 = pneg %p7078_p6 }
 0x22a   : > { %p7085_p1 = por %p7084_p11, %p7083_p8 }
 0x22c   : > { %p7086_p3 = pnand %p7085_p1, %p7079_p10 }
 0x22e   : > { %7089 = shalt.err (!%p7086_p3)
}
 0x22f   : > { %s7203_s11 = smov 64   ;;  %s7204_s16 = smov 4   ;;  %vm8682_vm15 = vcmp.lt.s32.totalorder %v4688_v20, 16  ;;  %vm8686_vm2 = vcmp.lt.s32.totalorder %v4691_v30, 16  ;;  %vm4586_vm3 = vcmp.lt.s32.totalorder %v8613_v44, 0  ;;  %v8692_v34 = vsub.s32 %v8473_v0, %v4410_v18  ;;  %vm8711_vm6 = vmand %vm4581_vm10, %vm4545_vm1 }
 0x230   : > { %6822 = dma.vmem_to_hbm [thread:$0]  (%p9322_p0), %s8646_s26, 2304, %s8629_s7, %s4969_s8, %s7203_s11, %s7203_s11, %s7204_s16   ;;  %v4476_v24 = vmul.u32 18, %v4475_v21  ;;  %v8695_v16 = vadd.s32 280, %v7965_v29  ;;  %v4658_v33 = vadd.s32 18, %v8613_v44  ;;  %vm4548_vm4 = vcmp.ne.s32.totalorder %v8636_v23, 0  ;;  %vm8725_vm9 = vmand %vm4586_vm3, %vm4550_vm12 }
 0x231   : > { %v8700_v31 = vsub.s32 %v8483_v19, %v4465_v43  ;;  %v4454_v13 = vmul.u32 18, %v4453_v25  ;;  %vm4584_vm5 = vcmp.lt.s32.totalorder %v8636_v23, 0  ;;  %v4509_v47 = vmul.u32 18, %v4508_v5  ;;  %s9012_s8 = scalar_lea.vmem [#allocation9], %s6739_s19  ;;  %s4973_s19 = sand.u32 1, %s7263_s25  }
 0x232   : > { %v4486_v55 = vshrl.u32 %v8610_v1, 4  ;;  %v8705_v0 = vadd.s32 264, %v7965_v29  ;;  %v4656_v19 = vadd.s32 18, %v8636_v23  ;;  %vm4551_vm7 = vcmp.ne.s32.totalorder %v8653_v17, 0  ;;  %vm8747_vm1 = vmand %vm4584_vm5, %vm4548_vm4  ;;  %s5008_s14 = sshll.u32 %s9012_s8, 4  ;;  %s9150_s17 = scalar_lea.hbm %s9232_s5, %s5453_s18  ;;  %s9152_s14 = int_to_ptr.vmem [resolvable:$true] %s5008_s14 }
 0x233   : > { %vm4587_vm8 = vcmp.lt.s32.totalorder %v8653_v17, 0  ;;  %v8719_v48 = vsub.s32 %v8501_v56, %v4443_v8  ;;  %vm4549_vm11 = vcmp.ne.s32.totalorder %v8692_v34, 0  ;;  %v8731_v49 = vsub.s32 %v8508_v63, %v4476_v24  ;;  %v8889_v63 = vld [vmem:[%s9230_s3 + $0x1] ss:$0 sm:$0xff]  ;;  %s9155_s30 = scalar_lea.sflag [#allocation10], %s4973_s19  ;;  %s7090_s15 = scalar_lea.vmem %s9152_s14, 2304 }
 0x234   : > { %v8734_v42 = vmul.u32.u64.low 3817748708, %v8695_v16  ;;  %v8735_v27 = vmul.u32.u64.high 3817748708, %v8695_v16, %v8734_v42  ;;  %vm4585_vm13 = vcmp.lt.s32.totalorder %v8692_v34, 0  ;;  %vm4554_vm14 = vcmp.ne.s32.totalorder %v8700_v31, 0  ;;  %vm8769_vm10 = vmand %vm4587_vm8, %vm4551_vm7  ;;  %p7091_p7 = scmp.ne.s32.totalorder %s9152_s14, %s7090_s15  ;;  %s7205_s20 = smov [#allocation9]  }
 0x235   : > { %vm4590_vm0 = vcmp.lt.s32.totalorder %v8700_v31, 0  ;;  %v8741_v56 = vsub.s32 %v8516_v4, %v4454_v13  ;;  %v8752_v54 = vsub.s32 %v8528_v14, %v4509_v47  ;;  %v4487_v53 = vmul.u32 18, %v4486_v55  ;;  %vm8778_vm4 = vmand %vm4585_vm13, %vm4549_vm11  ;;  %s7094_s18 = sshll.u32 %s7205_s20, 4  ;;  %s7095_s18 = int_to_ptr.vmem [resolvable:$false] %s7094_s18 }
 0x236   : > { %v8755_v62 = vmul.u32.u64.low 3817748708, %v8705_v0  ;;  %v8756_v1 = vmul.u32.u64.high 3817748708, %v8705_v0, %v8755_v62  ;;  %v4689_v4 = vsel %vm8711_vm6, %v8649_v2, %v8606_v59  ;;  %v4694_v7 = vsel %vm8725_vm9, %v4658_v33, %v8613_v44  ;;  %vm8792_vm7 = vmand %vm4590_vm0, %vm4554_vm14  ;;  %p7092_p9 = pnand %p7091_p7, %p9322_p0  ;;  %s7096_s7 = scalar_lea.vmem %s7095_s18, 4608 }
 0x237   : > { %vm4552_vm12 = vcmp.ne.s32.totalorder %v8719_v48, 0  ;;  %vm4588_vm3 = vcmp.lt.s32.totalorder %v8719_v48, 0  ;;  %v4659_v10 = vadd.s32 18, %v8653_v17  ;;  %v4657_v44 = vadd.s32 18, %v8692_v34  ;;  %p7097_p2 = scmp.lt.s32.totalorder %s9152_s14, %s7095_s18  ;;  %p7098_p13 = scmp.lt.s32.totalorder %s7096_s7, %s7090_s15 }
 0x238   : > { %vm4555_vm5 = vcmp.ne.s32.totalorder %v8731_v49, 0  ;;  %vm4591_vm6 = vcmp.lt.s32.totalorder %v8731_v49, 0  ;;  %v4692_v20 = vsel %vm8747_vm1, %v4656_v19, %v8636_v23  ;;  %v4662_v21 = vadd.s32 18, %v8700_v31  ;;  %vm8799_vm11 = vmand %vm4588_vm3, %vm4552_vm12  ;;  %p7093_p12 = pneg %p7092_p9 }
 0x239   : > { %vm4553_vm8 = vcmp.ne.s32.totalorder %v8741_v56, 0  ;;  %vm4589_vm9 = vcmp.lt.s32.totalorder %v8741_v56, 0  ;;  %v4660_v23 = vadd.s32 18, %v8719_v48  ;;  %vm4558_vm13 = vcmp.ne.s32.totalorder %v8752_v54, 0  ;;  %vm8823_vm14 = vmand %vm4591_vm6, %vm4555_vm5  ;;  %p7099_p6 = por %p7098_p13, %p7097_p2 }
 0x23a   : > { %vm4594_vm1 = vcmp.lt.s32.totalorder %v8752_v54, 0  ;;  %v8807_v43 = vsub.s32 %v8562_v37, %v4487_v53  ;;  %v8812_v25 = vsel %vm8682_vm15, 1.0, %v9238_v12  ;;  %v8817_v5 = vsel %vm8686_vm2, 1.0, %v9238_v12  ;;  %vm8837_vm15 = vmand %vm4589_vm9, %vm4553_vm8 }
 0x23b   : > { %v4663_v37 = vadd.s32 18, %v8731_v49  ;;  %v4661_v8 = vadd.s32 18, %v8741_v56  ;;  %v4695_v45 = vsel %vm8769_vm10, %v4659_v10, %v8653_v17  ;;  %v4693_v35 = vsel %vm8778_vm4, %v4657_v44, %v8692_v34  ;;  %vm8862_vm12 = vmand %vm4594_vm1, %vm4558_vm13  ;;  %p7100_p10 = pnand %p7099_p6, %p7093_p12 }
 0x23c   : > { %v4666_v33 = vadd.s32 18, %v8752_v54  ;;  %v4519_v13 = vshrl.u32 %v8735_v27, 4  ;;  %vm8843_vm2 = vcmp.lt.s32.totalorder %v4689_v4, 16  ;;  %vm8847_vm0 = vcmp.lt.s32.totalorder %v4694_v7, 16 }
 0x23d   : > { %vm8851_vm10 = vcmp.lt.s32.totalorder %v4692_v20, 16  ;;  %v4698_v55 = vsel %vm8792_vm7, %v4662_v21, %v8700_v31  ;;  %v4696_v19 = vsel %vm8799_vm11, %v4660_v23, %v8719_v48  ;;  %vm4556_vm3 = vcmp.ne.s32.totalorder %v8807_v43, 0 }
 0x23e   : > { %vm4592_vm4 = vcmp.lt.s32.totalorder %v8807_v43, 0  ;;  %v4497_v29 = vshrl.u32 %v8756_v1, 4  ;;  %vm8872_vm5 = vcmp.lt.s32.totalorder %v4695_v45, 16  ;;  %vm8876_vm6 = vcmp.lt.s32.totalorder %v4693_v35, 16 }
 0x23f   : > { %v4699_v27 = vsel %vm8823_vm14, %v4663_v37, %v8731_v49  ;;  %v4697_v48 = vsel %vm8837_vm15, %v4661_v8, %v8741_v56  ;;  %vm8891_vm7 = vcmp.lt.s32.totalorder %v4698_v55, 16  ;;  %v4702_v62 = vsel %vm8862_vm12, %v4666_v33, %v8752_v54  ;;  %vm8922_vm9 = vmand %vm4592_vm4, %vm4556_vm3 }
 0x240   : > { %v4664_v1 = vadd.s32 18, %v8807_v43  ;;  %v4520_v49 = vmul.u32 18, %v4519_v13  ;;  %v8902_v56 = vsel %vm8843_vm2, 1.0, %v9238_v12  ;;  %v8907_v7 = vsel %vm8847_vm0, 1.0, %v9238_v12 }
 0x241   : > { %v8912_v14 = vsel %vm8851_vm10, 1.0, %v9238_v12  ;;  %vm8914_vm8 = vcmp.lt.s32.totalorder %v4696_v19, 16  ;;  %v8929_v20 = vsel %vm8872_vm5, 1.0, %v9238_v12  ;;  %vm8931_vm11 = vcmp.lt.s32.totalorder %v4699_v27, 16 }
 0x242   : > { %vm8935_vm13 = vcmp.lt.s32.totalorder %v4697_v48, 16  ;;  %v4498_v30 = vmul.u32 18, %v4497_v29  ;;  %v8942_v8 = vsel %vm8876_vm6, 1.0, %v9238_v12  ;;  %v8947_v45 = vsel %vm8891_vm7, 1.0, %v9238_v12 }
 0x243   : > { %vm4738_vm1 = vcmp.lt.s32.totalorder %v4702_v62, 16  ;;  %v8952_v13 = vsel %vm8914_vm8, 1.0, %v9238_v12  ;;  %v4700_v47 = vsel %vm8922_vm9, %v4664_v1, %v8807_v43  ;;  %v8958_v17 = vsub.s32 %v8695_v16, %v4520_v49 }
 0x244   : > { %v8964_v19 = vsel %vm8931_vm11, 1.0, %v9238_v12  ;;  %v8969_v29 = vsel %vm8935_vm13, 1.0, %v9238_v12  ;;  %v8973_v16 = vsel %vm4738_vm1, 1.0, %v9238_v12  ;;  %v8976_v42 = vsub.s32 %v8705_v0, %v4498_v30 }
 0x245   : > { %9367 = vst [vmem:[#allocation16_spill] sm:$0xff] %v8973_v16  ;;  %vm8979_vm15 = vcmp.lt.s32.totalorder %v4700_v47, 16  ;;  %vm4559_vm0 = vcmp.ne.s32.totalorder %v8958_v17, 0  ;;  %vm4595_vm12 = vcmp.lt.s32.totalorder %v8958_v17, 0  ;;  %v8987_v18 = vadd.s32 18, %v8958_v17 }
 0x246   : > { %vm9006_vm4 = vmand %vm4595_vm12, %vm4559_vm0 }
 0x284   : > { %v6155_v4 = vpop.f32.mrb[36].mxu0 }
 0x285   : > { %v6415_v59 = vpop.f32.mrb[0].mxu1  ;;  %v1748_v44 = vpop.f32.mrb[37].mxu0 }
 0x286   : > { %v6449_v23 = vadd.f32 %v6415_v59, %v6155_v4  ;;  %v3403_v2 = vpop.f32.mrb[1].mxu1  ;;  %v6156_v37 = vpop.f32.mrb[38].mxu0 }
 0x287   : > { %v6450_v35 = vadd.f32 %v3403_v2, %v1748_v44  ;;  %v6416_v24 = vpop.f32.mrb[2].mxu1  ;;  %v1751_v33 = vpop.f32.mrb[39].mxu0 }
 0x288   : > { %v3589_v34 = vadd.f32 %v6449_v23, %v8889_v63  ;;  %v6451_v55 = vadd.f32 %v6416_v24, %v6156_v37  ;;  %v3406_v6 = vpop.f32.mrb[3].mxu1 }
 0x289   : > { %v3587_v31 = vadd.f32 %v6450_v35, %v8889_v63  ;;  %v6452_v43 = vadd.f32 %v3406_v6, %v1751_v33  ;;  %v8993_v35 = vsel %vm8979_vm15, 1.0, %v9238_v12  ;;  %v8997_v6 = vadd.s32 18, %v8976_v42 }
 0x28a   : > { %vm3625_vm14 = vcmp.gt.f32.partialorder %v3589_v34, 0.0  ;;  %v3661_v27 = vmul.f32 0.01, %v3589_v34  ;;  %v3590_v48 = vadd.f32 %v6451_v55, %v8889_v63  ;;  %9370 = vst [vmem:[#allocation17_spill] sm:$0xff] %v8993_v35 }
 0x28b   : > { %vm3623_vm2 = vcmp.gt.f32.partialorder %v3587_v31, 0.0  ;;  %v3659_v62 = vmul.f32 0.01, %v3587_v31  ;;  %v3588_v1 = vadd.f32 %v6452_v43, %v8889_v63 }
 0x28c   : > { %v3697_v49 = vsel %vm3625_vm14, %v3589_v34, %v3661_v27  ;;  %vm3626_vm10 = vcmp.gt.f32.partialorder %v3590_v48, 0.0  ;;  %v3662_v4 = vmul.f32 0.01, %v3590_v48  ;;  %v6159_v54 = vpop.f32.mrb[40].mxu0 }
 0x28d   : > { %v3695_v0 = vsel %vm3623_vm2, %v3587_v31, %v3659_v62  ;;  %vm3624_vm3 = vcmp.gt.f32.partialorder %v3588_v1, 0.0  ;;  %v3660_v10 = vmul.f32 0.01, %v3588_v1  ;;  %v6419_v59 = vpop.f32.mrb[4].mxu1  ;;  %v1764_v44 = vpop.f32.mrb[41].mxu0  ;;  %v4814_v24 = vmul.f32 %v8056_v26, %v3697_v49 }
 0x28e   : > { %v4812_v21 = vmul.f32 %v8135_v38, %v3695_v0  ;;  %v3698_v30 = vsel %vm3626_vm10, %v3590_v48, %v3662_v4  ;;  %v6453_v23 = vadd.f32 %v6419_v59, %v6159_v54  ;;  %v3419_v2 = vpop.f32.mrb[5].mxu1  ;;  %v6160_v37 = vpop.f32.mrb[42].mxu0 }
 0x28f   : > { %v5553_v33 = vpack.c.bf16 %v3698_v30, %v3697_v49  ;;  %v3696_v47 = vsel %vm3624_vm3, %v3588_v1, %v3660_v10  ;;  %v6420_v34 = vpop.f32.mrb[6].mxu1  ;;  %v1767_v55 = vpop.f32.mrb[43].mxu0  ;;  %v4815_v38 = vmul.f32 %v8140_v22, %v3698_v30  ;;  %v6454_v22 = vadd.f32 %v3419_v2, %v1764_v44 }
 0x290   : > { %v5548_v31 = vpack.c.bf16 %v3696_v47, %v3695_v0  ;;  %v4813_v43 = vmul.f32 %v8145_v39, %v3696_v47  ;;  %v3593_v27 = vadd.f32 %v6453_v23, %v8889_v63  ;;  %v3422_v48 = vpop.f32.mrb[7].mxu1  ;;  %v4890_v53 = vmul.f32 %v4812_v21, %v3695_v0 }
 0x291   : > { %5652 = vst [vmem:[%s9012_s8 + $0x8] sm:$0xff] %v5553_v33   ;;  %v6455_v39 = vadd.f32 %v6420_v34, %v6160_v37  ;;  %v6456_v62 = vadd.f32 %v3422_v48, %v1767_v55  ;;  %v3591_v10 = vadd.f32 %v6454_v22, %v8889_v63  ;;  %v4892_v33 = vmul.f32 %v4814_v24, %v3697_v49 }
 0x292   : > { %5549 = vst [vmem:[%s9012_s8] sm:$0xff] %v5548_v31   ;;  %v4848_v1 = vadd.f32 %v4813_v43, %v4812_v21  ;;  %v4891_v4 = vmul.f32 %v4813_v43, %v3696_v47  ;;  %vm3629_vm5 = vcmp.gt.f32.partialorder %v3593_v27, 0.0  ;;  %v3665_v54 = vmul.f32 0.01, %v3593_v27 }
 0x293   : > { %v3594_v59 = vadd.f32 %v6455_v39, %v8889_v63  ;;  %v3592_v0 = vadd.f32 %v6456_v62, %v8889_v63  ;;  %v4893_v21 = vmul.f32 %v4815_v38, %v3698_v30  ;;  %vm3627_vm6 = vcmp.gt.f32.partialorder %v3591_v10, 0.0 }
 0x294   : > { %v4849_v44 = vadd.f32 %v4848_v1, %v4814_v24  ;;  %v4926_v2 = vadd.f32 %v4891_v4, %v4890_v53  ;;  %v3701_v37 = vsel %vm3629_vm5, %v3593_v27, %v3665_v54  ;;  %v6163_v34 = vpop.f32.mrb[44].mxu0  ;;  %v3663_v47 = vmul.f32 0.01, %v3591_v10 }
 0x295   : > { %vm3630_vm7 = vcmp.gt.f32.partialorder %v3594_v59, 0.0  ;;  %v6423_v55 = vpop.f32.mrb[8].mxu1  ;;  %v1780_v31 = vpop.f32.mrb[45].mxu0  ;;  %v3666_v22 = vmul.f32 0.01, %v3594_v59  ;;  %vm3628_vm8 = vcmp.gt.f32.partialorder %v3592_v0, 0.0  ;;  %v4818_v12 = vmul.f32 %v8226_v60, %v3701_v37 }
 0x296   : > { %v4927_v43 = vadd.f32 %v4926_v2, %v4892_v33  ;;  %v4850_v48 = vadd.f32 %v4849_v44, %v4815_v38  ;;  %v3435_v39 = vpop.f32.mrb[9].mxu1  ;;  %v6164_v62 = vpop.f32.mrb[46].mxu0  ;;  %v3699_v23 = vsel %vm3627_vm6, %v3591_v10, %v3663_v47  ;;  %v3664_v49 = vmul.f32 0.01, %v3592_v0 }
 0x297   : > { %v6457_v24 = vadd.f32 %v6423_v55, %v6163_v34  ;;  %v6424_v53 = vpop.f32.mrb[10].mxu1  ;;  %v1783_v27 = vpop.f32.mrb[47].mxu0  ;;  %v4816_v30 = vmul.f32 %v8234_v32, %v3699_v23  ;;  %v3702_v4 = vsel %vm3630_vm7, %v3594_v59, %v3666_v22  ;;  %v6458_v54 = vadd.f32 %v3435_v39, %v1780_v31 }
 0x298   : > { %v4928_v1 = vadd.f32 %v4927_v43, %v4893_v21  ;;  %v3438_v38 = vpop.f32.mrb[11].mxu1  ;;  %v5563_v33 = vpack.c.bf16 %v3702_v4, %v3701_v37  ;;  %v4819_v44 = vmul.f32 %v8237_v9, %v3702_v4  ;;  %v3700_v2 = vsel %vm3628_vm8, %v3592_v0, %v3664_v49 }
 0x299   : > { %v3597_v60 = vadd.f32 %v6457_v24, %v8889_v63  ;;  %v4851_v10 = vadd.f32 %v4850_v48, %v4816_v30  ;;  %v4894_v34 = vmul.f32 %v4816_v30, %v3699_v23  ;;  %v5558_v47 = vpack.c.bf16 %v3700_v2, %v3699_v23 }
 0x29a   : > { %v4817_v55 = vmul.f32 %v8344_v36, %v3700_v2  ;;  %v4896_v16 = vmul.f32 %v4818_v12, %v3701_v37  ;;  %5654 = vst [vmem:[%s9012_s8 + $0x18] sm:$0xff] %v5563_v33   ;;  %v3595_v59 = vadd.f32 %v6458_v54, %v8889_v63  ;;  %v6459_v9 = vadd.f32 %v6424_v53, %v6164_v62 }
 0x29b   : > { %vm3633_vm9 = vcmp.gt.f32.partialorder %v3597_v60, 0.0  ;;  %v3669_v32 = vmul.f32 0.01, %v3597_v60  ;;  %v4929_v21 = vadd.f32 %v4928_v1, %v4894_v34  ;;  %5653 = vst [vmem:[%s9012_s8 + $0x10] sm:$0xff] %v5558_v47   ;;  %v6460_v48 = vadd.f32 %v3438_v38, %v1783_v27 }
 0x29c   : > { %v4852_v31 = vadd.f32 %v4851_v10, %v4817_v55  ;;  %v4895_v43 = vmul.f32 %v4817_v55, %v3700_v2  ;;  %v6167_v22 = vpop.f32.mrb[48].mxu0  ;;  %vm3631_vm11 = vcmp.gt.f32.partialorder %v3595_v59, 0.0  ;;  %v3667_v39 = vmul.f32 0.01, %v3595_v59 }
 0x29d   : > { %v3705_v0 = vsel %vm3633_vm9, %v3597_v60, %v3669_v32  ;;  %v6427_v49 = vpop.f32.mrb[12].mxu1  ;;  %v1796_v23 = vpop.f32.mrb[49].mxu0  ;;  %v4897_v24 = vmul.f32 %v4819_v44, %v3702_v4  ;;  %v3598_v30 = vadd.f32 %v6459_v9, %v8889_v63  ;;  %v3596_v1 = vadd.f32 %v6460_v48, %v8889_v63 }
 0x29e   : > { %v4853_v36 = vadd.f32 %v4852_v31, %v4818_v12  ;;  %v4930_v37 = vadd.f32 %v4929_v21, %v4895_v43  ;;  %v3451_v33 = vpop.f32.mrb[13].mxu1  ;;  %v6168_v35 = vpop.f32.mrb[50].mxu0  ;;  %v3703_v54 = vsel %vm3631_vm11, %v3595_v59, %v3667_v39  ;;  %v6461_v10 = vadd.f32 %v6427_v49, %v6167_v22 }
 0x29f   : > { %v6462_v2 = vadd.f32 %v3451_v33, %v1796_v23  ;;  %v6428_v62 = vpop.f32.mrb[14].mxu1  ;;  %v1799_v53 = vpop.f32.mrb[51].mxu0  ;;  %v4822_v34 = vmul.f32 %v8349_v40, %v3705_v0  ;;  %v4820_v27 = vmul.f32 %v8354_v41, %v3703_v54  ;;  %vm3634_vm13 = vcmp.gt.f32.partialorder %v3598_v30, 0.0 }
 0x2a0   : > { %v4931_v60 = vadd.f32 %v4930_v37, %v4896_v16  ;;  %v4854_v38 = vadd.f32 %v4853_v36, %v4819_v44  ;;  %v3454_v4 = vpop.f32.mrb[15].mxu1  ;;  %v3670_v12 = vmul.f32 0.01, %v3598_v30  ;;  %vm3632_vm1 = vcmp.gt.f32.partialorder %v3596_v1, 0.0 }
 0x2a1   : > { %v3668_v47 = vmul.f32 0.01, %v3596_v1  ;;  %v4898_v32 = vmul.f32 %v4820_v27, %v3703_v54  ;;  %v3601_v21 = vadd.f32 %v6461_v10, %v8889_v63  ;;  %v3599_v16 = vadd.f32 %v6462_v2, %v8889_v63 }
 0x2a2   : > { %v4855_v55 = vadd.f32 %v4854_v38, %v4820_v27  ;;  %v4932_v59 = vadd.f32 %v4931_v60, %v4897_v24  ;;  %v3706_v31 = vsel %vm3634_vm13, %v3598_v30, %v3670_v12  ;;  %v6463_v40 = vadd.f32 %v6428_v62, %v6168_v35 }
 0x2a3   : > { %v3704_v43 = vsel %vm3632_vm1, %v3596_v1, %v3668_v47  ;;  %v5573_v41 = vpack.c.bf16 %v3706_v31, %v3705_v0  ;;  %v4823_v44 = vmul.f32 %v8418_v57, %v3706_v31  ;;  %vm3637_vm14 = vcmp.gt.f32.partialorder %v3601_v21, 0.0 }
 0x2a4   : > { %v4933_v9 = vadd.f32 %v4932_v59, %v4898_v32  ;;  %v5568_v22 = vpack.c.bf16 %v3704_v43, %v3703_v54  ;;  %v6171_v39 = vpop.f32.mrb[52].mxu0  ;;  %v4821_v48 = vmul.f32 %v8423_v28, %v3704_v43  ;;  %v3673_v49 = vmul.f32 0.01, %v3601_v21 }
 0x2a5   : > { %vm3635_vm15 = vcmp.gt.f32.partialorder %v3599_v16, 0.0  ;;  %v6431_v23 = vpop.f32.mrb[16].mxu1  ;;  %v1812_v24 = vpop.f32.mrb[53].mxu0  ;;  %v4900_v36 = vmul.f32 %v4822_v34, %v3705_v0  ;;  %5656 = vst [vmem:[%s9012_s8 + $0x28] sm:$0xff] %v5573_v41   ;;  %v3671_v37 = vmul.f32 0.01, %v3599_v16  ;;  %v3602_v30 = vadd.f32 %v6463_v40, %v8889_v63 }
 0x2a6   : > { %5655 = vst [vmem:[%s9012_s8 + $0x20] sm:$0xff] %v5568_v22   ;;  %v6464_v35 = vadd.f32 %v3454_v4, %v1799_v53  ;;  %v3467_v33 = vpop.f32.mrb[17].mxu1  ;;  %v6172_v1 = vpop.f32.mrb[54].mxu0  ;;  %v4856_v10 = vadd.f32 %v4855_v55, %v4821_v48  ;;  %v4899_v57 = vmul.f32 %v4821_v48, %v3704_v43  ;;  %v3709_v54 = vsel %vm3637_vm14, %v3601_v21, %v3673_v49 }
 0x2a7   : > { %v6465_v2 = vadd.f32 %v6431_v23, %v6171_v39  ;;  %v6432_v62 = vpop.f32.mrb[18].mxu1  ;;  %v1815_v28 = vpop.f32.mrb[55].mxu0  ;;  %v4901_v60 = vmul.f32 %v4823_v44, %v3706_v31  ;;  %v3707_v27 = vsel %vm3635_vm15, %v3599_v16, %v3671_v37  ;;  %vm3638_vm2 = vcmp.gt.f32.partialorder %v3602_v30, 0.0 }
 0x2a8   : > { %v3674_v38 = vmul.f32 0.01, %v3602_v30  ;;  %v3470_v0 = vpop.f32.mrb[19].mxu1  ;;  %v4857_v12 = vadd.f32 %v4856_v10, %v4822_v34  ;;  %v4934_v47 = vadd.f32 %v4933_v9, %v4899_v57  ;;  %v4824_v32 = vmul.f32 %v8434_v3, %v3707_v27 }
 0x2a9   : > { %v3600_v53 = vadd.f32 %v6464_v35, %v8889_v63  ;;  %v4826_v4 = vmul.f32 %v8426_v15, %v3709_v54  ;;  %v3605_v59 = vadd.f32 %v6465_v2, %v8889_v63  ;;  %v6466_v21 = vadd.f32 %v3467_v33, %v1812_v24 }
 0x2aa   : > { %v3710_v55 = vsel %vm3638_vm2, %v3602_v30, %v3674_v38  ;;  %v4935_v43 = vadd.f32 %v4934_v47, %v4900_v36  ;;  %v4858_v31 = vadd.f32 %v4857_v12, %v4823_v44  ;;  %v4902_v40 = vmul.f32 %v4824_v32, %v3707_v27 }
 0x2ab   : > { %v5583_v16 = vpack.c.bf16 %v3710_v55, %v3709_v54  ;;  %v4827_v41 = vmul.f32 %v8439_v52, %v3710_v55  ;;  %vm3636_vm0 = vcmp.gt.f32.partialorder %v3600_v53, 0.0  ;;  %v3672_v34 = vmul.f32 0.01, %v3600_v53 }
 0x2ac   : > { %vm3641_vm10 = vcmp.gt.f32.partialorder %v3605_v59, 0.0  ;;  %v6175_v9 = vpop.f32.mrb[56].mxu0  ;;  %v4859_v3 = vadd.f32 %v4858_v31, %v4824_v32  ;;  %v4936_v22 = vadd.f32 %v4935_v43, %v4901_v60  ;;  %v3677_v39 = vmul.f32 0.01, %v3605_v59 }
 0x2ad   : > { %5658 = vst [vmem:[%s9012_s8 + $0x38] sm:$0xff] %v5583_v16   ;;  %v3603_v15 = vadd.f32 %v6466_v21, %v8889_v63  ;;  %v6435_v48 = vpop.f32.mrb[20].mxu1  ;;  %v1828_v49 = vpop.f32.mrb[57].mxu0  ;;  %v4904_v23 = vmul.f32 %v4826_v4, %v3709_v54  ;;  %v3708_v24 = vsel %vm3636_vm0, %v3600_v53, %v3672_v34  ;;  %v6467_v44 = vadd.f32 %v6432_v62, %v6172_v1 }
 0x2ae   : > { %v6468_v36 = vadd.f32 %v3470_v0, %v1815_v28  ;;  %v3483_v37 = vpop.f32.mrb[21].mxu1  ;;  %v6176_v30 = vpop.f32.mrb[58].mxu0  ;;  %v4937_v52 = vadd.f32 %v4936_v22, %v4902_v40  ;;  %v5578_v35 = vpack.c.bf16 %v3708_v24, %v3707_v27  ;;  %v4825_v33 = vmul.f32 %v8465_v51, %v3708_v24 }
 0x2af   : > { %v3713_v10 = vsel %vm3641_vm10, %v3605_v59, %v3677_v39  ;;  %v6436_v57 = vpop.f32.mrb[22].mxu1  ;;  %v1831_v2 = vpop.f32.mrb[59].mxu0  ;;  %v4905_v60 = vmul.f32 %v4827_v41, %v3710_v55  ;;  %vm3639_vm12 = vcmp.gt.f32.partialorder %v3603_v15, 0.0  ;;  %v3675_v38 = vmul.f32 0.01, %v3603_v15 }
 0x2b0   : > { %v3606_v12 = vadd.f32 %v6467_v44, %v8889_v63  ;;  %v3486_v54 = vpop.f32.mrb[23].mxu1  ;;  %5657 = vst [vmem:[%s9012_s8 + $0x30] sm:$0xff] %v5578_v35   ;;  %v4860_v47 = vadd.f32 %v4859_v3, %v4825_v33  ;;  %v4903_v1 = vmul.f32 %v4825_v33, %v3708_v24  ;;  %v3604_v62 = vadd.f32 %v6468_v36, %v8889_v63 }
 0x2b1   : > { %v6469_v28 = vadd.f32 %v6435_v48, %v6175_v9  ;;  %v4830_v27 = vmul.f32 %v8468_v61, %v3713_v10  ;;  %v3711_v0 = vsel %vm3639_vm12, %v3603_v15, %v3675_v38  ;;  %v6470_v31 = vadd.f32 %v3483_v37, %v1828_v49 }
 0x2b2   : > { %vm3642_vm3 = vcmp.gt.f32.partialorder %v3606_v12, 0.0  ;;  %v3678_v51 = vmul.f32 0.01, %v3606_v12  ;;  %v4861_v32 = vadd.f32 %v4860_v47, %v4826_v4  ;;  %v4938_v53 = vadd.f32 %v4937_v52, %v4903_v1 }
 0x2b3   : > { %v4828_v55 = vmul.f32 %v8570_v46, %v3711_v0  ;;  %vm3640_vm5 = vcmp.gt.f32.partialorder %v3604_v62, 0.0  ;;  %v3676_v21 = vmul.f32 0.01, %v3604_v62  ;;  %v3609_v43 = vadd.f32 %v6469_v28, %v8889_v63 }
 0x2b4   : > { %v3714_v59 = vsel %vm3642_vm3, %v3606_v12, %v3678_v51  ;;  %v6179_v40 = vpop.f32.mrb[60].mxu0  ;;  %v4939_v16 = vadd.f32 %v4938_v53, %v4904_v23  ;;  %v4862_v34 = vadd.f32 %v4861_v32, %v4827_v41  ;;  %v4908_v37 = vmul.f32 %v4830_v27, %v3713_v10 }
 0x2b5   : > { %v4906_v9 = vmul.f32 %v4828_v55, %v3711_v0  ;;  %v5593_v3 = vpack.c.bf16 %v3714_v59, %v3713_v10  ;;  %v6439_v61 = vpop.f32.mrb[24].mxu1  ;;  %v1844_v22 = vpop.f32.mrb[61].mxu0  ;;  %v4831_v39 = vmul.f32 %v8595_v58, %v3714_v59  ;;  %v3712_v4 = vsel %vm3640_vm5, %v3604_v62, %v3676_v21 }
 0x2b6   : > { %vm3645_vm6 = vcmp.gt.f32.partialorder %v3609_v43, 0.0  ;;  %v3681_v15 = vmul.f32 0.01, %v3609_v43  ;;  %v3499_v46 = vpop.f32.mrb[25].mxu1  ;;  %v9061_v48 = vpop.f32.mrb[62].mxu0  ;;  %v4863_v24 = vadd.f32 %v4862_v34, %v4828_v55  ;;  %v4940_v44 = vadd.f32 %v4939_v16, %v4905_v60 }
 0x2b7   : > { %5660 = vst [vmem:[%s9012_s8 + $0x48] sm:$0xff] %v5593_v3   ;;  %v5588_v49 = vpack.c.bf16 %v3712_v4, %v3711_v0  ;;  %v4829_v23 = vmul.f32 %v8617_v11, %v3712_v4  ;;  %v6440_v41 = vpop.f32.mrb[26].mxu1  ;;  %v1847_v36 = vpop.f32.mrb[63].mxu0  ;;  %v3607_v35 = vadd.f32 %v6470_v31, %v8889_v63  ;;  %v6471_v58 = vadd.f32 %v6436_v57, %v6176_v30 }
 0x2b8   : > { %v3717_v52 = vsel %vm3645_vm6, %v3609_v43, %v3681_v15  ;;  %v3502_v33 = vpop.f32.mrb[27].mxu1  ;;  %v4941_v38 = vadd.f32 %v4940_v44, %v4906_v9  ;;  %v4909_v12 = vmul.f32 %v4831_v39, %v3714_v59  ;;  %v6472_v28 = vadd.f32 %v3486_v54, %v1831_v2 }
 0x2b9   : > { %5659 = vst [vmem:[%s9012_s8 + $0x40] sm:$0xff] %v5588_v49   ;;  %v4864_v47 = vadd.f32 %v4863_v24, %v4829_v23  ;;  %v4907_v1 = vmul.f32 %v4829_v23, %v3712_v4  ;;  %vm3643_vm7 = vcmp.gt.f32.partialorder %v3607_v35, 0.0  ;;  %v3679_v62 = vmul.f32 0.01, %v3607_v35 }
 0x2ba   : > { %v3610_v60 = vadd.f32 %v6471_v58, %v8889_v63  ;;  %v4834_v51 = vmul.f32 %v8641_v50, %v3717_v52  ;;  %v6473_v10 = vadd.f32 %v6439_v61, %v6179_v40  ;;  %v3608_v30 = vadd.f32 %v6472_v28, %v8889_v63 }
 0x2bb   : > { %v4865_v0 = vadd.f32 %v4864_v47, %v4830_v27  ;;  %v4942_v11 = vadd.f32 %v4941_v38, %v4907_v1  ;;  %v3715_v32 = vsel %vm3643_vm7, %v3607_v35, %v3679_v62  ;;  %vm4557_vm9 = vcmp.ne.s32.totalorder %v8976_v42, 0 }
 0x2bc   : > { %vm3646_vm8 = vcmp.gt.f32.partialorder %v3610_v60, 0.0  ;;  %v3682_v53 = vmul.f32 0.01, %v3610_v60  ;;  %v6183_v57 = vpop.f32.mrb[64].mxu0  ;;  %vm4593_vm11 = vcmp.lt.s32.totalorder %v8976_v42, 0  ;;  %v4832_v59 = vmul.f32 %v8812_v25, %v3715_v32 }
 0x2bd   : > { %v4943_v55 = vadd.f32 %v4942_v11, %v4908_v37  ;;  %v4866_v21 = vadd.f32 %v4865_v0, %v4831_v39  ;;  %v3613_v2 = vadd.f32 %v6473_v10, %v8889_v63  ;;  %v6443_v54 = vpop.f32.mrb[28].mxu1  ;;  %v1860_v27 = vpop.f32.mrb[65].mxu0  ;;  %vm3644_vm13 = vcmp.gt.f32.partialorder %v3608_v30, 0.0  ;;  %vm9092_vm0 = vmand %vm4593_vm11, %vm4557_vm9 }
 0x2be   : > { %v3718_v50 = vsel %vm3646_vm8, %v3610_v60, %v3682_v53  ;;  %v3680_v43 = vmul.f32 0.01, %v3608_v30  ;;  %v6474_v31 = vadd.f32 %v3499_v46, %v1844_v22  ;;  %v3515_v40 = vpop.f32.mrb[29].mxu1  ;;  %v6184_v16 = vpop.f32.mrb[66].mxu0  ;;  %v4910_v9 = vmul.f32 %v4832_v59, %v3715_v32 }
 0x2bf   : > { %v4867_v34 = vadd.f32 %v4866_v21, %v4832_v59  ;;  %v4944_v3 = vadd.f32 %v4943_v55, %v4909_v12  ;;  %v5603_v61 = vpack.c.bf16 %v3718_v50, %v3717_v52  ;;  %v6444_v4 = vpop.f32.mrb[30].mxu1  ;;  %v9074_v15 = vpop.f32.mrb[67].mxu0  ;;  %v4835_v25 = vmul.f32 %v8817_v5, %v3718_v50 }
 0x2c0   : > { %v3716_v39 = vsel %vm3644_vm13, %v3608_v30, %v3680_v43  ;;  %vm3649_vm1 = vcmp.gt.f32.partialorder %v3613_v2, 0.0  ;;  %v3685_v24 = vmul.f32 0.01, %v3613_v2  ;;  %v9077_v44 = vpop.f32.mrb[31].mxu1  ;;  %v3611_v23 = vadd.f32 %v6474_v31, %v8889_v63 }
 0x2c1   : > { %v4945_v49 = vadd.f32 %v4944_v3, %v4910_v9  ;;  %5662 = vst [vmem:[%s9012_s8 + $0x58] sm:$0xff] %v5603_v61   ;;  %v5598_v22 = vpack.c.bf16 %v3716_v39, %v3715_v32  ;;  %v4833_v46 = vmul.f32 %v8902_v56, %v3716_v39  ;;  %v4912_v37 = vmul.f32 %v4834_v51, %v3717_v52 }
 0x2c2   : > { %v3721_v35 = vsel %vm3649_vm1, %v3613_v2, %v3685_v24  ;;  %v6475_v58 = vadd.f32 %v6440_v41, %v9061_v48  ;;  %v6476_v38 = vadd.f32 %v3502_v33, %v1847_v36  ;;  %v4913_v12 = vmul.f32 %v4835_v25, %v3718_v50 }
 0x2c3   : > { %5661 = vst [vmem:[%s9012_s8 + $0x50] sm:$0xff] %v5598_v22   ;;  %v4868_v5 = vadd.f32 %v4867_v34, %v4833_v46  ;;  %v4911_v47 = vmul.f32 %v4833_v46, %v3716_v39  ;;  %vm3647_vm14 = vcmp.gt.f32.partialorder %v3611_v23, 0.0  ;;  %v3683_v1 = vmul.f32 0.01, %v3611_v23 }
 0x2c4   : > { %v3614_v62 = vadd.f32 %v6475_v58, %v8889_v63  ;;  %v3612_v60 = vadd.f32 %v6476_v38, %v8889_v63  ;;  %v6477_v28 = vadd.f32 %v6443_v54, %v6183_v57  ;;  %v6187_v0 = vpop.f32.mrb[68].mxu0  ;;  %v4838_v52 = vmul.f32 %v8907_v7, %v3721_v35 }
 0x2c5   : > { %v4869_v56 = vadd.f32 %v4868_v5, %v4834_v51  ;;  %v4946_v11 = vadd.f32 %v4945_v49, %v4911_v47  ;;  %v6478_v10 = vadd.f32 %v3515_v40, %v1860_v27  ;;  %v6447_v32 = vpop.f32.mrb[32].mxu1  ;;  %v1876_v48 = vpop.f32.mrb[69].mxu0  ;;  %v3719_v41 = vsel %vm3647_vm14, %v3611_v23, %v3683_v1 }
 0x2c6   : > { %vm3650_vm15 = vcmp.gt.f32.partialorder %v3614_v62, 0.0  ;;  %v3686_v36 = vmul.f32 0.01, %v3614_v62  ;;  %vm3648_vm2 = vcmp.gt.f32.partialorder %v3612_v60, 0.0  ;;  %v3531_v33 = vpop.f32.mrb[33].mxu1  ;;  %v6188_v53 = vpop.f32.mrb[70].mxu0  ;;  %v4836_v55 = vmul.f32 %v8912_v14, %v3719_v41 }
 0x2c7   : > { %v4947_v30 = vadd.f32 %v4946_v11, %v4912_v37  ;;  %v4870_v59 = vadd.f32 %v4869_v56, %v4835_v25  ;;  %v3684_v21 = vmul.f32 0.01, %v3612_v60  ;;  %v6448_v57 = vpop.f32.mrb[34].mxu1  ;;  %v1879_v2 = vpop.f32.mrb[71].mxu0  ;;  %v3617_v54 = vadd.f32 %v6477_v28, %v8889_v63 }
 0x2c8   : > { %v3722_v51 = vsel %vm3650_vm15, %v3614_v62, %v3686_v36  ;;  %v3615_v27 = vadd.f32 %v6478_v10, %v8889_v63  ;;  %v6479_v50 = vadd.f32 %v6444_v4, %v6184_v16  ;;  %v3534_v14 = vpop.f32.mrb[35].mxu1  ;;  %v4914_v31 = vmul.f32 %v4836_v55, %v3719_v41 }
 0x2c9   : > { %v4871_v43 = vadd.f32 %v4870_v59, %v4836_v55  ;;  %v4948_v40 = vadd.f32 %v4947_v30, %v4913_v12  ;;  %v5613_v34 = vpack.c.bf16 %v3722_v51, %v3721_v35  ;;  %v4839_v9 = vmul.f32 %v8929_v20, %v3722_v51 }
 0x2ca   : > { %v3720_v3 = vsel %vm3648_vm2, %v3612_v60, %v3684_v21  ;;  %v3689_v61 = vmul.f32 0.01, %v3617_v54  ;;  %v4701_v25 = vsel %vm9092_vm0, %v8997_v6, %v8976_v42  ;;  %vm3651_vm10 = vcmp.gt.f32.partialorder %v3615_v27, 0.0 }
 0x2cb   : > { %v4949_v39 = vadd.f32 %v4948_v40, %v4914_v31  ;;  %5664 = vst [vmem:[%s9012_s8 + $0x68] sm:$0xff] %v5613_v34   ;;  %v5608_v24 = vpack.c.bf16 %v3720_v3, %v3719_v41  ;;  %v4837_v16 = vmul.f32 %v8942_v8, %v3720_v3  ;;  %v4916_v4 = vmul.f32 %v4838_v52, %v3721_v35 }
 0x2cc   : > { %vm3653_vm12 = vcmp.gt.f32.partialorder %v3617_v54, 0.0  ;;  %v3687_v49 = vmul.f32 0.01, %v3615_v27  ;;  %v3618_v22 = vadd.f32 %v6479_v50, %v8889_v63  ;;  %v4917_v20 = vmul.f32 %v4839_v9, %v3722_v51  ;;  %v9380_v50 = vld [vmem:[#allocation17_spill] sm:$0xff] }
 0x2cd   : > { %5663 = vst [vmem:[%s9012_s8 + $0x60] sm:$0xff] %v5608_v24   ;;  %v4872_v46 = vadd.f32 %v4871_v43, %v4837_v16  ;;  %v4915_v23 = vmul.f32 %v4837_v16, %v3720_v3  ;;  %v6480_v37 = vadd.f32 %v9077_v44, %v9074_v15  ;;  %v6481_v6 = vadd.f32 %v6447_v32, %v6187_v0 }
 0x2ce   : > { %v3723_v58 = vsel %vm3651_vm10, %v3615_v27, %v3687_v49  ;;  %vm3654_vm3 = vcmp.gt.f32.partialorder %v3618_v22, 0.0  ;;  %v3690_v42 = vmul.f32 0.01, %v3618_v22  ;;  %v3725_v8 = vsel %vm3653_vm12, %v3617_v54, %v3689_v61 }
 0x2cf   : > { %v4873_v38 = vadd.f32 %v4872_v46, %v4838_v52  ;;  %v4950_v12 = vadd.f32 %v4949_v39, %v4915_v23  ;;  %v4840_v35 = vmul.f32 %v8952_v13, %v3723_v58  ;;  %v3616_v47 = vadd.f32 %v6480_v37, %v8889_v63 }
 0x2d0   : > { %v3726_v5 = vsel %vm3654_vm3, %v3618_v22, %v3690_v42  ;;  %v3621_v1 = vadd.f32 %v6481_v6, %v8889_v63  ;;  %v6482_v62 = vadd.f32 %v3531_v33, %v1876_v48  ;;  %v9375_v0 = vsel %vm9006_vm4, %v8987_v18, %v8958_v17 }
 0x2d1   : > { %v4951_v60 = vadd.f32 %v4950_v12, %v4916_v4  ;;  %v4874_v28 = vadd.f32 %v4873_v38, %v4839_v9  ;;  %v4918_v56 = vmul.f32 %v4840_v35, %v3723_v58  ;;  %v5623_v15 = vpack.c.bf16 %v3726_v5, %v3725_v8 }
 0x2d2   : > { %vm3652_vm5 = vcmp.gt.f32.partialorder %v3616_v47, 0.0  ;;  %v3688_v44 = vmul.f32 0.01, %v3616_v47  ;;  %vm9118_vm6 = vcmp.lt.s32.totalorder %v9375_v0, 16  ;;  %vm9122_vm7 = vcmp.lt.s32.totalorder %v4701_v25, 16  ;;  %v9382_v25 = vld [vmem:[#allocation16_spill] sm:$0xff] }
 0x2d3   : > { %v4842_v52 = vmul.f32 %v8947_v45, %v3725_v8  ;;  %v4875_v10 = vadd.f32 %v4874_v28, %v4840_v35  ;;  %v4952_v32 = vadd.f32 %v4951_v60, %v4917_v20  ;;  %5666 = vst [vmem:[%s9012_s8 + $0x78] sm:$0xff] %v5623_v15   ;;  %v3619_v48 = vadd.f32 %v6482_v62, %v8889_v63 }
 0x2d4   : > { %v3724_v26 = vsel %vm3652_vm5, %v3616_v47, %v3688_v44  ;;  %v3693_v41 = vmul.f32 0.01, %v3621_v1  ;;  %v6483_v36 = vadd.f32 %v6448_v57, %v6188_v53  ;;  %v6484_v17 = vadd.f32 %v3534_v14, %v1879_v2 }
 0x2d5   : > { %v4953_v18 = vadd.f32 %v4952_v32, %v4918_v56  ;;  %v5618_v33 = vpack.c.bf16 %v3724_v26, %v3723_v58  ;;  %v4841_v30 = vmul.f32 %v8969_v29, %v3724_v26  ;;  %vm3657_vm4 = vcmp.gt.f32.partialorder %v3621_v1, 0.0 }
 0x2d6   : > { %v4843_v55 = vmul.f32 %v8964_v19, %v3726_v5  ;;  %vm3655_vm8 = vcmp.gt.f32.partialorder %v3619_v48, 0.0  ;;  %v3691_v45 = vmul.f32 0.01, %v3619_v48  ;;  %v3622_v59 = vadd.f32 %v6483_v36, %v8889_v63 }
 0x2d7   : > { %v4920_v21 = vmul.f32 %v4842_v52, %v3725_v8  ;;  %5665 = vst [vmem:[%s9012_s8 + $0x70] sm:$0xff] %v5618_v33   ;;  %v4876_v7 = vadd.f32 %v4875_v10, %v4841_v30  ;;  %v4919_v51 = vmul.f32 %v4841_v30, %v3724_v26  ;;  %v3620_v53 = vadd.f32 %v6484_v17, %v8889_v63 }
 0x2d8   : > { %v3729_v57 = vsel %vm3657_vm4, %v3621_v1, %v3693_v41  ;;  %v3727_v2 = vsel %vm3655_vm8, %v3619_v48, %v3691_v45  ;;  %vm3658_vm9 = vcmp.gt.f32.partialorder %v3622_v59, 0.0  ;;  %v3694_v54 = vmul.f32 0.01, %v3622_v59 }
 0x2d9   : > { %v4877_v29 = vadd.f32 %v4876_v7, %v4842_v52  ;;  %v4954_v27 = vadd.f32 %v4953_v18, %v4919_v51  ;;  %v4844_v19 = vmul.f32 %v9380_v50, %v3727_v2  ;;  %vm3656_vm11 = vcmp.gt.f32.partialorder %v3620_v53, 0.0 }
 0x2da   : > { %v4921_v14 = vmul.f32 %v4843_v55, %v3726_v5  ;;  %v3730_v43 = vsel %vm3658_vm9, %v3622_v59, %v3694_v54  ;;  %v3692_v31 = vmul.f32 0.01, %v3620_v53  ;;  %v9381_v40 = vmov 0.0  }
 0x2db   : > { %v5371_v34 = vsel %vm9122_vm7, 1.0, %v9381_v40  ;;  %v4955_v63 = vadd.f32 %v4954_v27, %v4920_v21  ;;  %v4878_v9 = vadd.f32 %v4877_v29, %v4843_v55  ;;  %v4922_v3 = vmul.f32 %v4844_v19, %v3727_v2 }
 0x2dc   : > { %v5633_v61 = vpack.c.bf16 %v3730_v43, %v3729_v57  ;;  %v4846_v39 = vmul.f32 %v9382_v25, %v3729_v57  ;;  %v5373_v24 = vsel %vm9118_vm6, 1.0, %v9381_v40  ;;  %v3728_v16 = vsel %vm3656_vm11, %v3620_v53, %v3692_v31 }
 0x2dd   : > { %v4879_v4 = vadd.f32 %v4878_v9, %v4844_v19  ;;  %v4956_v49 = vadd.f32 %v4955_v63, %v4921_v14  ;;  %v5628_v22 = vpack.c.bf16 %v3728_v16, %v3727_v2  ;;  %v4845_v20 = vmul.f32 %v5371_v34, %v3728_v16 }
 0x2de   : > { %5668 = vst [vmem:[%s9012_s8 + $0x88] sm:$0xff] %v5633_v61   ;;  %v4847_v23 = vmul.f32 %v5373_v24, %v3730_v43 }
 0x2df   : > { %v4957_v46 = vadd.f32 %v4956_v49, %v4922_v3  ;;  %5667 = vst [vmem:[%s9012_s8 + $0x80] sm:$0xff] %v5628_v22   ;;  %v4880_v37 = vadd.f32 %v4879_v4, %v4845_v20  ;;  %v4923_v58 = vmul.f32 %v4845_v20, %v3728_v16 }
 0x2e0   : > { %7103 = shalt.err (!%p7100_p10)
}
 0x2e1   : > { %s7104_s26 = scalar_lea.hbm %s9150_s17, 2304  ;;  %s7108_s27 = scalar_lea.hbm %s9232_s5, 4608 }
 0x2e2   : > { %p7105_p4 = scmp.ne.s32.totalorder %s9150_s17, %s7104_s26  ;;  %p7109_p11 = scmp.lt.u32.totalorder %s9150_s17, %s9232_s5 }
 0x2e3   : > { %p7110_p1 = scmp.lt.u32.totalorder %s7108_s27, %s7104_s26  ;;  %p7112_p7 = scmp.lt.u32.totalorder %s7104_s26, %s9150_s17 }
 0x2e4   : > { %p7106_p5 = pnand %p7105_p4, %p9322_p0 }
 0x2e5   : > { %p7111_p3 = por %p7110_p1, %p7109_p11 }
 0x2e6   : > { %p7107_p8 = pneg %p7106_p5 }
 0x2e7   : > { %p7113_p9 = por %p7112_p7, %p7111_p3 }
 0x2e9   : > { %p7114_p12 = pnand %p7113_p9, %p7107_p8 }
 0x2eb   : > { %7117 = shalt.err (!%p7114_p12)
}
 0x2ec   : > { %6823 = dma.vmem_to_hbm [thread:$0]  (%p9322_p0), %s9152_s14, 2304, %s9150_s17, %s9155_s30, %s7203_s11, %s7203_s11, %s7204_s16   ;;  %v4924_v42 = vmul.f32 %v4846_v39, %v3729_v57  ;;  %v4881_v6 = vadd.f32 %v4880_v37, %v4846_v39  ;;  %v4958_v38 = vadd.f32 %v4957_v46, %v4923_v58  ;;  %v4925_v12 = vmul.f32 %v4847_v23, %v3730_v43 }
 0x2ed   : > { %s5183_s15 = sshll.u32 %s7416_s10, 1  ;;  %s5377_s11 = sshll.u32 %s7263_s25, 5 }
 0x2ee   : > { %v4882_v8 = vadd.f32 %v4881_v6, %v4847_v23  ;;  %v4959_v35 = vadd.f32 %v4958_v38, %v4924_v42  ;;  %s316_s16 = scalar_lea.vmem [#allocation11], %s5183_s15  ;;  %s9187_s7 = scalar_lea.hbm %s9233_s6, %s5377_s11 }
 0x2ef   : > { %s5024_s14 = sshll.u32 %s316_s16, 4  ;;  %s7206_s26 = smov [#allocation11]   ;;  %s5025_s14 = int_to_ptr.vmem [resolvable:$true] %s5024_s14 }
 0x2f0   : > { %v4883_v5 = vrot.slane %v4882_v8, 4  ;;  %v4960_v47 = vadd.f32 %v4959_v35, %v4925_v12  ;;  %s7118_s10 = scalar_lea.vmem %s5025_s14, 32  ;;  %s7122_s25 = sshll.u32 %s7206_s26, 4  ;;  %s7123_s25 = int_to_ptr.vmem [resolvable:$false] %s7122_s25 }
 0x2f1   : > { %p7119_p2 = scmp.ne.s32.totalorder %s5025_s14, %s7118_s10  ;;  %s7124_s8 = scalar_lea.vmem %s7123_s25, 64 }
 0x2f2   : > { %v4884_v1 = vadd.f32 %v4883_v5, %v4882_v8  ;;  %v4961_v62 = vrot.slane %v4960_v47, 4  ;;  %p7125_p10 = scmp.lt.s32.totalorder %s5025_s14, %s7123_s25  ;;  %p7126_p4 = scmp.lt.s32.totalorder %s7124_s8, %s7118_s10 }
 0x2f3   : > { %p7120_p13 = pnand %p7119_p2, %p9322_p0 }
 0x2f4   : > { %v4885_v60 = vrot.slane %v4884_v1, 2  ;;  %v4962_v28 = vadd.f32 %v4961_v62, %v4960_v47  ;;  %p7127_p5 = por %p7126_p4, %p7125_p10 }
 0x2f5   : > { %p7121_p6 = pneg %p7120_p13 }
 0x2f6   : > { %v4963_v56 = vrot.slane %v4962_v28, 2  ;;  %v4886_v15 = vadd.f32 %v4885_v60, %v4884_v1 }
 0x2f7   : > { %p7128_p8 = pnand %p7127_p5, %p7121_p6 }
 0x2f8   : > { %v4887_v44 = vrot.slane %v4886_v15, 1  ;;  %v4964_v0 = vadd.f32 %v4963_v56, %v4962_v28 }
 0x2fa   : > { %v4888_v13 = vadd.f32 %v4887_v44, %v4886_v15  ;;  %v4965_v11 = vrot.slane %v4964_v0, 1 }
 0x2fc   : > { %4889 = vst [vmem:[%s316_s16] sm:$0x1] %v4888_v13  ;;  %v4966_v52 = vadd.f32 %v4965_v11, %v4964_v0 }
 0x2fe   : > { %4967 = vst [vmem:[%s316_s16 + $0x1] sm:$0x1] %v4966_v52 }
 0x2ff   : > { %7131 = shalt.err (!%p7128_p8)
}
 0x300   : > { %s7132_s19 = scalar_lea.hbm %s9187_s7, 32  ;;  %s7136_s20 = scalar_lea.hbm %s9233_s6, 64 }
 0x301   : > { %p7133_p11 = scmp.ne.s32.totalorder %s9187_s7, %s7132_s19  ;;  %p7137_p7 = scmp.lt.u32.totalorder %s9187_s7, %s9233_s6 }
 0x302   : > { %p7138_p9 = scmp.lt.u32.totalorder %s7136_s20, %s7132_s19  ;;  %p7140_p2 = scmp.lt.u32.totalorder %s7132_s19, %s9187_s7 }
 0x303   : > { %p7134_p1 = pnand %p7133_p11, %p9322_p0 }
 0x304   : > { %p7139_p12 = por %p7138_p9, %p7137_p7 }
 0x305   : > { %p7135_p3 = pneg %p7134_p1 }
 0x306   : > { %p7141_p13 = por %p7140_p2, %p7139_p12 }
 0x308   : > { %p7142_p6 = pnand %p7141_p13, %p7135_p3 }
 0x30a   : > { %7145 = shalt.err (!%p7142_p6)
}
 0x30b   : > { %6824 = dma.vmem_to_hbm [thread:$0]  (%p9322_p0), %s5025_s14, 32, %s9187_s7, %s9155_s30  }
 0x30c PF: > { %s5036_s16 = sand.u32 1, %s7180_s21   ;;  %p9383_p10 = scmp.ne.s32.totalorder %s9241_s28, 0 }
 0x30d   : > { %p9384_p4 = scmp.ge.s32.totalorder %s7192_s24, 2  ;;  %s5037_s17 = scalar_lea.sflag [#allocation4], %s5036_s16 }
 0x30f   : > { %p6840_p5 = pnand %p9384_p4, %p9383_p10 }
 0x311   : > { %7171 = dma.done.wait (!%p6840_p5), %s5037_s17, 2304  }
 0x312   : > { %7173 = vsyncadd (!%p6840_p5), %s5037_s17, 4294964992  ;;  %s9385_s18 = sadd.s32 4294967294, %s7192_s24  }
 0x313   : > { %s5045_s10 = sand.u32 1, %s9385_s18  }
 0x314   : > { %s5046_s26 = scalar_lea.sflag [#allocation10], %s5045_s10 }
 0x315   : > { %7175 = dma.done.wait (!%p6840_p5), %s5046_s26, 2336  }
 0x316   : > { %7177 = vsyncadd (!%p6840_p5), %s5046_s26, 4294964960  ;;  %p24_p0 = scmp.ge.s32.totalorder %s7354_s9, 4   ;;  %s9386_s21 = smov %s7184_s22 }
 0x317   : > { %s9387_s22 = smov %s7188_s23  ;;  %s9388_s23 = smov %s7370_s13 }
 0x318   : > { %s9389_s24 = smov %s7354_s9  ;;  %26 = sbr.rel (!%p24_p0) target bundleno = 8 (0x8), region = 121 }
 0x31f   :  { %5060 = vsyncpa [#allocation3], 1 }
 0x320   :  { %5062 = vsyncpa [#allocation3 + $0x1], 1 }
 0x321   :  { %5063 = vsyncpa [#allocation6], 1 }
 0x322   :  { %5064 = vsyncpa [#allocation4], 1 }
 0x323   :  { %5066 = vsyncpa [#allocation4 + $0x1], 1 }
 0x324   :  { %5067 = vsyncpa [#allocation10], 1 }
 0x325   :  { %5069 = vsyncpa [#allocation10 + $0x1], 1 }

</bundles_post_ra>
